<compile_context>
chip_gen: v6e
topology: v6e:2x2x1
jax: 0.10.0
libtpu: 0.0.40
codegen_flags: <defaults>
</compile_context>

<pallas_src>
import jax
import jax.numpy as jnp
import numpy as np
from jax.experimental import pallas as pl
from jax.experimental.pallas import tpu as pltpu

WEIGHT_DTYPE = jnp.bfloat16   # MXU operand dtype for W_ih / W_hh
ACT_DTYPE = jnp.bfloat16      # inter-layer activations + gx pre-activations
NUM_LSTMS = 3
NUM_LAYERS_PER_LSTM = 3


def _vmem_limit_bytes():
    """Scoped-VMEM cap: physical capacity minus headroom (128 MiB v5e/v6e, 64 MiB v7x)."""
    try:
        cap = int(pltpu.get_tpu_info().vmem_capacity_bytes)
    except Exception:
        cap = 64 * 1024 * 1024            # conservative fallback (v7x physical VMEM)
    return max(cap - 8 * 1024 * 1024, 32 * 1024 * 1024)


# ---------------------------------------------------------------------------
# Fused kernel: all 9 LSTM layers, layer grid (L+1 steps), streamed weights,
# interleaved next-layer input projection.
# ---------------------------------------------------------------------------
def _lstm_tower_kernel(x_ref, h0_ref, c0_ref, wih_ref, whh_ref, b_ref,
                       y_ref, hT_ref, cT_ref,
                       gx_ref, h_st_ref, c_st_ref):
    T, Bp, H = x_ref.shape
    n_layers = hT_ref.shape[0]            # 9
    n_first = h0_ref.shape[0]             # 3: layers seeded by the external (h, c)
    s = pl.program_id(0)
    wdt = whh_ref.dtype

    # ---- grid step 0: hoisted input projection of layer 0 over the full sequence.
    #      One big (T*Bp, H) x (H, 4H) MXU matmul; wih_ref / b_ref hold layer 0 here.
    @pl.when(s == 0)
    def _():
        x2d = x_ref[...].reshape(T * Bp, H)                                 # bf16
        gx0 = jnp.dot(x2d, wih_ref[0], preferred_element_type=jnp.float32) + b_ref[0]
        gx_ref[...] = gx0.reshape(T, Bp, 4 * H).astype(gx_ref.dtype)

    # ---- grid step s>=1: serial recurrence of layer j = s-1 (whh_ref holds layer j),
    #      interleaving the input projection of layer j+1 (wih_ref / b_ref hold j+1).
    @pl.when(s > 0)
    def _():
        j = s - 1

        # Initial state: external (h0, c0) for the first LSTM's layers, otherwise the
        # final state of the same sub-layer of the previous LSTM (PyTorch chaining:
        # rnn1/rnn2 are seeded with the previous LSTM's (h_out, c_out)).
        @pl.when(j < n_first)
        def _():
            h_st_ref[...] = h0_ref[j]
            c_st_ref[...] = c0_ref[j]

        @pl.when(j >= n_first)
        def _():
            h_st_ref[...] = hT_ref[j - n_first]
            c_st_ref[...] = cT_ref[j - n_first]

        whh = whh_ref[0]          # (H, 4H) bf16 — layer j recurrent weights
        wih_next = wih_ref[0]     # (H, 4H) bf16 — layer j+1 input weights (clamped at top)
        b_next = b_ref[0]         # (1, 4H) f32  — layer j+1 fused bias

        def step(t, carry):
            h_prev, c_prev = carry
            gates = gx_ref[t].astype(jnp.float32) + jnp.dot(
                h_prev.astype(wdt), whh, preferred_element_type=jnp.float32)
            i_g = jax.nn.sigmoid(gates[:, 0 * H:1 * H])
            f_g = jax.nn.sigmoid(gates[:, 1 * H:2 * H])
            g_g = jnp.tanh(gates[:, 2 * H:3 * H])
            o_g = jax.nn.sigmoid(gates[:, 3 * H:4 * H])
            c_new = f_g * c_prev + i_g * g_g
            h_new = o_g * jnp.tanh(c_new)
            h_bf = h_new.astype(y_ref.dtype)
            y_ref[t] = h_bf
            # Interleaved next-layer projection (MXU filler): gx^{j}[t] has just been
            # consumed, so it is overwritten in place with gx^{j+1}[t].  At the very
            # last layer this is dead work into a never-read slot (kept unconditional:
            # the MXU is idle during the gate math anyway and the loop body stays uniform).
            gx_next = jnp.dot(h_bf, wih_next,
                              preferred_element_type=jnp.float32) + b_next
            gx_ref[t] = gx_next.astype(gx_ref.dtype)
            return h_new, c_new

        hT, cT = jax.lax.fori_loop(0, T, step, (h_st_ref[...], c_st_ref[...]),
                                   unroll=min(T, 8))
        hT_ref[j] = hT
        cT_ref[j] = cT

    # TODO(synk): v7x (2 TCs) — cross-core layer wavefront (odd/even layers on separate
    #             cores, per-timestep h hand-off through VMEM_SHARED + semaphores).
    # TODO(synk): v5e — if lax.logistic lowers to a VPU divide, rewrite sigmoid as
    #             exp(-x) on the EUP + pl.reciprocal(1 + e, approx=True).


def lstm_tower(x_tbh, h0, c0, wih_all, whh_all, b_all):
    """Run all 9 LSTM layers over the full sequence in one pallas_call.

    x_tbh:            (T, Bp, H) bf16, time-major, Bp a multiple of 16.
    h0, c0:           (3, Bp, H) f32 initial state for the FIRST 3-layer LSTM.
    wih_all, whh_all: (9, H, 4H) bf16 (pre-transposed), b_all: (9, 1, 4H) f32.
    Returns y (T, Bp, H) bf16 = last layer's hidden sequence, and hT, cT (9, Bp, H) f32.
    """
    T, Bp, H = x_tbh.shape
    L = wih_all.shape[0]

    # Full-array residents (constant block index -> loaded once / written back at end).
    x_spec = pl.BlockSpec((T, Bp, H), lambda s: (0, 0, 0))
    hc0_spec = pl.BlockSpec((NUM_LAYERS_PER_LSTM, Bp, H), lambda s: (0, 0, 0))
    y_spec = pl.BlockSpec((T, Bp, H), lambda s: (0, 0, 0))
    st_spec = pl.BlockSpec((L, Bp, H), lambda s: (0, 0, 0))
    # Streamed per-layer weights (auto double-buffered: next layer's DMA overlaps compute).
    wih_spec = pl.BlockSpec((1, H, 4 * H), lambda s: (jnp.minimum(s, L - 1), 0, 0))
    whh_spec = pl.BlockSpec((1, H, 4 * H), lambda s: (jnp.maximum(s - 1, 0), 0, 0))
    b_spec = pl.BlockSpec((1, 1, 4 * H), lambda s: (jnp.minimum(s, L - 1), 0, 0))

    return pl.pallas_call(
        _lstm_tower_kernel,
        grid=(L + 1,),
        out_shape=(
            jax.ShapeDtypeStruct((T, Bp, H), ACT_DTYPE),      # y (last layer's sequence)
            jax.ShapeDtypeStruct((L, Bp, H), jnp.float32),    # hT per layer
            jax.ShapeDtypeStruct((L, Bp, H), jnp.float32),    # cT per layer
        ),
        in_specs=[x_spec, hc0_spec, hc0_spec, wih_spec, whh_spec, b_spec],
        out_specs=(y_spec, st_spec, st_spec),
        scratch_shapes=[
            pltpu.VMEM((T, Bp, 4 * H), ACT_DTYPE),            # gx: current pre-activations
            pltpu.VMEM((Bp, H), jnp.float32),                 # h init staging
            pltpu.VMEM((Bp, H), jnp.float32),                 # c init staging
        ],
        compiler_params=pltpu.CompilerParams(
            dimension_semantics=("arbitrary",),               # serial layer dependency
            vmem_limit_bytes=_vmem_limit_bytes(),
        ),
    )(x_tbh, h0, c0, wih_all, whh_all, b_all)


# ---------------------------------------------------------------------------
# Parameter construction (deterministic, PyTorch-like uniform init), layers stacked
# in execution order: rnn L0..L2, rnn1 L0..L2, rnn2 L0..L2.
# ---------------------------------------------------------------------------
def init_params(key, dim_x, hidden_dim, num_lstms=NUM_LSTMS,
                num_layers=NUM_LAYERS_PER_LSTM, weight_dtype=WEIGHT_DTYPE):
    n_total = num_lstms * num_layers
    keys = jax.random.split(key, 1 + n_total * 4)
    emb = jax.random.normal(keys[0], (dim_x, hidden_dim), jnp.float32)
    bound = 1.0 / np.sqrt(hidden_dim)
    wih, whh, b = [], [], []
    k = 1
    for _ in range(n_total):
        w_ih = jax.random.uniform(keys[k + 0], (4 * hidden_dim, hidden_dim),
                                  jnp.float32, -bound, bound)
        w_hh = jax.random.uniform(keys[k + 1], (4 * hidden_dim, hidden_dim),
                                  jnp.float32, -bound, bound)
        b_ih = jax.random.uniform(keys[k + 2], (4 * hidden_dim,),
                                  jnp.float32, -bound, bound)
        b_hh = jax.random.uniform(keys[k + 3], (4 * hidden_dim,),
                                  jnp.float32, -bound, bound)
        k += 4
        wih.append(w_ih.T.astype(weight_dtype))                # (H, 4H)
        whh.append(w_hh.T.astype(weight_dtype))                # (H, 4H)
        b.append((b_ih + b_hh).reshape(1, 4 * hidden_dim))     # (1, 4H) f32
    return {
        "emb": emb,
        "wih_t": jnp.stack(wih),    # (9, H, 4H) bf16
        "whh_t": jnp.stack(whh),    # (9, H, 4H) bf16
        "b": jnp.stack(b),          # (9, 1, 4H) f32
    }


# ---------------------------------------------------------------------------
# WriterNN.forward equivalent.
# ---------------------------------------------------------------------------
def _prepare(params, x_ids, h, c):
    emb = params["emb"]
    vec_x = jnp.take(emb, x_ids, axis=0)                   # (B, T, H) gather (plain JAX)
    B, T, H = vec_x.shape
    if h is None:
        h = jnp.zeros((NUM_LAYERS_PER_LSTM, B, H), jnp.float32)
        c = jnp.zeros((NUM_LAYERS_PER_LSTM, B, H), jnp.float32)
    # Pad batch to 16: a full native bf16 (16,128) tile, so h_prev needs no per-step
    # sublane relayout on the serial critical path.  Padded rows are zero-seeded and
    # sliced off at the end; they never influence the real rows.
    Bp = ((B + 15) // 16) * 16
    pad = Bp - B
    x_tbh = jnp.pad(jnp.transpose(vec_x, (1, 0, 2)),
                    ((0, 0), (0, pad), (0, 0))).astype(ACT_DTYPE)
    hp = jnp.pad(h, ((0, 0), (0, pad), (0, 0)))
    cp = jnp.pad(c, ((0, 0), (0, pad), (0, 0)))
    return x_tbh, hp, cp, B


def writer_nn_forward(params, x_ids, y_ids, h, c):
    vec_y = jnp.take(params["emb"], y_ids, axis=0)          # (B, Ty, H)
    x_tbh, hp, cp, B = _prepare(params, x_ids, h, c)
    y, hT, cT = lstm_tower(x_tbh, hp, cp,
                           params["wih_t"], params["whh_t"], params["b"])
    out_last = jnp.transpose(y[-1:, :B, :], (1, 0, 2)).astype(jnp.float32)  # (B, 1, H)
    h_out = hT[-NUM_LAYERS_PER_LSTM:, :B, :]                # rnn2's final (3, B, H)
    c_out = cT[-NUM_LAYERS_PER_LSTM:, :B, :]
    return out_last, vec_y, h_out, c_out


writer_nn_forward_jit = jax.jit(writer_nn_forward)


# ---------------------------------------------------------------------------
# Pure-JAX reference with matched numerics (bf16 weights/activations/gx, f32 state).
# ---------------------------------------------------------------------------
def _ref_tower(x_tbh, h0, c0, wih_all, whh_all, b_all):
    T, Bp, H = x_tbh.shape
    L = wih_all.shape[0]
    wdt = whh_all.dtype
    y = x_tbh                                               # bf16
    hs, cs = [], []
    for l in range(L):
        gx = (jnp.dot(y.reshape(T * Bp, H), wih_all[l],
                      preferred_element_type=jnp.float32) + b_all[l])
        gx = gx.reshape(T, Bp, 4 * H).astype(ACT_DTYPE)     # matches bf16 gx scratch
        h0l = h0[l] if l < NUM_LAYERS_PER_LSTM else hs[l - NUM_LAYERS_PER_LSTM]
        c0l = c0[l] if l < NUM_LAYERS_PER_LSTM else cs[l - NUM_LAYERS_PER_LSTM]

        def step(carry, g_t, l=l):
            h_prev, c_prev = carry
            gates = g_t.astype(jnp.float32) + jnp.dot(
                h_prev.astype(wdt), whh_all[l], preferred_element_type=jnp.float32)
            i_g = jax.nn.sigmoid(gates[:, 0 * H:1 * H])
            f_g = jax.nn.sigmoid(gates[:, 1 * H:2 * H])
            g_g = jnp.tanh(gates[:, 2 * H:3 * H])
            o_g = jax.nn.sigmoid(gates[:, 3 * H:4 * H])
            c_new = f_g * c_prev + i_g * g_g
            h_new = o_g * jnp.tanh(c_new)
            return (h_new, c_new), h_new.astype(ACT_DTYPE)

        (hT, cT), y = jax.lax.scan(step, (h0l, c0l), gx)
        hs.append(hT)
        cs.append(cT)
    return y, jnp.stack(hs), jnp.stack(cs)


def writer_nn_forward_ref(params, x_ids, y_ids, h, c):
    vec_y = jnp.take(params["emb"], y_ids, axis=0)
    x_tbh, hp, cp, B = _prepare(params, x_ids, h, c)
    y, hT, cT = _ref_tower(x_tbh, hp, cp,
                           params["wih_t"], params["whh_t"], params["b"])
    out_last = jnp.transpose(y[-1:, :B, :], (1, 0, 2)).astype(jnp.float32)
    return (out_last, vec_y,
            hT[-NUM_LAYERS_PER_LSTM:, :B, :], cT[-NUM_LAYERS_PER_LSTM:, :B, :])


if __name__ == "__main__":
    # Small shapes consistent with the module: batch=2, seq=8, hidden=128, vocab=50.
    V, B, T, H = 50, 2, 8, 128
    key = jax.random.PRNGKey(0)
    pkey, xkey, ykey = jax.random.split(key, 3)

    params = init_params(pkey, dim_x=V, hidden_dim=H)
    x_ids = jax.random.randint(xkey, (B, T), 0, V, dtype=jnp.int32)
    y_ids = jax.random.randint(ykey, (B, T), 0, V, dtype=jnp.int32)

    # h is None branch (rnn(vec_x, None)), as in the reference forward usage.
    out_last, vec_y, h_out, c_out = writer_nn_forward_jit(params, x_ids, y_ids, None, None)
    jax.block_until_ready((out_last, vec_y, h_out, c_out))

    assert out_last.shape == (B, 1, H)
    assert vec_y.shape == (B, T, H)
    assert h_out.shape == (NUM_LAYERS_PER_LSTM, B, H)
    assert c_out.shape == (NUM_LAYERS_PER_LSTM, B, H)

    # Sanity check against the numerics-matched pure-JAX reference.
    r_out, r_vy, r_h, r_c = writer_nn_forward_ref(params, x_ids, y_ids, None, None)
    np.testing.assert_allclose(np.asarray(out_last), np.asarray(r_out), atol=2e-3, rtol=2e-3)
    np.testing.assert_allclose(np.asarray(h_out), np.asarray(r_h), atol=2e-3, rtol=2e-3)
    np.testing.assert_allclose(np.asarray(c_out), np.asarray(r_c), atol=2e-3, rtol=2e-3)
    np.testing.assert_array_equal(np.asarray(vec_y), np.asarray(r_vy))

    print("KERNEL_OK")
</pallas_src>

<mosaic_0001>
module attributes {stable_mosaic.version = 11 : i64} {
  func.func @_lstm_tower_kernel(%arg0: i32, %arg1: memref<8x16x128xbf16, #tpu.memory_space<vmem>>, %arg2: memref<3x16x128xf32, #tpu.memory_space<vmem>>, %arg3: memref<3x16x128xf32, #tpu.memory_space<vmem>>, %arg4: memref<1x128x512xbf16, #tpu.memory_space<vmem>>, %arg5: memref<1x128x512xbf16, #tpu.memory_space<vmem>>, %arg6: memref<1x1x512xf32, #tpu.memory_space<vmem>>, %arg7: memref<8x16x128xbf16, #tpu.memory_space<vmem>>, %arg8: memref<9x16x128xf32, #tpu.memory_space<vmem>>, %arg9: memref<9x16x128xf32, #tpu.memory_space<vmem>>, %arg10: memref<8x16x512xbf16, #tpu.memory_space<vmem>>, %arg11: memref<16x128xf32, #tpu.memory_space<vmem>>, %arg12: memref<16x128xf32, #tpu.memory_space<vmem>>) attributes {dimension_semantics = [#tpu.dimension_semantics<arbitrary>], iteration_bounds = array<i64: 10>, scalar_prefetch = 0 : i64, scratch_operands = 3 : i64, tpu.core_type = #tpu.core_type<tc>, window_params = [{pipeline_mode = #tpu.pipeline_mode<synchronous>, transform_indices = @transform_0, window_bounds = array<i64: 8, 16, 128>}, {pipeline_mode = #tpu.pipeline_mode<synchronous>, transform_indices = @transform_1, window_bounds = array<i64: 3, 16, 128>}, {pipeline_mode = #tpu.pipeline_mode<synchronous>, transform_indices = @transform_2, window_bounds = array<i64: 3, 16, 128>}, {transform_indices = @transform_3, window_bounds = array<i64: 1, 128, 512>}, {transform_indices = @transform_4, window_bounds = array<i64: 1, 128, 512>}, {transform_indices = @transform_5, window_bounds = array<i64: 1, 1, 512>}, {pipeline_mode = #tpu.pipeline_mode<synchronous>, transform_indices = @transform_6, window_bounds = array<i64: 8, 16, 128>}, {pipeline_mode = #tpu.pipeline_mode<synchronous>, transform_indices = @transform_7, window_bounds = array<i64: 9, 16, 128>}, {pipeline_mode = #tpu.pipeline_mode<synchronous>, transform_indices = @transform_8, window_bounds = array<i64: 9, 16, 128>}]} {
    %c0_i32 = arith.constant 0 : i32
    %0 = arith.cmpi eq, %arg0, %c0_i32 : i32
    %1 = arith.extui %0 : i1 to i32
    %c0_i32_0 = arith.constant 0 : i32
    %2 = arith.cmpi ne, %1, %c0_i32_0 : i32
    scf.if %2 {
      %c0 = arith.constant 0 : index
      %c0_3 = arith.constant 0 : index
      %c0_4 = arith.constant 0 : index
      %6 = vector.load %arg1[%c0, %c0_3, %c0_4] : memref<8x16x128xbf16, #tpu.memory_space<vmem>>, vector<8x16x128xbf16>
      %7 = vector.shape_cast %6 : vector<8x16x128xbf16> to vector<128x128xbf16>
      %c0_5 = arith.constant 0 : index
      %c0_6 = arith.constant 0 : index
      %c0_7 = arith.constant 0 : index
      %8 = vector.load %arg4[%c0_5, %c0_6, %c0_7] : memref<1x128x512xbf16, #tpu.memory_space<vmem>>, vector<1x128x512xbf16>
      %9 = vector.shape_cast %8 : vector<1x128x512xbf16> to vector<128x512xbf16>
      %cst = arith.constant dense<0.000000e+00> : vector<128x512xf32>
      %10 = tpu.matmul %7, %9, %cst {dimension_numbers = #tpu.dot_dimension_numbers<[1], [0], [0], [1], [0, 0, 1, 1], [], []>} : vector<128x128xbf16>, vector<128x512xbf16>, vector<128x512xf32> -> vector<128x512xf32>
      %c0_8 = arith.constant 0 : index
      %c0_9 = arith.constant 0 : index
      %c0_10 = arith.constant 0 : index
      %11 = vector.load %arg6[%c0_8, %c0_9, %c0_10] : memref<1x1x512xf32, #tpu.memory_space<vmem>>, vector<1x1x512xf32>
      %12 = vector.shape_cast %11 : vector<1x1x512xf32> to vector<1x512xf32>
      %13 = vector.broadcast %12 : vector<1x512xf32> to vector<128x512xf32>
      %14 = arith.addf %10, %13 : vector<128x512xf32>
      %15 = vector.shape_cast %14 : vector<128x512xf32> to vector<8x16x512xf32>
      %16 = arith.truncf %15 : vector<8x16x512xf32> to vector<8x16x512xbf16>
      %c0_11 = arith.constant 0 : index
      %c0_12 = arith.constant 0 : index
      %c0_13 = arith.constant 0 : index
      %17 = vector.load %arg10[%c0_11, %c0_12, %c0_13] : memref<8x16x512xbf16, #tpu.memory_space<vmem>>, vector<8x16x512xbf16>
      tpu.vector_store %arg10[%c0_11, %c0_12, %c0_13], %16 {strides = array<i32>} : memref<8x16x512xbf16, #tpu.memory_space<vmem>>, vector<8x16x512xbf16>,
    } else {
    }
    %c0_i32_1 = arith.constant 0 : i32
    %3 = arith.cmpi sgt, %arg0, %c0_i32_1 : i32
    %4 = arith.extui %3 : i1 to i32
    %c0_i32_2 = arith.constant 0 : i32
    %5 = arith.cmpi ne, %4, %c0_i32_2 : i32
    scf.if %5 {
      %c1_i32 = arith.constant 1 : i32
      %6 = arith.subi %arg0, %c1_i32 : i32
      %c3_i32 = arith.constant 3 : i32
      %7 = arith.cmpi slt, %6, %c3_i32 : i32
      %8 = arith.extui %7 : i1 to i32
      %c0_i32_3 = arith.constant 0 : i32
      %9 = arith.cmpi ne, %8, %c0_i32_3 : i32
      scf.if %9 {
        %389 = arith.index_cast %6 : i32 to index
        %c0_112 = arith.constant 0 : index
        %c0_113 = arith.constant 0 : index
        %390 = vector.load %arg2[%389, %c0_112, %c0_113] : memref<3x16x128xf32, #tpu.memory_space<vmem>>, vector<1x16x128xf32>
        %391 = vector.shape_cast %390 : vector<1x16x128xf32> to vector<16x128xf32>
        %c0_114 = arith.constant 0 : index
        %c0_115 = arith.constant 0 : index
        %392 = vector.load %arg11[%c0_114, %c0_115] : memref<16x128xf32, #tpu.memory_space<vmem>>, vector<16x128xf32>
        tpu.vector_store %arg11[%c0_114, %c0_115], %391 {strides = array<i32>} : memref<16x128xf32, #tpu.memory_space<vmem>>, vector<16x128xf32>,
        %393 = arith.index_cast %6 : i32 to index
        %c0_116 = arith.constant 0 : index
        %c0_117 = arith.constant 0 : index
        %394 = vector.load %arg3[%393, %c0_116, %c0_117] : memref<3x16x128xf32, #tpu.memory_space<vmem>>, vector<1x16x128xf32>
        %395 = vector.shape_cast %394 : vector<1x16x128xf32> to vector<16x128xf32>
        %c0_118 = arith.constant 0 : index
        %c0_119 = arith.constant 0 : index
        %396 = vector.load %arg12[%c0_118, %c0_119] : memref<16x128xf32, #tpu.memory_space<vmem>>, vector<16x128xf32>
        tpu.vector_store %arg12[%c0_118, %c0_119], %395 {strides = array<i32>} : memref<16x128xf32, #tpu.memory_space<vmem>>, vector<16x128xf32>,
      } else {
      }
      %c3_i32_4 = arith.constant 3 : i32
      %10 = arith.cmpi sge, %6, %c3_i32_4 : i32
      %11 = arith.extui %10 : i1 to i32
      %c0_i32_5 = arith.constant 0 : i32
      %12 = arith.cmpi ne, %11, %c0_i32_5 : i32
      scf.if %12 {
        %c3_i32_112 = arith.constant 3 : i32
        %389 = arith.subi %6, %c3_i32_112 : i32
        %390 = arith.index_cast %389 : i32 to index
        %c0_113 = arith.constant 0 : index
        %c0_114 = arith.constant 0 : index
        %391 = vector.load %arg8[%390, %c0_113, %c0_114] : memref<9x16x128xf32, #tpu.memory_space<vmem>>, vector<1x16x128xf32>
        %392 = vector.shape_cast %391 : vector<1x16x128xf32> to vector<16x128xf32>
        %c0_115 = arith.constant 0 : index
        %c0_116 = arith.constant 0 : index
        %393 = vector.load %arg11[%c0_115, %c0_116] : memref<16x128xf32, #tpu.memory_space<vmem>>, vector<16x128xf32>
        tpu.vector_store %arg11[%c0_115, %c0_116], %392 {strides = array<i32>} : memref<16x128xf32, #tpu.memory_space<vmem>>, vector<16x128xf32>,
        %c3_i32_117 = arith.constant 3 : i32
        %394 = arith.subi %6, %c3_i32_117 : i32
        %395 = arith.index_cast %394 : i32 to index
        %c0_118 = arith.constant 0 : index
        %c0_119 = arith.constant 0 : index
        %396 = vector.load %arg9[%395, %c0_118, %c0_119] : memref<9x16x128xf32, #tpu.memory_space<vmem>>, vector<1x16x128xf32>
        %397 = vector.shape_cast %396 : vector<1x16x128xf32> to vector<16x128xf32>
        %c0_120 = arith.constant 0 : index
        %c0_121 = arith.constant 0 : index
        %398 = vector.load %arg12[%c0_120, %c0_121] : memref<16x128xf32, #tpu.memory_space<vmem>>, vector<16x128xf32>
        tpu.vector_store %arg12[%c0_120, %c0_121], %397 {strides = array<i32>} : memref<16x128xf32, #tpu.memory_space<vmem>>, vector<16x128xf32>,
      } else {
      }
      %c0 = arith.constant 0 : index
      %c0_6 = arith.constant 0 : index
      %c0_7 = arith.constant 0 : index
      %13 = vector.load %arg5[%c0, %c0_6, %c0_7] : memref<1x128x512xbf16, #tpu.memory_space<vmem>>, vector<1x128x512xbf16>
      %14 = vector.shape_cast %13 : vector<1x128x512xbf16> to vector<128x512xbf16>
      %c0_8 = arith.constant 0 : index
      %c0_9 = arith.constant 0 : index
      %c0_10 = arith.constant 0 : index
      %15 = vector.load %arg4[%c0_8, %c0_9, %c0_10] : memref<1x128x512xbf16, #tpu.memory_space<vmem>>, vector<1x128x512xbf16>
      %16 = vector.shape_cast %15 : vector<1x128x512xbf16> to vector<128x512xbf16>
      %c0_11 = arith.constant 0 : index
      %c0_12 = arith.constant 0 : index
      %c0_13 = arith.constant 0 : index
      %17 = vector.load %arg6[%c0_11, %c0_12, %c0_13] : memref<1x1x512xf32, #tpu.memory_space<vmem>>, vector<1x1x512xf32>
      %18 = vector.shape_cast %17 : vector<1x1x512xf32> to vector<1x512xf32>
      %c0_14 = arith.constant 0 : index
      %c0_15 = arith.constant 0 : index
      %19 = vector.load %arg11[%c0_14, %c0_15] : memref<16x128xf32, #tpu.memory_space<vmem>>, vector<16x128xf32>
      %c0_16 = arith.constant 0 : index
      %c0_17 = arith.constant 0 : index
      %20 = vector.load %arg12[%c0_16, %c0_17] : memref<16x128xf32, #tpu.memory_space<vmem>>, vector<16x128xf32>
      %c0_i32_18 = arith.constant 0 : i32
      %21 = arith.index_cast %c0_i32_18 : i32 to index
      %c0_19 = arith.constant 0 : index
      %c0_20 = arith.constant 0 : index
      %22 = vector.load %arg10[%21, %c0_19, %c0_20] : memref<8x16x512xbf16, #tpu.memory_space<vmem>>, vector<1x16x512xbf16>
      %23 = vector.shape_cast %22 : vector<1x16x512xbf16> to vector<16x512xbf16>
      %24 = arith.extf %23 : vector<16x512xbf16> to vector<16x512xf32>
      %25 = arith.truncf %19 : vector<16x128xf32> to vector<16x128xbf16>
      %cst = arith.constant dense<0.000000e+00> : vector<16x512xf32>
      %26 = tpu.matmul %25, %14, %cst {dimension_numbers = #tpu.dot_dimension_numbers<[1], [0], [0], [1], [0, 0, 1, 1], [], []>} : vector<16x128xbf16>, vector<128x512xbf16>, vector<16x512xf32> -> vector<16x512xf32>
      %27 = arith.addf %24, %26 : vector<16x512xf32>
      %28 = vector.extract_strided_slice %27 {offsets = [0, 0], sizes = [16, 128], strides = [1, 1]} : vector<16x512xf32> to vector<16x128xf32>
      %29 = arith.negf %28 : vector<16x128xf32>
      %30 = math.exp %29 : vector<16x128xf32>
      %cst_21 = arith.constant 1.000000e+00 : f32
      %31 = vector.broadcast %cst_21 : f32 to vector<16x128xf32>
      %32 = arith.addf %31, %30 : vector<16x128xf32>
      %33 = arith.divf %31, %32 : vector<16x128xf32>
      %34 = vector.extract_strided_slice %27 {offsets = [0, 128], sizes = [16, 128], strides = [1, 1]} : vector<16x512xf32> to vector<16x128xf32>
      %35 = arith.negf %34 : vector<16x128xf32>
      %36 = math.exp %35 : vector<16x128xf32>
      %cst_22 = arith.constant 1.000000e+00 : f32
      %37 = vector.broadcast %cst_22 : f32 to vector<16x128xf32>
      %38 = arith.addf %37, %36 : vector<16x128xf32>
      %39 = arith.divf %37, %38 : vector<16x128xf32>
      %40 = vector.extract_strided_slice %27 {offsets = [0, 256], sizes = [16, 128], strides = [1, 1]} : vector<16x512xf32> to vector<16x128xf32>
      %41 = math.tanh %40 : vector<16x128xf32>
      %42 = vector.extract_strided_slice %27 {offsets = [0, 384], sizes = [16, 128], strides = [1, 1]} : vector<16x512xf32> to vector<16x128xf32>
      %43 = arith.negf %42 : vector<16x128xf32>
      %44 = math.exp %43 : vector<16x128xf32>
      %cst_23 = arith.constant 1.000000e+00 : f32
      %45 = vector.broadcast %cst_23 : f32 to vector<16x128xf32>
      %46 = arith.addf %45, %44 : vector<16x128xf32>
      %47 = arith.divf %45, %46 : vector<16x128xf32>
      %48 = arith.mulf %39, %20 : vector<16x128xf32>
      %49 = arith.mulf %33, %41 : vector<16x128xf32>
      %50 = arith.addf %48, %49 : vector<16x128xf32>
      %51 = math.tanh %50 : vector<16x128xf32>
      %52 = arith.mulf %47, %51 : vector<16x128xf32>
      %53 = arith.truncf %52 : vector<16x128xf32> to vector<16x128xbf16>
      %54 = arith.index_cast %c0_i32_18 : i32 to index
      %c0_24 = arith.constant 0 : index
      %c0_25 = arith.constant 0 : index
      %55 = vector.load %arg7[%54, %c0_24, %c0_25] : memref<8x16x128xbf16, #tpu.memory_space<vmem>>, vector<1x16x128xbf16>
      %56 = vector.shape_cast %55 : vector<1x16x128xbf16> to vector<16x128xbf16>
      %57 = vector.shape_cast %53 : vector<16x128xbf16> to vector<1x16x128xbf16>
      tpu.vector_store %arg7[%54, %c0_24, %c0_25], %57 {strides = array<i32>} : memref<8x16x128xbf16, #tpu.memory_space<vmem>>, vector<1x16x128xbf16>,
      %cst_26 = arith.constant dense<0.000000e+00> : vector<16x512xf32>
      %58 = tpu.matmul %53, %16, %cst_26 {dimension_numbers = #tpu.dot_dimension_numbers<[1], [0], [0], [1], [0, 0, 1, 1], [], []>} : vector<16x128xbf16>, vector<128x512xbf16>, vector<16x512xf32> -> vector<16x512xf32>
      %59 = vector.broadcast %18 : vector<1x512xf32> to vector<16x512xf32>
      %60 = arith.addf %58, %59 : vector<16x512xf32>
      %61 = arith.truncf %60 : vector<16x512xf32> to vector<16x512xbf16>
      %62 = arith.index_cast %c0_i32_18 : i32 to index
      %c0_27 = arith.constant 0 : index
      %c0_28 = arith.constant 0 : index
      %63 = vector.load %arg10[%62, %c0_27, %c0_28] : memref<8x16x512xbf16, #tpu.memory_space<vmem>>, vector<1x16x512xbf16>
      %64 = vector.shape_cast %63 : vector<1x16x512xbf16> to vector<16x512xbf16>
      %65 = vector.shape_cast %61 : vector<16x512xbf16> to vector<1x16x512xbf16>
      tpu.vector_store %arg10[%62, %c0_27, %c0_28], %65 {strides = array<i32>} : memref<8x16x512xbf16, #tpu.memory_space<vmem>>, vector<1x16x512xbf16>,
      %c1_i32_29 = arith.constant 1 : i32
      %66 = arith.index_cast %c1_i32_29 : i32 to index
      %c0_30 = arith.constant 0 : index
      %c0_31 = arith.constant 0 : index
      %67 = vector.load %arg10[%66, %c0_30, %c0_31] : memref<8x16x512xbf16, #tpu.memory_space<vmem>>, vector<1x16x512xbf16>
      %68 = vector.shape_cast %67 : vector<1x16x512xbf16> to vector<16x512xbf16>
      %69 = arith.extf %68 : vector<16x512xbf16> to vector<16x512xf32>
      %70 = arith.truncf %52 : vector<16x128xf32> to vector<16x128xbf16>
      %cst_32 = arith.constant dense<0.000000e+00> : vector<16x512xf32>
      %71 = tpu.matmul %70, %14, %cst_32 {dimension_numbers = #tpu.dot_dimension_numbers<[1], [0], [0], [1], [0, 0, 1, 1], [], []>} : vector<16x128xbf16>, vector<128x512xbf16>, vector<16x512xf32> -> vector<16x512xf32>
      %72 = arith.addf %69, %71 : vector<16x512xf32>
      %73 = vector.extract_strided_slice %72 {offsets = [0, 0], sizes = [16, 128], strides = [1, 1]} : vector<16x512xf32> to vector<16x128xf32>
      %74 = arith.negf %73 : vector<16x128xf32>
      %75 = math.exp %74 : vector<16x128xf32>
      %cst_33 = arith.constant 1.000000e+00 : f32
      %76 = vector.broadcast %cst_33 : f32 to vector<16x128xf32>
      %77 = arith.addf %76, %75 : vector<16x128xf32>
      %78 = arith.divf %76, %77 : vector<16x128xf32>
      %79 = vector.extract_strided_slice %72 {offsets = [0, 128], sizes = [16, 128], strides = [1, 1]} : vector<16x512xf32> to vector<16x128xf32>
      %80 = arith.negf %79 : vector<16x128xf32>
      %81 = math.exp %80 : vector<16x128xf32>
      %cst_34 = arith.constant 1.000000e+00 : f32
      %82 = vector.broadcast %cst_34 : f32 to vector<16x128xf32>
      %83 = arith.addf %82, %81 : vector<16x128xf32>
      %84 = arith.divf %82, %83 : vector<16x128xf32>
      %85 = vector.extract_strided_slice %72 {offsets = [0, 256], sizes = [16, 128], strides = [1, 1]} : vector<16x512xf32> to vector<16x128xf32>
      %86 = math.tanh %85 : vector<16x128xf32>
      %87 = vector.extract_strided_slice %72 {offsets = [0, 384], sizes = [16, 128], strides = [1, 1]} : vector<16x512xf32> to vector<16x128xf32>
      %88 = arith.negf %87 : vector<16x128xf32>
      %89 = math.exp %88 : vector<16x128xf32>
      %cst_35 = arith.constant 1.000000e+00 : f32
      %90 = vector.broadcast %cst_35 : f32 to vector<16x128xf32>
      %91 = arith.addf %90, %89 : vector<16x128xf32>
      %92 = arith.divf %90, %91 : vector<16x128xf32>
      %93 = arith.mulf %84, %50 : vector<16x128xf32>
      %94 = arith.mulf %78, %86 : vector<16x128xf32>
      %95 = arith.addf %93, %94 : vector<16x128xf32>
      %96 = math.tanh %95 : vector<16x128xf32>
      %97 = arith.mulf %92, %96 : vector<16x128xf32>
      %98 = arith.truncf %97 : vector<16x128xf32> to vector<16x128xbf16>
      %99 = arith.index_cast %c1_i32_29 : i32 to index
      %c0_36 = arith.constant 0 : index
      %c0_37 = arith.constant 0 : index
      %100 = vector.load %arg7[%99, %c0_36, %c0_37] : memref<8x16x128xbf16, #tpu.memory_space<vmem>>, vector<1x16x128xbf16>
      %101 = vector.shape_cast %100 : vector<1x16x128xbf16> to vector<16x128xbf16>
      %102 = vector.shape_cast %98 : vector<16x128xbf16> to vector<1x16x128xbf16>
      tpu.vector_store %arg7[%99, %c0_36, %c0_37], %102 {strides = array<i32>} : memref<8x16x128xbf16, #tpu.memory_space<vmem>>, vector<1x16x128xbf16>,
      %cst_38 = arith.constant dense<0.000000e+00> : vector<16x512xf32>
      %103 = tpu.matmul %98, %16, %cst_38 {dimension_numbers = #tpu.dot_dimension_numbers<[1], [0], [0], [1], [0, 0, 1, 1], [], []>} : vector<16x128xbf16>, vector<128x512xbf16>, vector<16x512xf32> -> vector<16x512xf32>
      %104 = vector.broadcast %18 : vector<1x512xf32> to vector<16x512xf32>
      %105 = arith.addf %103, %104 : vector<16x512xf32>
      %106 = arith.truncf %105 : vector<16x512xf32> to vector<16x512xbf16>
      %107 = arith.index_cast %c1_i32_29 : i32 to index
      %c0_39 = arith.constant 0 : index
      %c0_40 = arith.constant 0 : index
      %108 = vector.load %arg10[%107, %c0_39, %c0_40] : memref<8x16x512xbf16, #tpu.memory_space<vmem>>, vector<1x16x512xbf16>
      %109 = vector.shape_cast %108 : vector<1x16x512xbf16> to vector<16x512xbf16>
      %110 = vector.shape_cast %106 : vector<16x512xbf16> to vector<1x16x512xbf16>
      tpu.vector_store %arg10[%107, %c0_39, %c0_40], %110 {strides = array<i32>} : memref<8x16x512xbf16, #tpu.memory_space<vmem>>, vector<1x16x512xbf16>,
      %c2_i32 = arith.constant 2 : i32
      %111 = arith.index_cast %c2_i32 : i32 to index
      %c0_41 = arith.constant 0 : index
      %c0_42 = arith.constant 0 : index
      %112 = vector.load %arg10[%111, %c0_41, %c0_42] : memref<8x16x512xbf16, #tpu.memory_space<vmem>>, vector<1x16x512xbf16>
      %113 = vector.shape_cast %112 : vector<1x16x512xbf16> to vector<16x512xbf16>
      %114 = arith.extf %113 : vector<16x512xbf16> to vector<16x512xf32>
      %115 = arith.truncf %97 : vector<16x128xf32> to vector<16x128xbf16>
      %cst_43 = arith.constant dense<0.000000e+00> : vector<16x512xf32>
      %116 = tpu.matmul %115, %14, %cst_43 {dimension_numbers = #tpu.dot_dimension_numbers<[1], [0], [0], [1], [0, 0, 1, 1], [], []>} : vector<16x128xbf16>, vector<128x512xbf16>, vector<16x512xf32> -> vector<16x512xf32>
      %117 = arith.addf %114, %116 : vector<16x512xf32>
      %118 = vector.extract_strided_slice %117 {offsets = [0, 0], sizes = [16, 128], strides = [1, 1]} : vector<16x512xf32> to vector<16x128xf32>
      %119 = arith.negf %118 : vector<16x128xf32>
      %120 = math.exp %119 : vector<16x128xf32>
      %cst_44 = arith.constant 1.000000e+00 : f32
      %121 = vector.broadcast %cst_44 : f32 to vector<16x128xf32>
      %122 = arith.addf %121, %120 : vector<16x128xf32>
      %123 = arith.divf %121, %122 : vector<16x128xf32>
      %124 = vector.extract_strided_slice %117 {offsets = [0, 128], sizes = [16, 128], strides = [1, 1]} : vector<16x512xf32> to vector<16x128xf32>
      %125 = arith.negf %124 : vector<16x128xf32>
      %126 = math.exp %125 : vector<16x128xf32>
      %cst_45 = arith.constant 1.000000e+00 : f32
      %127 = vector.broadcast %cst_45 : f32 to vector<16x128xf32>
      %128 = arith.addf %127, %126 : vector<16x128xf32>
      %129 = arith.divf %127, %128 : vector<16x128xf32>
      %130 = vector.extract_strided_slice %117 {offsets = [0, 256], sizes = [16, 128], strides = [1, 1]} : vector<16x512xf32> to vector<16x128xf32>
      %131 = math.tanh %130 : vector<16x128xf32>
      %132 = vector.extract_strided_slice %117 {offsets = [0, 384], sizes = [16, 128], strides = [1, 1]} : vector<16x512xf32> to vector<16x128xf32>
      %133 = arith.negf %132 : vector<16x128xf32>
      %134 = math.exp %133 : vector<16x128xf32>
      %cst_46 = arith.constant 1.000000e+00 : f32
      %135 = vector.broadcast %cst_46 : f32 to vector<16x128xf32>
      %136 = arith.addf %135, %134 : vector<16x128xf32>
      %137 = arith.divf %135, %136 : vector<16x128xf32>
      %138 = arith.mulf %129, %95 : vector<16x128xf32>
      %139 = arith.mulf %123, %131 : vector<16x128xf32>
      %140 = arith.addf %138, %139 : vector<16x128xf32>
      %141 = math.tanh %140 : vector<16x128xf32>
      %142 = arith.mulf %137, %141 : vector<16x128xf32>
      %143 = arith.truncf %142 : vector<16x128xf32> to vector<16x128xbf16>
      %144 = arith.index_cast %c2_i32 : i32 to index
      %c0_47 = arith.constant 0 : index
      %c0_48 = arith.constant 0 : index
      %145 = vector.load %arg7[%144, %c0_47, %c0_48] : memref<8x16x128xbf16, #tpu.memory_space<vmem>>, vector<1x16x128xbf16>
      %146 = vector.shape_cast %145 : vector<1x16x128xbf16> to vector<16x128xbf16>
      %147 = vector.shape_cast %143 : vector<16x128xbf16> to vector<1x16x128xbf16>
      tpu.vector_store %arg7[%144, %c0_47, %c0_48], %147 {strides = array<i32>} : memref<8x16x128xbf16, #tpu.memory_space<vmem>>, vector<1x16x128xbf16>,
      %cst_49 = arith.constant dense<0.000000e+00> : vector<16x512xf32>
      %148 = tpu.matmul %143, %16, %cst_49 {dimension_numbers = #tpu.dot_dimension_numbers<[1], [0], [0], [1], [0, 0, 1, 1], [], []>} : vector<16x128xbf16>, vector<128x512xbf16>, vector<16x512xf32> -> vector<16x512xf32>
      %149 = vector.broadcast %18 : vector<1x512xf32> to vector<16x512xf32>
      %150 = arith.addf %148, %149 : vector<16x512xf32>
      %151 = arith.truncf %150 : vector<16x512xf32> to vector<16x512xbf16>
      %152 = arith.index_cast %c2_i32 : i32 to index
      %c0_50 = arith.constant 0 : index
      %c0_51 = arith.constant 0 : index
      %153 = vector.load %arg10[%152, %c0_50, %c0_51] : memref<8x16x512xbf16, #tpu.memory_space<vmem>>, vector<1x16x512xbf16>
      %154 = vector.shape_cast %153 : vector<1x16x512xbf16> to vector<16x512xbf16>
      %155 = vector.shape_cast %151 : vector<16x512xbf16> to vector<1x16x512xbf16>
      tpu.vector_store %arg10[%152, %c0_50, %c0_51], %155 {strides = array<i32>} : memref<8x16x512xbf16, #tpu.memory_space<vmem>>, vector<1x16x512xbf16>,
      %c3_i32_52 = arith.constant 3 : i32
      %156 = arith.index_cast %c3_i32_52 : i32 to index
      %c0_53 = arith.constant 0 : index
      %c0_54 = arith.constant 0 : index
      %157 = vector.load %arg10[%156, %c0_53, %c0_54] : memref<8x16x512xbf16, #tpu.memory_space<vmem>>, vector<1x16x512xbf16>
      %158 = vector.shape_cast %157 : vector<1x16x512xbf16> to vector<16x512xbf16>
      %159 = arith.extf %158 : vector<16x512xbf16> to vector<16x512xf32>
      %160 = arith.truncf %142 : vector<16x128xf32> to vector<16x128xbf16>
      %cst_55 = arith.constant dense<0.000000e+00> : vector<16x512xf32>
      %161 = tpu.matmul %160, %14, %cst_55 {dimension_numbers = #tpu.dot_dimension_numbers<[1], [0], [0], [1], [0, 0, 1, 1], [], []>} : vector<16x128xbf16>, vector<128x512xbf16>, vector<16x512xf32> -> vector<16x512xf32>
      %162 = arith.addf %159, %161 : vector<16x512xf32>
      %163 = vector.extract_strided_slice %162 {offsets = [0, 0], sizes = [16, 128], strides = [1, 1]} : vector<16x512xf32> to vector<16x128xf32>
      %164 = arith.negf %163 : vector<16x128xf32>
      %165 = math.exp %164 : vector<16x128xf32>
      %cst_56 = arith.constant 1.000000e+00 : f32
      %166 = vector.broadcast %cst_56 : f32 to vector<16x128xf32>
      %167 = arith.addf %166, %165 : vector<16x128xf32>
      %168 = arith.divf %166, %167 : vector<16x128xf32>
      %169 = vector.extract_strided_slice %162 {offsets = [0, 128], sizes = [16, 128], strides = [1, 1]} : vector<16x512xf32> to vector<16x128xf32>
      %170 = arith.negf %169 : vector<16x128xf32>
      %171 = math.exp %170 : vector<16x128xf32>
      %cst_57 = arith.constant 1.000000e+00 : f32
      %172 = vector.broadcast %cst_57 : f32 to vector<16x128xf32>
      %173 = arith.addf %172, %171 : vector<16x128xf32>
      %174 = arith.divf %172, %173 : vector<16x128xf32>
      %175 = vector.extract_strided_slice %162 {offsets = [0, 256], sizes = [16, 128], strides = [1, 1]} : vector<16x512xf32> to vector<16x128xf32>
      %176 = math.tanh %175 : vector<16x128xf32>
      %177 = vector.extract_strided_slice %162 {offsets = [0, 384], sizes = [16, 128], strides = [1, 1]} : vector<16x512xf32> to vector<16x128xf32>
      %178 = arith.negf %177 : vector<16x128xf32>
      %179 = math.exp %178 : vector<16x128xf32>
      %cst_58 = arith.constant 1.000000e+00 : f32
      %180 = vector.broadcast %cst_58 : f32 to vector<16x128xf32>
      %181 = arith.addf %180, %179 : vector<16x128xf32>
      %182 = arith.divf %180, %181 : vector<16x128xf32>
      %183 = arith.mulf %174, %140 : vector<16x128xf32>
      %184 = arith.mulf %168, %176 : vector<16x128xf32>
      %185 = arith.addf %183, %184 : vector<16x128xf32>
      %186 = math.tanh %185 : vector<16x128xf32>
      %187 = arith.mulf %182, %186 : vector<16x128xf32>
      %188 = arith.truncf %187 : vector<16x128xf32> to vector<16x128xbf16>
      %189 = arith.index_cast %c3_i32_52 : i32 to index
      %c0_59 = arith.constant 0 : index
      %c0_60 = arith.constant 0 : index
      %190 = vector.load %arg7[%189, %c0_59, %c0_60] : memref<8x16x128xbf16, #tpu.memory_space<vmem>>, vector<1x16x128xbf16>
      %191 = vector.shape_cast %190 : vector<1x16x128xbf16> to vector<16x128xbf16>
      %192 = vector.shape_cast %188 : vector<16x128xbf16> to vector<1x16x128xbf16>
      tpu.vector_store %arg7[%189, %c0_59, %c0_60], %192 {strides = array<i32>} : memref<8x16x128xbf16, #tpu.memory_space<vmem>>, vector<1x16x128xbf16>,
      %cst_61 = arith.constant dense<0.000000e+00> : vector<16x512xf32>
      %193 = tpu.matmul %188, %16, %cst_61 {dimension_numbers = #tpu.dot_dimension_numbers<[1], [0], [0], [1], [0, 0, 1, 1], [], []>} : vector<16x128xbf16>, vector<128x512xbf16>, vector<16x512xf32> -> vector<16x512xf32>
      %194 = vector.broadcast %18 : vector<1x512xf32> to vector<16x512xf32>
      %195 = arith.addf %193, %194 : vector<16x512xf32>
      %196 = arith.truncf %195 : vector<16x512xf32> to vector<16x512xbf16>
      %197 = arith.index_cast %c3_i32_52 : i32 to index
      %c0_62 = arith.constant 0 : index
      %c0_63 = arith.constant 0 : index
      %198 = vector.load %arg10[%197, %c0_62, %c0_63] : memref<8x16x512xbf16, #tpu.memory_space<vmem>>, vector<1x16x512xbf16>
      %199 = vector.shape_cast %198 : vector<1x16x512xbf16> to vector<16x512xbf16>
      %200 = vector.shape_cast %196 : vector<16x512xbf16> to vector<1x16x512xbf16>
      tpu.vector_store %arg10[%197, %c0_62, %c0_63], %200 {strides = array<i32>} : memref<8x16x512xbf16, #tpu.memory_space<vmem>>, vector<1x16x512xbf16>,
      %c4_i32 = arith.constant 4 : i32
      %201 = arith.index_cast %c4_i32 : i32 to index
      %c0_64 = arith.constant 0 : index
      %c0_65 = arith.constant 0 : index
      %202 = vector.load %arg10[%201, %c0_64, %c0_65] : memref<8x16x512xbf16, #tpu.memory_space<vmem>>, vector<1x16x512xbf16>
      %203 = vector.shape_cast %202 : vector<1x16x512xbf16> to vector<16x512xbf16>
      %204 = arith.extf %203 : vector<16x512xbf16> to vector<16x512xf32>
      %205 = arith.truncf %187 : vector<16x128xf32> to vector<16x128xbf16>
      %cst_66 = arith.constant dense<0.000000e+00> : vector<16x512xf32>
      %206 = tpu.matmul %205, %14, %cst_66 {dimension_numbers = #tpu.dot_dimension_numbers<[1], [0], [0], [1], [0, 0, 1, 1], [], []>} : vector<16x128xbf16>, vector<128x512xbf16>, vector<16x512xf32> -> vector<16x512xf32>
      %207 = arith.addf %204, %206 : vector<16x512xf32>
      %208 = vector.extract_strided_slice %207 {offsets = [0, 0], sizes = [16, 128], strides = [1, 1]} : vector<16x512xf32> to vector<16x128xf32>
      %209 = arith.negf %208 : vector<16x128xf32>
      %210 = math.exp %209 : vector<16x128xf32>
      %cst_67 = arith.constant 1.000000e+00 : f32
      %211 = vector.broadcast %cst_67 : f32 to vector<16x128xf32>
      %212 = arith.addf %211, %210 : vector<16x128xf32>
      %213 = arith.divf %211, %212 : vector<16x128xf32>
      %214 = vector.extract_strided_slice %207 {offsets = [0, 128], sizes = [16, 128], strides = [1, 1]} : vector<16x512xf32> to vector<16x128xf32>
      %215 = arith.negf %214 : vector<16x128xf32>
      %216 = math.exp %215 : vector<16x128xf32>
      %cst_68 = arith.constant 1.000000e+00 : f32
      %217 = vector.broadcast %cst_68 : f32 to vector<16x128xf32>
      %218 = arith.addf %217, %216 : vector<16x128xf32>
      %219 = arith.divf %217, %218 : vector<16x128xf32>
      %220 = vector.extract_strided_slice %207 {offsets = [0, 256], sizes = [16, 128], strides = [1, 1]} : vector<16x512xf32> to vector<16x128xf32>
      %221 = math.tanh %220 : vector<16x128xf32>
      %222 = vector.extract_strided_slice %207 {offsets = [0, 384], sizes = [16, 128], strides = [1, 1]} : vector<16x512xf32> to vector<16x128xf32>
      %223 = arith.negf %222 : vector<16x128xf32>
      %224 = math.exp %223 : vector<16x128xf32>
      %cst_69 = arith.constant 1.000000e+00 : f32
      %225 = vector.broadcast %cst_69 : f32 to vector<16x128xf32>
      %226 = arith.addf %225, %224 : vector<16x128xf32>
      %227 = arith.divf %225, %226 : vector<16x128xf32>
      %228 = arith.mulf %219, %185 : vector<16x128xf32>
      %229 = arith.mulf %213, %221 : vector<16x128xf32>
      %230 = arith.addf %228, %229 : vector<16x128xf32>
      %231 = math.tanh %230 : vector<16x128xf32>
      %232 = arith.mulf %227, %231 : vector<16x128xf32>
      %233 = arith.truncf %232 : vector<16x128xf32> to vector<16x128xbf16>
      %234 = arith.index_cast %c4_i32 : i32 to index
      %c0_70 = arith.constant 0 : index
      %c0_71 = arith.constant 0 : index
      %235 = vector.load %arg7[%234, %c0_70, %c0_71] : memref<8x16x128xbf16, #tpu.memory_space<vmem>>, vector<1x16x128xbf16>
      %236 = vector.shape_cast %235 : vector<1x16x128xbf16> to vector<16x128xbf16>
      %237 = vector.shape_cast %233 : vector<16x128xbf16> to vector<1x16x128xbf16>
      tpu.vector_store %arg7[%234, %c0_70, %c0_71], %237 {strides = array<i32>} : memref<8x16x128xbf16, #tpu.memory_space<vmem>>, vector<1x16x128xbf16>,
      %cst_72 = arith.constant dense<0.000000e+00> : vector<16x512xf32>
      %238 = tpu.matmul %233, %16, %cst_72 {dimension_numbers = #tpu.dot_dimension_numbers<[1], [0], [0], [1], [0, 0, 1, 1], [], []>} : vector<16x128xbf16>, vector<128x512xbf16>, vector<16x512xf32> -> vector<16x512xf32>
      %239 = vector.broadcast %18 : vector<1x512xf32> to vector<16x512xf32>
      %240 = arith.addf %238, %239 : vector<16x512xf32>
      %241 = arith.truncf %240 : vector<16x512xf32> to vector<16x512xbf16>
      %242 = arith.index_cast %c4_i32 : i32 to index
      %c0_73 = arith.constant 0 : index
      %c0_74 = arith.constant 0 : index
      %243 = vector.load %arg10[%242, %c0_73, %c0_74] : memref<8x16x512xbf16, #tpu.memory_space<vmem>>, vector<1x16x512xbf16>
      %244 = vector.shape_cast %243 : vector<1x16x512xbf16> to vector<16x512xbf16>
      %245 = vector.shape_cast %241 : vector<16x512xbf16> to vector<1x16x512xbf16>
      tpu.vector_store %arg10[%242, %c0_73, %c0_74], %245 {strides = array<i32>} : memref<8x16x512xbf16, #tpu.memory_space<vmem>>, vector<1x16x512xbf16>,
      %c5_i32 = arith.constant 5 : i32
      %246 = arith.index_cast %c5_i32 : i32 to index
      %c0_75 = arith.constant 0 : index
      %c0_76 = arith.constant 0 : index
      %247 = vector.load %arg10[%246, %c0_75, %c0_76] : memref<8x16x512xbf16, #tpu.memory_space<vmem>>, vector<1x16x512xbf16>
      %248 = vector.shape_cast %247 : vector<1x16x512xbf16> to vector<16x512xbf16>
      %249 = arith.extf %248 : vector<16x512xbf16> to vector<16x512xf32>
      %250 = arith.truncf %232 : vector<16x128xf32> to vector<16x128xbf16>
      %cst_77 = arith.constant dense<0.000000e+00> : vector<16x512xf32>
      %251 = tpu.matmul %250, %14, %cst_77 {dimension_numbers = #tpu.dot_dimension_numbers<[1], [0], [0], [1], [0, 0, 1, 1], [], []>} : vector<16x128xbf16>, vector<128x512xbf16>, vector<16x512xf32> -> vector<16x512xf32>
      %252 = arith.addf %249, %251 : vector<16x512xf32>
      %253 = vector.extract_strided_slice %252 {offsets = [0, 0], sizes = [16, 128], strides = [1, 1]} : vector<16x512xf32> to vector<16x128xf32>
      %254 = arith.negf %253 : vector<16x128xf32>
      %255 = math.exp %254 : vector<16x128xf32>
      %cst_78 = arith.constant 1.000000e+00 : f32
      %256 = vector.broadcast %cst_78 : f32 to vector<16x128xf32>
      %257 = arith.addf %256, %255 : vector<16x128xf32>
      %258 = arith.divf %256, %257 : vector<16x128xf32>
      %259 = vector.extract_strided_slice %252 {offsets = [0, 128], sizes = [16, 128], strides = [1, 1]} : vector<16x512xf32> to vector<16x128xf32>
      %260 = arith.negf %259 : vector<16x128xf32>
      %261 = math.exp %260 : vector<16x128xf32>
      %cst_79 = arith.constant 1.000000e+00 : f32
      %262 = vector.broadcast %cst_79 : f32 to vector<16x128xf32>
      %263 = arith.addf %262, %261 : vector<16x128xf32>
      %264 = arith.divf %262, %263 : vector<16x128xf32>
      %265 = vector.extract_strided_slice %252 {offsets = [0, 256], sizes = [16, 128], strides = [1, 1]} : vector<16x512xf32> to vector<16x128xf32>
      %266 = math.tanh %265 : vector<16x128xf32>
      %267 = vector.extract_strided_slice %252 {offsets = [0, 384], sizes = [16, 128], strides = [1, 1]} : vector<16x512xf32> to vector<16x128xf32>
      %268 = arith.negf %267 : vector<16x128xf32>
      %269 = math.exp %268 : vector<16x128xf32>
      %cst_80 = arith.constant 1.000000e+00 : f32
      %270 = vector.broadcast %cst_80 : f32 to vector<16x128xf32>
      %271 = arith.addf %270, %269 : vector<16x128xf32>
      %272 = arith.divf %270, %271 : vector<16x128xf32>
      %273 = arith.mulf %264, %230 : vector<16x128xf32>
      %274 = arith.mulf %258, %266 : vector<16x128xf32>
      %275 = arith.addf %273, %274 : vector<16x128xf32>
      %276 = math.tanh %275 : vector<16x128xf32>
      %277 = arith.mulf %272, %276 : vector<16x128xf32>
      %278 = arith.truncf %277 : vector<16x128xf32> to vector<16x128xbf16>
      %279 = arith.index_cast %c5_i32 : i32 to index
      %c0_81 = arith.constant 0 : index
      %c0_82 = arith.constant 0 : index
      %280 = vector.load %arg7[%279, %c0_81, %c0_82] : memref<8x16x128xbf16, #tpu.memory_space<vmem>>, vector<1x16x128xbf16>
      %281 = vector.shape_cast %280 : vector<1x16x128xbf16> to vector<16x128xbf16>
      %282 = vector.shape_cast %278 : vector<16x128xbf16> to vector<1x16x128xbf16>
      tpu.vector_store %arg7[%279, %c0_81, %c0_82], %282 {strides = array<i32>} : memref<8x16x128xbf16, #tpu.memory_space<vmem>>, vector<1x16x128xbf16>,
      %cst_83 = arith.constant dense<0.000000e+00> : vector<16x512xf32>
      %283 = tpu.matmul %278, %16, %cst_83 {dimension_numbers = #tpu.dot_dimension_numbers<[1], [0], [0], [1], [0, 0, 1, 1], [], []>} : vector<16x128xbf16>, vector<128x512xbf16>, vector<16x512xf32> -> vector<16x512xf32>
      %284 = vector.broadcast %18 : vector<1x512xf32> to vector<16x512xf32>
      %285 = arith.addf %283, %284 : vector<16x512xf32>
      %286 = arith.truncf %285 : vector<16x512xf32> to vector<16x512xbf16>
      %287 = arith.index_cast %c5_i32 : i32 to index
      %c0_84 = arith.constant 0 : index
      %c0_85 = arith.constant 0 : index
      %288 = vector.load %arg10[%287, %c0_84, %c0_85] : memref<8x16x512xbf16, #tpu.memory_space<vmem>>, vector<1x16x512xbf16>
      %289 = vector.shape_cast %288 : vector<1x16x512xbf16> to vector<16x512xbf16>
      %290 = vector.shape_cast %286 : vector<16x512xbf16> to vector<1x16x512xbf16>
      tpu.vector_store %arg10[%287, %c0_84, %c0_85], %290 {strides = array<i32>} : memref<8x16x512xbf16, #tpu.memory_space<vmem>>, vector<1x16x512xbf16>,
      %c6_i32 = arith.constant 6 : i32
      %291 = arith.index_cast %c6_i32 : i32 to index
      %c0_86 = arith.constant 0 : index
      %c0_87 = arith.constant 0 : index
      %292 = vector.load %arg10[%291, %c0_86, %c0_87] : memref<8x16x512xbf16, #tpu.memory_space<vmem>>, vector<1x16x512xbf16>
      %293 = vector.shape_cast %292 : vector<1x16x512xbf16> to vector<16x512xbf16>
      %294 = arith.extf %293 : vector<16x512xbf16> to vector<16x512xf32>
      %295 = arith.truncf %277 : vector<16x128xf32> to vector<16x128xbf16>
      %cst_88 = arith.constant dense<0.000000e+00> : vector<16x512xf32>
      %296 = tpu.matmul %295, %14, %cst_88 {dimension_numbers = #tpu.dot_dimension_numbers<[1], [0], [0], [1], [0, 0, 1, 1], [], []>} : vector<16x128xbf16>, vector<128x512xbf16>, vector<16x512xf32> -> vector<16x512xf32>
      %297 = arith.addf %294, %296 : vector<16x512xf32>
      %298 = vector.extract_strided_slice %297 {offsets = [0, 0], sizes = [16, 128], strides = [1, 1]} : vector<16x512xf32> to vector<16x128xf32>
      %299 = arith.negf %298 : vector<16x128xf32>
      %300 = math.exp %299 : vector<16x128xf32>
      %cst_89 = arith.constant 1.000000e+00 : f32
      %301 = vector.broadcast %cst_89 : f32 to vector<16x128xf32>
      %302 = arith.addf %301, %300 : vector<16x128xf32>
      %303 = arith.divf %301, %302 : vector<16x128xf32>
      %304 = vector.extract_strided_slice %297 {offsets = [0, 128], sizes = [16, 128], strides = [1, 1]} : vector<16x512xf32> to vector<16x128xf32>
      %305 = arith.negf %304 : vector<16x128xf32>
      %306 = math.exp %305 : vector<16x128xf32>
      %cst_90 = arith.constant 1.000000e+00 : f32
      %307 = vector.broadcast %cst_90 : f32 to vector<16x128xf32>
      %308 = arith.addf %307, %306 : vector<16x128xf32>
      %309 = arith.divf %307, %308 : vector<16x128xf32>
      %310 = vector.extract_strided_slice %297 {offsets = [0, 256], sizes = [16, 128], strides = [1, 1]} : vector<16x512xf32> to vector<16x128xf32>
      %311 = math.tanh %310 : vector<16x128xf32>
      %312 = vector.extract_strided_slice %297 {offsets = [0, 384], sizes = [16, 128], strides = [1, 1]} : vector<16x512xf32> to vector<16x128xf32>
      %313 = arith.negf %312 : vector<16x128xf32>
      %314 = math.exp %313 : vector<16x128xf32>
      %cst_91 = arith.constant 1.000000e+00 : f32
      %315 = vector.broadcast %cst_91 : f32 to vector<16x128xf32>
      %316 = arith.addf %315, %314 : vector<16x128xf32>
      %317 = arith.divf %315, %316 : vector<16x128xf32>
      %318 = arith.mulf %309, %275 : vector<16x128xf32>
      %319 = arith.mulf %303, %311 : vector<16x128xf32>
      %320 = arith.addf %318, %319 : vector<16x128xf32>
      %321 = math.tanh %320 : vector<16x128xf32>
      %322 = arith.mulf %317, %321 : vector<16x128xf32>
      %323 = arith.truncf %322 : vector<16x128xf32> to vector<16x128xbf16>
      %324 = arith.index_cast %c6_i32 : i32 to index
      %c0_92 = arith.constant 0 : index
      %c0_93 = arith.constant 0 : index
      %325 = vector.load %arg7[%324, %c0_92, %c0_93] : memref<8x16x128xbf16, #tpu.memory_space<vmem>>, vector<1x16x128xbf16>
      %326 = vector.shape_cast %325 : vector<1x16x128xbf16> to vector<16x128xbf16>
      %327 = vector.shape_cast %323 : vector<16x128xbf16> to vector<1x16x128xbf16>
      tpu.vector_store %arg7[%324, %c0_92, %c0_93], %327 {strides = array<i32>} : memref<8x16x128xbf16, #tpu.memory_space<vmem>>, vector<1x16x128xbf16>,
      %cst_94 = arith.constant dense<0.000000e+00> : vector<16x512xf32>
      %328 = tpu.matmul %323, %16, %cst_94 {dimension_numbers = #tpu.dot_dimension_numbers<[1], [0], [0], [1], [0, 0, 1, 1], [], []>} : vector<16x128xbf16>, vector<128x512xbf16>, vector<16x512xf32> -> vector<16x512xf32>
      %329 = vector.broadcast %18 : vector<1x512xf32> to vector<16x512xf32>
      %330 = arith.addf %328, %329 : vector<16x512xf32>
      %331 = arith.truncf %330 : vector<16x512xf32> to vector<16x512xbf16>
      %332 = arith.index_cast %c6_i32 : i32 to index
      %c0_95 = arith.constant 0 : index
      %c0_96 = arith.constant 0 : index
      %333 = vector.load %arg10[%332, %c0_95, %c0_96] : memref<8x16x512xbf16, #tpu.memory_space<vmem>>, vector<1x16x512xbf16>
      %334 = vector.shape_cast %333 : vector<1x16x512xbf16> to vector<16x512xbf16>
      %335 = vector.shape_cast %331 : vector<16x512xbf16> to vector<1x16x512xbf16>
      tpu.vector_store %arg10[%332, %c0_95, %c0_96], %335 {strides = array<i32>} : memref<8x16x512xbf16, #tpu.memory_space<vmem>>, vector<1x16x512xbf16>,
      %c7_i32 = arith.constant 7 : i32
      %336 = arith.index_cast %c7_i32 : i32 to index
      %c0_97 = arith.constant 0 : index
      %c0_98 = arith.constant 0 : index
      %337 = vector.load %arg10[%336, %c0_97, %c0_98] : memref<8x16x512xbf16, #tpu.memory_space<vmem>>, vector<1x16x512xbf16>
      %338 = vector.shape_cast %337 : vector<1x16x512xbf16> to vector<16x512xbf16>
      %339 = arith.extf %338 : vector<16x512xbf16> to vector<16x512xf32>
      %340 = arith.truncf %322 : vector<16x128xf32> to vector<16x128xbf16>
      %cst_99 = arith.constant dense<0.000000e+00> : vector<16x512xf32>
      %341 = tpu.matmul %340, %14, %cst_99 {dimension_numbers = #tpu.dot_dimension_numbers<[1], [0], [0], [1], [0, 0, 1, 1], [], []>} : vector<16x128xbf16>, vector<128x512xbf16>, vector<16x512xf32> -> vector<16x512xf32>
      %342 = arith.addf %339, %341 : vector<16x512xf32>
      %343 = vector.extract_strided_slice %342 {offsets = [0, 0], sizes = [16, 128], strides = [1, 1]} : vector<16x512xf32> to vector<16x128xf32>
      %344 = arith.negf %343 : vector<16x128xf32>
      %345 = math.exp %344 : vector<16x128xf32>
      %cst_100 = arith.constant 1.000000e+00 : f32
      %346 = vector.broadcast %cst_100 : f32 to vector<16x128xf32>
      %347 = arith.addf %346, %345 : vector<16x128xf32>
      %348 = arith.divf %346, %347 : vector<16x128xf32>
      %349 = vector.extract_strided_slice %342 {offsets = [0, 128], sizes = [16, 128], strides = [1, 1]} : vector<16x512xf32> to vector<16x128xf32>
      %350 = arith.negf %349 : vector<16x128xf32>
      %351 = math.exp %350 : vector<16x128xf32>
      %cst_101 = arith.constant 1.000000e+00 : f32
      %352 = vector.broadcast %cst_101 : f32 to vector<16x128xf32>
      %353 = arith.addf %352, %351 : vector<16x128xf32>
      %354 = arith.divf %352, %353 : vector<16x128xf32>
      %355 = vector.extract_strided_slice %342 {offsets = [0, 256], sizes = [16, 128], strides = [1, 1]} : vector<16x512xf32> to vector<16x128xf32>
      %356 = math.tanh %355 : vector<16x128xf32>
      %357 = vector.extract_strided_slice %342 {offsets = [0, 384], sizes = [16, 128], strides = [1, 1]} : vector<16x512xf32> to vector<16x128xf32>
      %358 = arith.negf %357 : vector<16x128xf32>
      %359 = math.exp %358 : vector<16x128xf32>
      %cst_102 = arith.constant 1.000000e+00 : f32
      %360 = vector.broadcast %cst_102 : f32 to vector<16x128xf32>
      %361 = arith.addf %360, %359 : vector<16x128xf32>
      %362 = arith.divf %360, %361 : vector<16x128xf32>
      %363 = arith.mulf %354, %320 : vector<16x128xf32>
      %364 = arith.mulf %348, %356 : vector<16x128xf32>
      %365 = arith.addf %363, %364 : vector<16x128xf32>
      %366 = math.tanh %365 : vector<16x128xf32>
      %367 = arith.mulf %362, %366 : vector<16x128xf32>
      %368 = arith.truncf %367 : vector<16x128xf32> to vector<16x128xbf16>
      %369 = arith.index_cast %c7_i32 : i32 to index
      %c0_103 = arith.constant 0 : index
      %c0_104 = arith.constant 0 : index
      %370 = vector.load %arg7[%369, %c0_103, %c0_104] : memref<8x16x128xbf16, #tpu.memory_space<vmem>>, vector<1x16x128xbf16>
      %371 = vector.shape_cast %370 : vector<1x16x128xbf16> to vector<16x128xbf16>
      %372 = vector.shape_cast %368 : vector<16x128xbf16> to vector<1x16x128xbf16>
      tpu.vector_store %arg7[%369, %c0_103, %c0_104], %372 {strides = array<i32>} : memref<8x16x128xbf16, #tpu.memory_space<vmem>>, vector<1x16x128xbf16>,
      %cst_105 = arith.constant dense<0.000000e+00> : vector<16x512xf32>
      %373 = tpu.matmul %368, %16, %cst_105 {dimension_numbers = #tpu.dot_dimension_numbers<[1], [0], [0], [1], [0, 0, 1, 1], [], []>} : vector<16x128xbf16>, vector<128x512xbf16>, vector<16x512xf32> -> vector<16x512xf32>
      %374 = vector.broadcast %18 : vector<1x512xf32> to vector<16x512xf32>
      %375 = arith.addf %373, %374 : vector<16x512xf32>
      %376 = arith.truncf %375 : vector<16x512xf32> to vector<16x512xbf16>
      %377 = arith.index_cast %c7_i32 : i32 to index
      %c0_106 = arith.constant 0 : index
      %c0_107 = arith.constant 0 : index
      %378 = vector.load %arg10[%377, %c0_106, %c0_107] : memref<8x16x512xbf16, #tpu.memory_space<vmem>>, vector<1x16x512xbf16>
      %379 = vector.shape_cast %378 : vector<1x16x512xbf16> to vector<16x512xbf16>
      %380 = vector.shape_cast %376 : vector<16x512xbf16> to vector<1x16x512xbf16>
      tpu.vector_store %arg10[%377, %c0_106, %c0_107], %380 {strides = array<i32>} : memref<8x16x512xbf16, #tpu.memory_space<vmem>>, vector<1x16x512xbf16>,
      %c8_i32 = arith.constant 8 : i32
      %381 = arith.index_cast %6 : i32 to index
      %c0_108 = arith.constant 0 : index
      %c0_109 = arith.constant 0 : index
      %382 = vector.load %arg8[%381, %c0_108, %c0_109] : memref<9x16x128xf32, #tpu.memory_space<vmem>>, vector<1x16x128xf32>
      %383 = vector.shape_cast %382 : vector<1x16x128xf32> to vector<16x128xf32>
      %384 = vector.shape_cast %367 : vector<16x128xf32> to vector<1x16x128xf32>
      tpu.vector_store %arg8[%381, %c0_108, %c0_109], %384 {strides = array<i32>} : memref<9x16x128xf32, #tpu.memory_space<vmem>>, vector<1x16x128xf32>,
      %385 = arith.index_cast %6 : i32 to index
      %c0_110 = arith.constant 0 : index
      %c0_111 = arith.constant 0 : index
      %386 = vector.load %arg9[%385, %c0_110, %c0_111] : memref<9x16x128xf32, #tpu.memory_space<vmem>>, vector<1x16x128xf32>
      %387 = vector.shape_cast %386 : vector<1x16x128xf32> to vector<16x128xf32>
      %388 = vector.shape_cast %365 : vector<16x128xf32> to vector<1x16x128xf32>
      tpu.vector_store %arg9[%385, %c0_110, %c0_111], %388 {strides = array<i32>} : memref<9x16x128xf32, #tpu.memory_space<vmem>>, vector<1x16x128xf32>,
    } else {
    }
    return
  }
  func.func @transform_0(%arg0: i32) -> (i32, i32, i32) {
    %c0_i32 = arith.constant 0 : i32
    %c0_i32_0 = arith.constant 0 : i32
    %c0_i32_1 = arith.constant 0 : i32
    %c0_i32_2 = arith.constant 0 : i32
    return %c0_i32, %c0_i32_0, %c0_i32_1 : i32, i32, i32
  }
  func.func @transform_1(%arg0: i32) -> (i32, i32, i32) {
    %c0_i32 = arith.constant 0 : i32
    %c0_i32_0 = arith.constant 0 : i32
    %c0_i32_1 = arith.constant 0 : i32
    %c0_i32_2 = arith.constant 0 : i32
    return %c0_i32, %c0_i32_0, %c0_i32_1 : i32, i32, i32
  }
  func.func @transform_2(%arg0: i32) -> (i32, i32, i32) {
    %c0_i32 = arith.constant 0 : i32
    %c0_i32_0 = arith.constant 0 : i32
    %c0_i32_1 = arith.constant 0 : i32
    %c0_i32_2 = arith.constant 0 : i32
    return %c0_i32, %c0_i32_0, %c0_i32_1 : i32, i32, i32
  }
  func.func @transform_3(%arg0: i32) -> (i32, i32, i32) {
    %c8_i32 = arith.constant 8 : i32
    %0 = arith.minsi %arg0, %c8_i32 : i32
    %c0_i32 = arith.constant 0 : i32
    %c0_i32_0 = arith.constant 0 : i32
    %c0_i32_1 = arith.constant 0 : i32
    return %0, %c0_i32, %c0_i32_0 : i32, i32, i32
  }
  func.func @transform_4(%arg0: i32) -> (i32, i32, i32) {
    %c1_i32 = arith.constant 1 : i32
    %0 = arith.subi %arg0, %c1_i32 : i32
    %c0_i32 = arith.constant 0 : i32
    %1 = arith.maxsi %0, %c0_i32 : i32
    %c0_i32_0 = arith.constant 0 : i32
    %c0_i32_1 = arith.constant 0 : i32
    %c0_i32_2 = arith.constant 0 : i32
    return %1, %c0_i32_0, %c0_i32_1 : i32, i32, i32
  }
  func.func @transform_5(%arg0: i32) -> (i32, i32, i32) {
    %c8_i32 = arith.constant 8 : i32
    %0 = arith.minsi %arg0, %c8_i32 : i32
    %c0_i32 = arith.constant 0 : i32
    %c0_i32_0 = arith.constant 0 : i32
    %c0_i32_1 = arith.constant 0 : i32
    return %0, %c0_i32, %c0_i32_0 : i32, i32, i32
  }
  func.func @transform_6(%arg0: i32) -> (i32, i32, i32) {
    %c0_i32 = arith.constant 0 : i32
    %c0_i32_0 = arith.constant 0 : i32
    %c0_i32_1 = arith.constant 0 : i32
    %c0_i32_2 = arith.constant 0 : i32
    return %c0_i32, %c0_i32_0, %c0_i32_1 : i32, i32, i32
  }
  func.func @transform_7(%arg0: i32) -> (i32, i32, i32) {
    %c0_i32 = arith.constant 0 : i32
    %c0_i32_0 = arith.constant 0 : i32
    %c0_i32_1 = arith.constant 0 : i32
    %c0_i32_2 = arith.constant 0 : i32
    return %c0_i32, %c0_i32_0, %c0_i32_1 : i32, i32, i32
  }
  func.func @transform_8(%arg0: i32) -> (i32, i32, i32) {
    %c0_i32 = arith.constant 0 : i32
    %c0_i32_0 = arith.constant 0 : i32
    %c0_i32_1 = arith.constant 0 : i32
    %c0_i32_2 = arith.constant 0 : i32
    return %c0_i32, %c0_i32_0, %c0_i32_1 : i32, i32, i32
  }
}

</mosaic_0001>

<bundles_post_ra>
// kernel: writer_nn_forward.1
= control target key start
LH: loop header
LB: loop body
LE: loop exit
PB: predicated region body
PF: predicated region fallthrough
CT: control target
= control target key end

     0   :  { %s6871_s0 = inlined_call_operand.vmem [shape: bf16[8,16,128], index: 0, kind: input, shape index: {}]   ;;  %s6872_s1 = inlined_call_operand.vmem [shape: f32[3,16,128], index: 1, kind: input, shape index: {}, may-alias: {1,2}]   ;;  %s6873_s2 = inlined_call_operand.vmem [shape: f32[3,16,128], index: 2, kind: input, shape index: {}, may-alias: {1,2}]   ;;  %s6874_s3 = inlined_call_operand.hbm [shape: bf16[9,128,512], index: 3, kind: input, shape index: {}]   ;;  %s6875_s4 = inlined_call_operand.hbm [shape: bf16[9,128,512], index: 4, kind: input, shape index: {}]   ;;  %s6876_s5 = inlined_call_operand.hbm [shape: f32[9,1,512], index: 5, kind: input, shape index: {}]   ;;  %s6877_s6 = inlined_call_operand.vmem [shape: bf16[8,16,128], index: 6, kind: output, shape index: {0}]   ;;  %s6878_s7 = inlined_call_operand.vmem [shape: f32[9,16,128], index: 7, kind: output, shape index: {1}]   ;;  %s6879_s8 = inlined_call_operand.vmem [shape: f32[9,16,128], index: 8, kind: output, shape index: {2}]  }
   0x1   :  { %7033 = sst [smem:[#allocation48_spill]] %s6874_s3 }
   0x2   :  { %7034 = sst [smem:[#allocation49_spill]] %s6875_s4 }
   0x3   :  { %7035 = sst [smem:[#allocation50_spill]] %s6877_s6 }
   0x4   :  { %7036 = sst [smem:[#allocation51_spill]] %s6879_s8 }
   0x5   :  { %14 = vsyncpa [#allocation6], 0 }
   0x6   :  { %16 = vsyncpa [#allocation6 + $0x1], 0 }
   0x7   :  { %17 = vsyncpa [#allocation8], 0 }
   0x8   :  { %19 = vsyncpa [#allocation8 + $0x1], 0  ;;  %s5163_s27 = smov 0   ;;  %s5165_s28 = smov 0  }
   0x9   :  { %s5167_s29 = smov 0   ;;  %s5169_s30 = smov 0  }
   0xa   :  { %s5171_s9 = smov 0   ;;  %s5173_s10 = smov 0  }
   0xb   :  { %s5175_s11 = smov 0  }
   0xc LB: > { %7037 = sst [smem:[#allocation13_spill]] %s5093_s29  ;;  %s5195_s12 = sadd.s32 4294967295, %s5109_s11   ;;  %s5109_s11 = sphi %s5175_s11, %s7281_s11   ;;  %s5105_s10 = sphi %s5173_s10, %s7285_s10   ;;  %s5101_s9 = sphi %s5171_s9, %s7290_s9   ;;  %s5097_s30 = sphi %s5169_s30, %s7289_s30   ;;  %s5093_s29 = sphi %s5167_s29, %s7288_s29   ;;  %s5089_s28 = sphi %s5165_s28, %s7287_s28   ;;  %s5085_s27 = sphi %s5163_s27, %s7286_s27  }
   0xd   : > { %7038 = sst [smem:[#allocation14_spill]] %s5105_s10  ;;  %s5198_s13 = sadd.s32 1, %s5109_s11  }
   0xe   : > { %7039 = sst [smem:[#allocation15_spill]] %s5198_s13  ;;  %p6881_p1 = scmp.eq.s32.totalorder %s5109_s11, 0 }
   0xf   : > { %p112_p2 = scmp.ne.s32.totalorder %s5101_s9, %s5097_s30  ;;  %p113_p3 = scmp.eq.s32.totalorder %s5195_s12, 0 }
  0x10   : > { %p123_p4 = scmp.gt.s32.totalorder %s5195_s12, 0  ;;  %s3942_s14 = sadd.s32 4294967295, %s5198_s13 }
  0x11   : > { %p5208_p5 = por %p113_p3, %p112_p2  ;;  %p126_p6 = scmp.gt.s32.totalorder %s3942_s14, 0 }
  0x12   : > { %s124_s16 = scalar_select %p123_p4, %s5195_s12, 0 }
  0x13   : > { %s7040_s15 = scalar_select %p5208_p5, 1, 0 }
  0x14   : > { %s7292_s14 = smov (!%p126_p6, %s3942_s14), 0  ;;  %s131_s17 = sadd.s32 1, %s5093_s29 }
  0x15   : > { %p138_p7 = scmp.ne.s32.totalorder %s5093_s29, %s5089_s28  ;;  %s128_s18 = ssub.s32 %s124_s16, %s7292_s14 }
  0x16   : > { %p144_p8 = scmp.ne.s32.totalorder %s5089_s28, %s5085_s27  ;;  %p129_p9 = scmp.eq.s32.totalorder %s128_s18, 0 }
  0x17   : > { %p140_p10 = por %p138_p7, %p6881_p1  ;;  %p6880_p12 = scmp.lt.s32.totalorder %s5109_s11, 10 }
  0x18   : > { %p5221_p11 = por %p144_p8, %p113_p3  ;;  %s293_s21 = sand.u32 1, %s5109_s11  }
  0x19   : > { %s5226_s20 = scalar_select %p129_p9, %s5093_s29, %s131_s17  }
  0x1a   : > { %s7041_s19 = scalar_select %p5221_p11, 1, 0 }
  0x1b   : > { %7042 = sst [smem:[#allocation16_spill]] %s5226_s20  ;;  %s295_s22 = sand.u32 1, %s5093_s29  }
  0x1c   : > { %s3948_s23 = sshll.u32 %s295_s22, 8  ;;  %s4217_s24 = sshll.u32 %s124_s16, 12 }
  0x1d   : > { %s7043_s4 = sld [smem:[#allocation49_spill]]  ;;  %s297_s30 = scalar_lea.vmem [#allocation7], %s3948_s23 }
  0x1e   : > { %s307_s14 = sshll.u32 %s297_s30, 4  ;;  %p5238_p13 = pnand %p6880_p12, %p140_p10  ;;  %s5242_s14 = int_to_ptr.vmem [resolvable:$true] %s307_s14 }
  0x1f   : > { %s5246_s16 = scalar_lea.sflag [#allocation8], %s293_s21 }
  0x20   : > { %p4961_p6 = pneg %p5238_p13 }
  0x23   : > { %s5234_s27 = scalar_lea.hbm %s7043_s4, %s4217_s24  ;;  %s4964_s24 = scalar_lea.hbm %s7043_s4, 36864 }
  0x24   : > { %s4959_s17 = scalar_lea.hbm %s5234_s27, 4096  ;;  %p4965_p9 = scmp.lt.s32.totalorder %s5234_s27, %s7043_s4 }
  0x25   : > { %p4960_p4 = scmp.ne.s32.totalorder %s5234_s27, %s4959_s17  ;;  %p4966_p10 = scmp.lt.s32.totalorder %s4964_s24, %s4959_s17 }
  0x27   : > { %p4962_p7 = pnand %p4961_p6, %p4960_p4  ;;  %p4967_p12 = por %p4966_p10, %p4965_p9 }
  0x29   : > { %p4963_p8 = pneg %p4962_p7 }
  0x2b   : > { %p4968_p1 = pnand %p4967_p12, %p4963_p8 }
  0x2d   : > { %4971 = shalt.err (!%p4968_p1)
}
  0x2e   : > { %s4972_s21 = scalar_lea.vmem %s5242_s14, 4096  ;;  %s5111_s30 = smov [#allocation7]  }
  0x2f   : > { %p4973_p0 = scmp.ne.s32.totalorder %s5242_s14, %s4972_s21  ;;  %s4977_s20 = sshll.u32 %s5111_s30, 4  ;;  %s4978_s20 = int_to_ptr.vmem [resolvable:$false] %s4977_s20 }
  0x30   : > { %s4979_s22 = scalar_lea.vmem %s4978_s20, 8192  ;;  %p4980_p7 = scmp.lt.s32.totalorder %s5242_s14, %s4978_s20 }
  0x31   : > { %p4975_p2 = pnand %p4973_p0, %p4961_p6  ;;  %p4981_p3 = scmp.lt.s32.totalorder %s4979_s22, %s4972_s21 }
  0x33   : > { %p4976_p4 = pneg %p4975_p2  ;;  %p4982_p11 = por %p4981_p3, %p4980_p7 }
  0x35   : > { %p4983_p5 = pnand %p4982_p11, %p4976_p4 }
  0x37   : > { %4986 = shalt.err (!%p4983_p5)
}
  0x38   : > { %s6884_s17 = smov 256   ;;  %s6885_s20 = smov 16  }
  0x39   : > { %4358 = dma.hbm_to_vmem [thread:$0]  (!%p5238_p13), %s5234_s27, 4096, %s5242_s14, %s5246_s16, %s6884_s17, %s6884_s17, %s6885_s20  }
  0x3a   : > { %p7045_p0 = scmp.lt.s32.totalorder %s5109_s11, 11  ;;  %p7046_p1 = scmp.ge.s32.totalorder %s5109_s11, 1 }
  0x3b   : > { %p92_p11 = scmp.lt.s32.totalorder %s5109_s11, 8  ;;  %p7048_p12 = scmp.lt.s32.totalorder %s5198_s13, 8 }
  0x3c   : > { %p5274_p5 = pnand %p7046_p1, %p7045_p0  ;;  %s99_s18 = sadd.s32 1, %s5105_s10 }
  0x3d   : > { %s95_s24 = scalar_select %p7048_p12, %s5198_s13, 8 }
  0x3e   : > { %s7047_s23 = scalar_select %p5274_p5, 1, 0 }
  0x3f   : > { %s5283_s25 = scalar_select %p92_p11, %s5109_s11, 8 }
  0x40   : > { %p106_p2 = scmp.ne.s32.totalorder %s5105_s10, %s5101_s9  ;;  %s5290_s21 = sand.u32 1, %s5105_s10  }
  0x41   : > { %s96_s26 = ssub.s32 %s5283_s25, %s95_s24  ;;  %p7049_p3 = scmp.eq.s32.totalorder %s5109_s11, 0 }
  0x42   : > { %p97_p13 = scmp.eq.s32.totalorder %s96_s26, 0  ;;  %s3945_s27 = sshll.u32 %s5290_s21, 8 }
  0x43   : > { %p108_p6 = por %p7049_p3, %p106_p2  ;;  %s4216_s30 = sshll.u32 %s5283_s25, 12 }
  0x44   : > { %s5296_s14 = scalar_select %p97_p13, %s5105_s10, %s99_s18  }
  0x45   : > { %s7051_s3 = sld [smem:[#allocation48_spill]]  ;;  %s274_s24 = scalar_lea.vmem [#allocation5], %s3945_s27 }
  0x46   : > { %7050 = sst [smem:[#allocation17_spill]] %s5296_s14  ;;  %s283_s4 = sshll.u32 %s274_s24, 4  ;;  %s5304_s4 = int_to_ptr.vmem [resolvable:$true] %s283_s4 }
  0x47   : > { %p7052_p8 = scmp.lt.s32.totalorder %s5109_s11, 10  ;;  %s271_s10 = scalar_lea.sflag [#allocation6], %s5290_s21 }
  0x49   : > { %p5308_p9 = pnand %p7052_p8, %p108_p6 }
  0x4b   : > { %s5302_s20 = scalar_lea.hbm %s7051_s3, %s4216_s30  ;;  %p4989_p4 = pneg %p5308_p9 }
  0x4c   : > { %s4987_s17 = scalar_lea.hbm %s5302_s20, 4096  ;;  %s4992_s11 = scalar_lea.hbm %s7051_s3, 36864 }
  0x4d   : > { %p4988_p10 = scmp.ne.s32.totalorder %s5302_s20, %s4987_s17  ;;  %p4993_p1 = scmp.lt.s32.totalorder %s5302_s20, %s7051_s3 }
  0x4e   : > { %p4994_p11 = scmp.lt.s32.totalorder %s4992_s11, %s4987_s17 }
  0x4f   : > { %p4990_p7 = pnand %p4989_p4, %p4988_p10 }
  0x50   : > { %p4995_p12 = por %p4994_p11, %p4993_p1 }
  0x51   : > { %p4991_p0 = pneg %p4990_p7 }
  0x53   : > { %p4996_p2 = pnand %p4995_p12, %p4991_p0 }
  0x55   : > { %4999 = shalt.err (!%p4996_p2)
}
  0x56   : > { %s5000_s18 = scalar_lea.vmem %s5304_s4, 4096  ;;  %s5114_s27 = smov [#allocation5]  }
  0x57   : > { %p5001_p13 = scmp.ne.s32.totalorder %s5304_s4, %s5000_s18  ;;  %s5005_s30 = sshll.u32 %s5114_s27, 4  ;;  %s5006_s30 = int_to_ptr.vmem [resolvable:$false] %s5005_s30 }
  0x58   : > { %s5007_s14 = scalar_lea.vmem %s5006_s30, 8192  ;;  %p5008_p8 = scmp.lt.s32.totalorder %s5304_s4, %s5006_s30 }
  0x59   : > { %p5003_p3 = pnand %p5001_p13, %p4989_p4  ;;  %p5009_p10 = scmp.lt.s32.totalorder %s5007_s14, %s5000_s18 }
  0x5b   : > { %p5004_p6 = pneg %p5003_p3  ;;  %p5010_p7 = por %p5009_p10, %p5008_p8 }
  0x5d   : > { %p5011_p1 = pnand %p5010_p7, %p5004_p6 }
  0x5f   : > { %5014 = shalt.err (!%p5011_p1)
}
  0x60   : > { %s7054_s17 = smov 16   ;;  %s7055_s11 = smov 256  }
  0x61   : > { %4355 = dma.hbm_to_vmem [thread:$0]  (!%p5308_p9), %s5302_s20, 4096, %s5304_s4, %s271_s10, %s7055_s11, %s7055_s11, %s7054_s17  }
  0x62   : > { %s7056_s22 = sshll.u32 %s5283_s25, 6  ;;  %s7057_s18 = sshll.u32 %s5290_s21, 2 }
  0x63   : > { %s329_s14 = scalar_lea.hbm %s6876_s5, %s7056_s22  ;;  %s321_s30 = scalar_lea.vmem [#allocation9], %s7057_s18 }
  0x64   : > { %s331_s3 = sshll.u32 %s321_s30, 4  ;;  %s5015_s29 = scalar_lea.hbm %s329_s14, 64  ;;  %s332_s3 = int_to_ptr.vmem [resolvable:$true] %s331_s3 }
  0x65   : > { %p5016_p0 = scmp.ne.s32.totalorder %s329_s14, %s5015_s29  ;;  %s5020_s8 = scalar_lea.hbm %s6876_s5, 576 }
  0x66   : > { %p5021_p2 = scmp.lt.s32.totalorder %s329_s14, %s6876_s5  ;;  %p5022_p13 = scmp.lt.s32.totalorder %s5020_s8, %s5015_s29 }
  0x67   : > { %p5018_p11 = pnand %p5016_p0, %p4989_p4 }
  0x68   : > { %p5023_p3 = por %p5022_p13, %p5021_p2 }
  0x69   : > { %p5019_p12 = pneg %p5018_p11 }
  0x6b   : > { %p5024_p6 = pnand %p5023_p3, %p5019_p12 }
  0x6d   : > { %5027 = shalt.err (!%p5024_p6)
}
  0x6e   : > { %s5028_s20 = scalar_lea.vmem %s332_s3, 64  ;;  %s5115_s25 = smov [#allocation9]  }
  0x6f   : > { %p5029_p8 = scmp.ne.s32.totalorder %s332_s3, %s5028_s20  ;;  %s5033_s21 = sshll.u32 %s5115_s25, 4  ;;  %s5034_s21 = int_to_ptr.vmem [resolvable:$false] %s5033_s21 }
  0x70   : > { %s5035_s6 = scalar_lea.vmem %s5034_s21, 128  ;;  %p5036_p1 = scmp.lt.s32.totalorder %s332_s3, %s5034_s21 }
  0x71   : > { %p5031_p10 = pnand %p5029_p8, %p4989_p4  ;;  %p5037_p0 = scmp.lt.s32.totalorder %s5035_s6, %s5028_s20 }
  0x73   : > { %p5032_p7 = pneg %p5031_p10  ;;  %p5038_p11 = por %p5037_p0, %p5036_p1 }
  0x75   : > { %p5039_p5 = pnand %p5038_p11, %p5032_p7 }
  0x77   : > { %5042 = shalt.err (!%p5039_p5)
}
  0x78   : > { %4361 = dma.hbm_to_vmem [thread:$0]  (!%p5308_p9), %s329_s14, 64, %s332_s3, %s5246_s16  }
  0x79   : > { %p7058_p12 = scmp.ne.s32.totalorder %s7047_s23, 0 }
  0x7a   : > { %s342_s8 = sand.u32 (!%p7058_p12), 1, %s5101_s9   ;;  %p7059_p4 = scmp.ne.s32.totalorder (!%p7058_p12), %s7040_s15, 0 }
  0x7b   : > { %340 = sbr.rel (%p7058_p12) target bundleno = 2968 (0xb98), region = 44  ;;  %s3956_s29 = sshll.u32 (!%p7058_p12), %s342_s8, 8 }
  0x7c   : > { %s343_s13 = scalar_lea.sflag (!%p7058_p12), [#allocation6], %s342_s8  ;;  %s5369_s17 = scalar_lea.vmem (!%p7058_p12), [#allocation5], %s3956_s29 }
  0x80   : > { %5072 = dma.done.wait (%p7059_p4), %s343_s13, 4096  }
  0x81   : > { %5074 = vsyncadd (%p7059_p4), %s343_s13, 4294963200  ;;  %s351_s26 = sand.u32 1, %s5195_s12   ;;  %s353_s3 = sand.u32 1, %s5089_s28  }
  0x82   : > { %s3957_s16 = sshll.u32 %s353_s3, 8  ;;  %s352_s23 = scalar_lea.sflag [#allocation8], %s351_s26 }
  0x83   : > { %s5377_s11 = scalar_lea.vmem [#allocation7], %s3957_s16  ;;  %p7060_p5 = scmp.ne.s32.totalorder %s7041_s19, 0 }
  0x85   : > { %5076 = dma.done.wait (%p7060_p5), %s352_s23, 4096  }
  0x86   : > { %5078 = vsyncadd (%p7060_p5), %s352_s23, 4294963200  ;;  %s3958_s22 = sshll.u32 %s342_s8, 2 }
  0x87   : > { %s5383_s24 = scalar_lea.vmem [#allocation9], %s3958_s22 }
  0x88   : > { %5080 = dma.done.wait (%p7059_p4), %s352_s23, 64  }
  0x89   : > { %5082 = vsyncadd (%p7059_p4), %s352_s23, 4294967232  ;;  %p3959_p9 = scmp.ne.s32.totalorder %s5195_s12, 0 }
  0x8b   : > { %413 = sbr.rel (%p3959_p9) target bundleno = 438 (0x1b6), region = 60 }
  0x90   : > { %v4423_v0 = vld [vmem:[%s5369_s17 + $0xe4] ss:$16 sps:$4 sm:$0xff]   ;;  %v4425_v1 = vld [vmem:[%s5369_s17 + $0xec] ss:$16 sps:$4 sm:$0xff]   ;;  %v5116_v2 = vmov 0   ;;  %v464_v41 = vlaneseq }
  0x91   : > { %724 = vmatprep.mubr.bf16.mxu0 %v5116_v2  ;;  %837 = vmatprep.mubr.bf16.mxu1 %v5116_v2  ;;  %v4427_v3 = vld [vmem:[%s5369_s17 + $0xe0] ss:$16 sps:$4 sm:$0xff]   ;;  %v4428_v4 = vld [vmem:[%s5369_s17 + $0xe8] ss:$16 sps:$4 sm:$0xff]   ;;  %v4429_v5 = vld [vmem:[%s5369_s17 + $0xc4] ss:$16 sps:$4 sm:$0xff]  }
  0x92   : > { %692 = vmatprep.subr.bf16.mxu0 %v4423_v0  ;;  %805 = vmatprep.subr.bf16.mxu1 %v4425_v1  ;;  %v4431_v6 = vld [vmem:[%s5369_s17 + $0xcc] ss:$16 sps:$4 sm:$0xff]   ;;  %v4433_v7 = vld [vmem:[%s5369_s17 + $0xc0] ss:$16 sps:$4 sm:$0xff]   ;;  %v4434_v8 = vld [vmem:[%s5369_s17 + $0xc8] ss:$16 sps:$4 sm:$0xff]  }
  0x93   : > { %693 = vmatpush1.bf16.msra.mxu0 %v4427_v3  ;;  %806 = vmatpush1.bf16.msra.mxu1 %v4428_v4  ;;  %v4435_v9 = vld [vmem:[%s5369_s17 + $0xa4] ss:$16 sps:$4 sm:$0xff]   ;;  %v4437_v10 = vld [vmem:[%s5369_s17 + $0xac] ss:$16 sps:$4 sm:$0xff]   ;;  %v4439_v11 = vld [vmem:[%s5369_s17 + $0xa0] ss:$16 sps:$4 sm:$0xff]  }
  0x94   : > { %694 = vmatprep.subr.bf16.mxu0 %v4429_v5  ;;  %807 = vmatprep.subr.bf16.mxu1 %v4431_v6  ;;  %v4440_v12 = vld [vmem:[%s5369_s17 + $0xa8] ss:$16 sps:$4 sm:$0xff]   ;;  %v4441_v13 = vld [vmem:[%s5369_s17 + $0x84] ss:$16 sps:$4 sm:$0xff]   ;;  %v4443_v14 = vld [vmem:[%s5369_s17 + $0x8c] ss:$16 sps:$4 sm:$0xff]  }
  0x95   : > { %v4445_v15 = vld [vmem:[%s5369_s17 + $0x80] ss:$16 sps:$4 sm:$0xff]   ;;  %v4446_v16 = vld [vmem:[%s5369_s17 + $0x88] ss:$16 sps:$4 sm:$0xff]   ;;  %v4447_v17 = vld [vmem:[%s5369_s17 + $0x64] ss:$16 sps:$4 sm:$0xff]  }
  0x96   : > { %v4449_v18 = vld [vmem:[%s5369_s17 + $0x6c] ss:$16 sps:$4 sm:$0xff]   ;;  %v4451_v19 = vld [vmem:[%s5369_s17 + $0x60] ss:$16 sps:$4 sm:$0xff]   ;;  %v4452_v20 = vld [vmem:[%s5369_s17 + $0x68] ss:$16 sps:$4 sm:$0xff]  }
  0x97   : > { %695 = vmatpush1.bf16.msra.mxu0 %v4433_v7  ;;  %808 = vmatpush1.bf16.msra.mxu1 %v4434_v8  ;;  %v4453_v21 = vld [vmem:[%s5369_s17 + $0x44] ss:$16 sps:$4 sm:$0xff]   ;;  %v4455_v22 = vld [vmem:[%s5369_s17 + $0x4c] ss:$16 sps:$4 sm:$0xff]   ;;  %v4457_v23 = vld [vmem:[%s5369_s17 + $0x40] ss:$16 sps:$4 sm:$0xff]  }
  0x98   : > { %696 = vmatprep.subr.bf16.mxu0 %v4435_v9  ;;  %809 = vmatprep.subr.bf16.mxu1 %v4437_v10  ;;  %v4458_v24 = vld [vmem:[%s5369_s17 + $0x48] ss:$16 sps:$4 sm:$0xff]   ;;  %v4459_v25 = vld [vmem:[%s5369_s17 + $0x24] ss:$16 sps:$4 sm:$0xff]   ;;  %v4461_v26 = vld [vmem:[%s5369_s17 + $0x2c] ss:$16 sps:$4 sm:$0xff]  }
  0x99   : > { %v4463_v27 = vld [vmem:[%s5369_s17 + $0x20] ss:$16 sps:$4 sm:$0xff]   ;;  %v4464_v28 = vld [vmem:[%s5369_s17 + $0x28] ss:$16 sps:$4 sm:$0xff]   ;;  %v4465_v29 = vld [vmem:[%s5369_s17 + $0x4] ss:$16 sps:$4 sm:$0xff]  }
  0x9a   : > { %v4467_v30 = vld [vmem:[%s5369_s17 + $0xc] ss:$16 sps:$4 sm:$0xff]   ;;  %v4469_v31 = vld [vmem:[%s5369_s17] ss:$16 sps:$4 sm:$0xff]   ;;  %v4470_v32 = vld [vmem:[%s5369_s17 + $0x8] ss:$16 sps:$4 sm:$0xff]  }
  0x9b   : > { %697 = vmatpush1.bf16.msra.mxu0 %v4439_v11  ;;  %810 = vmatpush1.bf16.msra.mxu1 %v4440_v12  ;;  %v4471_v33 = vld [vmem:[%s6871_s0] sm:$0xff]   ;;  %v4472_v34 = vld [vmem:[%s6871_s0 + $0x8] sm:$0xff]   ;;  %v4473_v35 = vld [vmem:[%s6871_s0 + $0x10] sm:$0xff]   ;;  %v465_v42 = vshrl.u32 %v464_v41, 7 }
  0x9c   : > { %698 = vmatprep.subr.bf16.mxu0 %v4441_v13  ;;  %811 = vmatprep.subr.bf16.mxu1 %v4443_v14  ;;  %v4474_v36 = vld [vmem:[%s6871_s0 + $0x18] sm:$0xff]   ;;  %v4475_v37 = vld [vmem:[%s6871_s0 + $0x20] sm:$0xff]   ;;  %v4476_v38 = vld [vmem:[%s6871_s0 + $0x28] sm:$0xff]  }
  0x9d   : > { %v4477_v39 = vld [vmem:[%s6871_s0 + $0x30] sm:$0xff]   ;;  %v4478_v40 = vld [vmem:[%s6871_s0 + $0x38] sm:$0xff]   ;;  %v466_v43 = vsub.s32 0, %v465_v42  ;;  %v474_v44 = vsub.s32 2, %v465_v42  ;;  %v470_v45 = vsub.s32 1, %v465_v42  ;;  %v478_v46 = vsub.s32 3, %v465_v42 }
  0x9e   : > { %v462_v47 = vld [vmem:[%s5383_s24] sm:$0xf] }
  0x9f   : > { %699 = vmatpush1.bf16.msra.mxu0 %v4445_v15  ;;  %812 = vmatpush1.bf16.msra.mxu1 %v4446_v16  ;;  %v5463_v48 = vrot.slane %v462_v47, %v466_v43  ;;  %v5465_v49 = vrot.slane %v462_v47, %v474_v44  ;;  %v5467_v50 = vrot.slane %v462_v47, %v470_v45 }
  0xa0   : > { %700 = vmatprep.subr.bf16.mxu0 %v4447_v17  ;;  %813 = vmatprep.subr.bf16.mxu1 %v4449_v18  ;;  %v5469_v51 = vrot.slane %v462_v47, %v478_v46 }
  0xa3   : > { %701 = vmatpush1.bf16.msra.mxu0 %v4451_v19  ;;  %814 = vmatpush1.bf16.msra.mxu1 %v4452_v20 }
  0xa4   : > { %702 = vmatprep.subr.bf16.mxu0 %v4453_v21  ;;  %815 = vmatprep.subr.bf16.mxu1 %v4455_v22 }
  0xa7   : > { %703 = vmatpush1.bf16.msra.mxu0 %v4457_v23  ;;  %816 = vmatpush1.bf16.msra.mxu1 %v4458_v24 }
  0xa8   : > { %704 = vmatprep.subr.bf16.mxu0 %v4459_v25  ;;  %817 = vmatprep.subr.bf16.mxu1 %v4461_v26 }
  0xab   : > { %705 = vmatpush1.bf16.msra.mxu0 %v4463_v27  ;;  %818 = vmatpush1.bf16.msra.mxu1 %v4464_v28 }
  0xac   : > { %706 = vmatprep.subr.bf16.mxu0 %v4465_v29  ;;  %819 = vmatprep.subr.bf16.mxu1 %v4467_v30 }
  0xaf   : > { %707 = vmatpush1.bf16.msra.mxu0 %v4469_v31  ;;  %820 = vmatpush1.bf16.msra.mxu1 %v4470_v32 }
  0xb2   : > { %725 = vmatmul.mubr.bf16.vlgmr.msra.gmra.mxu0 %v4471_v33  ;;  %838 = vmatmul.mubr.bf16.vlgmr.msra.gmra.mxu1 %v4471_v33 }
  0xb3   : > { %734 = vmatprep.mubr.bf16.mxu0 %v5116_v2  ;;  %847 = vmatprep.mubr.bf16.mxu1 %v5116_v2 }
  0xba   : > { %735 = vmatmul.mubr.bf16.gmra.mxu0 %v4472_v34  ;;  %848 = vmatmul.mubr.bf16.gmra.mxu1 %v4472_v34 }
  0xbb   : > { %744 = vmatprep.mubr.bf16.mxu0 %v5116_v2  ;;  %857 = vmatprep.mubr.bf16.mxu1 %v5116_v2 }
  0xc2   : > { %745 = vmatmul.mubr.bf16.gmra.mxu0 %v4473_v35  ;;  %858 = vmatmul.mubr.bf16.gmra.mxu1 %v4473_v35 }
  0xc3   : > { %754 = vmatprep.mubr.bf16.mxu0 %v5116_v2  ;;  %867 = vmatprep.mubr.bf16.mxu1 %v5116_v2 }
  0xca   : > { %755 = vmatmul.mubr.bf16.gmra.mxu0 %v4474_v36  ;;  %868 = vmatmul.mubr.bf16.gmra.mxu1 %v4474_v36 }
  0xcb   : > { %764 = vmatprep.mubr.bf16.mxu0 %v5116_v2  ;;  %877 = vmatprep.mubr.bf16.mxu1 %v5116_v2 }
  0xd2   : > { %765 = vmatmul.mubr.bf16.gmra.mxu0 %v4475_v37  ;;  %878 = vmatmul.mubr.bf16.gmra.mxu1 %v4475_v37 }
  0xd3   : > { %774 = vmatprep.mubr.bf16.mxu0 %v5116_v2  ;;  %887 = vmatprep.mubr.bf16.mxu1 %v5116_v2 }
  0xda   : > { %775 = vmatmul.mubr.bf16.gmra.mxu0 %v4476_v38  ;;  %888 = vmatmul.mubr.bf16.gmra.mxu1 %v4476_v38 }
  0xdb   : > { %784 = vmatprep.mubr.bf16.mxu0 %v5116_v2  ;;  %897 = vmatprep.mubr.bf16.mxu1 %v5116_v2 }
  0xe2   : > { %785 = vmatmul.mubr.bf16.gmra.mxu0 %v4477_v39  ;;  %898 = vmatmul.mubr.bf16.gmra.mxu1 %v4477_v39 }
  0xe3   : > { %794 = vmatprep.mubr.bf16.mxu0 %v5116_v2  ;;  %907 = vmatprep.mubr.bf16.mxu1 %v5116_v2 }
  0xea   : > { %795 = vmatmul.mubr.bf16.gmra.mxu0 %v4478_v40  ;;  %908 = vmatmul.mubr.bf16.gmra.mxu1 %v4478_v40 }
 0x172   : > { %v726_v52 = vpop.f32.mrf.mxu0  ;;  %v839_v53 = vpop.f32.mrf.mxu1 }
 0x173   : > { %v727_v56 = vadd.f32 %v726_v52, %v5463_v48  ;;  %v840_v57 = vadd.f32 %v839_v53, %v5465_v49 }
 0x174   : > { %v728_v54 = vpop.f32.mrf.mxu0  ;;  %v841_v55 = vpop.f32.mrf.mxu1 }
 0x175   : > { %v729_v58 = vadd.f32 %v728_v54, %v5467_v50  ;;  %v842_v59 = vadd.f32 %v841_v55, %v5469_v51 }
 0x176   : > { %v730_v60 = vpop.f32.mrf.mxu0  ;;  %v843_v61 = vpop.f32.mrf.mxu1 }
 0x177   : > { %v4219_v62 = vpack.c.bf16 %v729_v58, %v727_v56  ;;  %v4220_v63 = vpack.c.bf16 %v842_v59, %v840_v57  ;;  %v731_v2 = vadd.f32 %v730_v60, %v5463_v48  ;;  %v844_v3 = vadd.f32 %v843_v61, %v5465_v49 }
 0x178   : > { %v732_v0 = vpop.f32.mrf.mxu0  ;;  %v845_v1 = vpop.f32.mrf.mxu1 }
 0x179   : > { %1110 = vst [vmem:[#allocation2 + $0xb0] sm:$0xff] %v4219_v62  ;;  %1111 = vst [vmem:[#allocation2] sm:$0xff] %v4220_v63  ;;  %v733_v4 = vadd.f32 %v732_v0, %v5467_v50  ;;  %v846_v5 = vadd.f32 %v845_v1, %v5469_v51 }
 0x17a   : > { %v736_v6 = vpop.f32.mrf.mxu0  ;;  %v849_v7 = vpop.f32.mrf.mxu1 }
 0x17b   : > { %v4221_v8 = vpack.c.bf16 %v733_v4, %v731_v2  ;;  %v4222_v9 = vpack.c.bf16 %v846_v5, %v844_v3  ;;  %v737_v12 = vadd.f32 %v736_v6, %v5463_v48  ;;  %v850_v13 = vadd.f32 %v849_v7, %v5465_v49 }
 0x17c   : > { %v738_v10 = vpop.f32.mrf.mxu0  ;;  %v851_v11 = vpop.f32.mrf.mxu1 }
 0x17d   : > { %1112 = vst [vmem:[#allocation2 + $0xd8] sm:$0xff] %v4221_v8  ;;  %1113 = vst [vmem:[#allocation2 + $0x18] sm:$0xff] %v4222_v9  ;;  %v739_v14 = vadd.f32 %v738_v10, %v5467_v50  ;;  %v852_v15 = vadd.f32 %v851_v11, %v5469_v51 }
 0x17e   : > { %v740_v16 = vpop.f32.mrf.mxu0  ;;  %v853_v17 = vpop.f32.mrf.mxu1 }
 0x17f   : > { %v4223_v18 = vpack.c.bf16 %v739_v14, %v737_v12  ;;  %v4224_v19 = vpack.c.bf16 %v852_v15, %v850_v13  ;;  %v741_v22 = vadd.f32 %v740_v16, %v5463_v48  ;;  %v854_v23 = vadd.f32 %v853_v17, %v5465_v49 }
 0x180   : > { %v742_v20 = vpop.f32.mrf.mxu0  ;;  %v855_v21 = vpop.f32.mrf.mxu1 }
 0x181   : > { %1114 = vst [vmem:[#allocation2 + $0x50] sm:$0xff] %v4223_v18  ;;  %1115 = vst [vmem:[#allocation2 + $0x68] sm:$0xff] %v4224_v19  ;;  %v743_v24 = vadd.f32 %v742_v20, %v5467_v50  ;;  %v856_v25 = vadd.f32 %v855_v21, %v5469_v51 }
 0x182   : > { %v746_v26 = vpop.f32.mrf.mxu0  ;;  %v859_v27 = vpop.f32.mrf.mxu1 }
 0x183   : > { %v4225_v28 = vpack.c.bf16 %v743_v24, %v741_v22  ;;  %v4226_v29 = vpack.c.bf16 %v856_v25, %v854_v23  ;;  %v747_v32 = vadd.f32 %v746_v26, %v5463_v48  ;;  %v860_v33 = vadd.f32 %v859_v27, %v5465_v49 }
 0x184   : > { %v748_v30 = vpop.f32.mrf.mxu0  ;;  %v861_v31 = vpop.f32.mrf.mxu1 }
 0x185   : > { %1116 = vst [vmem:[#allocation2 + $0x30] sm:$0xff] %v4225_v28  ;;  %1117 = vst [vmem:[#allocation2 + $0x48] sm:$0xff] %v4226_v29  ;;  %v749_v34 = vadd.f32 %v748_v30, %v5467_v50  ;;  %v862_v35 = vadd.f32 %v861_v31, %v5469_v51 }
 0x186   : > { %v750_v36 = vpop.f32.mrf.mxu0  ;;  %v863_v37 = vpop.f32.mrf.mxu1 }
 0x187   : > { %v4227_v38 = vpack.c.bf16 %v749_v34, %v747_v32  ;;  %v4228_v39 = vpack.c.bf16 %v862_v35, %v860_v33  ;;  %v751_v42 = vadd.f32 %v750_v36, %v5463_v48  ;;  %v864_v43 = vadd.f32 %v863_v37, %v5465_v49 }
 0x188   : > { %v752_v40 = vpop.f32.mrf.mxu0  ;;  %v865_v41 = vpop.f32.mrf.mxu1 }
 0x189   : > { %1118 = vst [vmem:[#allocation2 + $0x80] sm:$0xff] %v4227_v38  ;;  %1119 = vst [vmem:[#allocation2 + $0x88] sm:$0xff] %v4228_v39  ;;  %v753_v44 = vadd.f32 %v752_v40, %v5467_v50  ;;  %v866_v45 = vadd.f32 %v865_v41, %v5469_v51 }
 0x18a   : > { %v756_v46 = vpop.f32.mrf.mxu0  ;;  %v869_v47 = vpop.f32.mrf.mxu1 }
 0x18b   : > { %v4229_v52 = vpack.c.bf16 %v753_v44, %v751_v42  ;;  %v4230_v53 = vpack.c.bf16 %v866_v45, %v864_v43  ;;  %v757_v56 = vadd.f32 %v756_v46, %v5463_v48  ;;  %v870_v57 = vadd.f32 %v869_v47, %v5465_v49 }
 0x18c   : > { %v758_v54 = vpop.f32.mrf.mxu0  ;;  %v871_v55 = vpop.f32.mrf.mxu1 }
 0x18d   : > { %1120 = vst [vmem:[#allocation2 + $0xe8] sm:$0xff] %v4229_v52  ;;  %1121 = vst [vmem:[#allocation2 + $0xb8] sm:$0xff] %v4230_v53  ;;  %v759_v58 = vadd.f32 %v758_v54, %v5467_v50  ;;  %v872_v59 = vadd.f32 %v871_v55, %v5469_v51 }
 0x18e   : > { %v760_v60 = vpop.f32.mrf.mxu0  ;;  %v873_v61 = vpop.f32.mrf.mxu1 }
 0x18f   : > { %v4231_v62 = vpack.c.bf16 %v759_v58, %v757_v56  ;;  %v4232_v63 = vpack.c.bf16 %v872_v59, %v870_v57  ;;  %v761_v2 = vadd.f32 %v760_v60, %v5463_v48  ;;  %v874_v3 = vadd.f32 %v873_v61, %v5465_v49 }
 0x190   : > { %v762_v0 = vpop.f32.mrf.mxu0  ;;  %v875_v1 = vpop.f32.mrf.mxu1 }
 0x191   : > { %1122 = vst [vmem:[#allocation2 + $0x60] sm:$0xff] %v4231_v62  ;;  %1123 = vst [vmem:[#allocation2 + $0xf0] sm:$0xff] %v4232_v63  ;;  %v763_v4 = vadd.f32 %v762_v0, %v5467_v50  ;;  %v876_v5 = vadd.f32 %v875_v1, %v5469_v51 }
 0x192   : > { %v766_v6 = vpop.f32.mrf.mxu0  ;;  %v879_v7 = vpop.f32.mrf.mxu1 }
 0x193   : > { %v4233_v8 = vpack.c.bf16 %v763_v4, %v761_v2  ;;  %v4234_v9 = vpack.c.bf16 %v876_v5, %v874_v3  ;;  %v767_v12 = vadd.f32 %v766_v6, %v5463_v48  ;;  %v880_v13 = vadd.f32 %v879_v7, %v5465_v49 }
 0x194   : > { %v768_v10 = vpop.f32.mrf.mxu0  ;;  %v881_v11 = vpop.f32.mrf.mxu1 }
 0x195   : > { %1124 = vst [vmem:[#allocation2 + $0x8] sm:$0xff] %v4233_v8  ;;  %1125 = vst [vmem:[#allocation2 + $0x78] sm:$0xff] %v4234_v9  ;;  %v769_v14 = vadd.f32 %v768_v10, %v5467_v50  ;;  %v882_v15 = vadd.f32 %v881_v11, %v5469_v51 }
 0x196   : > { %v770_v16 = vpop.f32.mrf.mxu0  ;;  %v883_v17 = vpop.f32.mrf.mxu1 }
 0x197   : > { %v4235_v18 = vpack.c.bf16 %v769_v14, %v767_v12  ;;  %v4236_v19 = vpack.c.bf16 %v882_v15, %v880_v13  ;;  %v771_v22 = vadd.f32 %v770_v16, %v5463_v48  ;;  %v884_v23 = vadd.f32 %v883_v17, %v5465_v49 }
 0x198   : > { %v772_v20 = vpop.f32.mrf.mxu0  ;;  %v885_v21 = vpop.f32.mrf.mxu1 }
 0x199   : > { %1126 = vst [vmem:[#allocation2 + $0x38] sm:$0xff] %v4235_v18  ;;  %1127 = vst [vmem:[#allocation2 + $0x58] sm:$0xff] %v4236_v19  ;;  %v773_v24 = vadd.f32 %v772_v20, %v5467_v50  ;;  %v886_v25 = vadd.f32 %v885_v21, %v5469_v51 }
 0x19a   : > { %v776_v26 = vpop.f32.mrf.mxu0  ;;  %v889_v27 = vpop.f32.mrf.mxu1 }
 0x19b   : > { %v4237_v28 = vpack.c.bf16 %v773_v24, %v771_v22  ;;  %v4238_v29 = vpack.c.bf16 %v886_v25, %v884_v23  ;;  %v777_v32 = vadd.f32 %v776_v26, %v5463_v48  ;;  %v890_v33 = vadd.f32 %v889_v27, %v5465_v49 }
 0x19c   : > { %v778_v30 = vpop.f32.mrf.mxu0  ;;  %v891_v31 = vpop.f32.mrf.mxu1 }
 0x19d   : > { %1128 = vst [vmem:[#allocation2 + $0x40] sm:$0xff] %v4237_v28  ;;  %1129 = vst [vmem:[#allocation2 + $0xc8] sm:$0xff] %v4238_v29  ;;  %v779_v34 = vadd.f32 %v778_v30, %v5467_v50  ;;  %v892_v35 = vadd.f32 %v891_v31, %v5469_v51 }
 0x19e   : > { %v780_v36 = vpop.f32.mrf.mxu0  ;;  %v893_v37 = vpop.f32.mrf.mxu1 }
 0x19f   : > { %v4239_v38 = vpack.c.bf16 %v779_v34, %v777_v32  ;;  %v4240_v39 = vpack.c.bf16 %v892_v35, %v890_v33  ;;  %v781_v42 = vadd.f32 %v780_v36, %v5463_v48  ;;  %v894_v43 = vadd.f32 %v893_v37, %v5465_v49 }
 0x1a0   : > { %v782_v40 = vpop.f32.mrf.mxu0  ;;  %v895_v41 = vpop.f32.mrf.mxu1 }
 0x1a1   : > { %1130 = vst [vmem:[#allocation2 + $0xe0] sm:$0xff] %v4239_v38  ;;  %1131 = vst [vmem:[#allocation2 + $0x90] sm:$0xff] %v4240_v39  ;;  %v783_v44 = vadd.f32 %v782_v40, %v5467_v50  ;;  %v896_v45 = vadd.f32 %v895_v41, %v5469_v51 }
 0x1a2   : > { %v786_v46 = vpop.f32.mrf.mxu0  ;;  %v899_v47 = vpop.f32.mrf.mxu1 }
 0x1a3   : > { %v4241_v52 = vpack.c.bf16 %v783_v44, %v781_v42  ;;  %v4242_v53 = vpack.c.bf16 %v896_v45, %v894_v43  ;;  %v787_v56 = vadd.f32 %v786_v46, %v5463_v48  ;;  %v900_v57 = vadd.f32 %v899_v47, %v5465_v49 }
 0x1a4   : > { %v788_v54 = vpop.f32.mrf.mxu0  ;;  %v901_v55 = vpop.f32.mrf.mxu1 }
 0x1a5   : > { %1132 = vst [vmem:[#allocation2 + $0x70] sm:$0xff] %v4241_v52  ;;  %1133 = vst [vmem:[#allocation2 + $0xc0] sm:$0xff] %v4242_v53  ;;  %v789_v58 = vadd.f32 %v788_v54, %v5467_v50  ;;  %v902_v59 = vadd.f32 %v901_v55, %v5469_v51 }
 0x1a6   : > { %v790_v60 = vpop.f32.mrf.mxu0  ;;  %v903_v61 = vpop.f32.mrf.mxu1 }
 0x1a7   : > { %v4243_v62 = vpack.c.bf16 %v789_v58, %v787_v56  ;;  %v4244_v63 = vpack.c.bf16 %v902_v59, %v900_v57  ;;  %v791_v2 = vadd.f32 %v790_v60, %v5463_v48  ;;  %v904_v3 = vadd.f32 %v903_v61, %v5465_v49 }
 0x1a8   : > { %v792_v0 = vpop.f32.mrf.mxu0  ;;  %v905_v1 = vpop.f32.mrf.mxu1 }
 0x1a9   : > { %1134 = vst [vmem:[#allocation2 + $0xa8] sm:$0xff] %v4243_v62  ;;  %1135 = vst [vmem:[#allocation2 + $0xd0] sm:$0xff] %v4244_v63  ;;  %v793_v4 = vadd.f32 %v792_v0, %v5467_v50  ;;  %v906_v5 = vadd.f32 %v905_v1, %v5469_v51 }
 0x1aa   : > { %v796_v6 = vpop.f32.mrf.mxu0  ;;  %v909_v7 = vpop.f32.mrf.mxu1 }
 0x1ab   : > { %v4245_v8 = vpack.c.bf16 %v793_v4, %v791_v2  ;;  %v4246_v9 = vpack.c.bf16 %v906_v5, %v904_v3  ;;  %v797_v12 = vadd.f32 %v796_v6, %v5463_v48  ;;  %v910_v13 = vadd.f32 %v909_v7, %v5465_v49 }
 0x1ac   : > { %v798_v10 = vpop.f32.mrf.mxu0  ;;  %v911_v11 = vpop.f32.mrf.mxu1 }
 0x1ad   : > { %1136 = vst [vmem:[#allocation2 + $0x10] sm:$0xff] %v4245_v8  ;;  %1137 = vst [vmem:[#allocation2 + $0x28] sm:$0xff] %v4246_v9  ;;  %v799_v14 = vadd.f32 %v798_v10, %v5467_v50  ;;  %v912_v15 = vadd.f32 %v911_v11, %v5469_v51 }
 0x1ae   : > { %v800_v16 = vpop.f32.mrf.mxu0  ;;  %v913_v17 = vpop.f32.mrf.mxu1 }
 0x1af   : > { %v4247_v18 = vpack.c.bf16 %v799_v14, %v797_v12  ;;  %v4248_v19 = vpack.c.bf16 %v912_v15, %v910_v13  ;;  %v801_v22 = vadd.f32 %v800_v16, %v5463_v48  ;;  %v914_v23 = vadd.f32 %v913_v17, %v5465_v49 }
 0x1b0   : > { %v802_v20 = vpop.f32.mrf.mxu0  ;;  %v915_v21 = vpop.f32.mrf.mxu1 }
 0x1b1   : > { %1138 = vst [vmem:[#allocation2 + $0xa0] sm:$0xff] %v4247_v18  ;;  %1139 = vst [vmem:[#allocation2 + $0xf8] sm:$0xff] %v4248_v19  ;;  %v803_v24 = vadd.f32 %v802_v20, %v5467_v50  ;;  %v916_v25 = vadd.f32 %v915_v21, %v5469_v51 }
 0x1b3   : > { %v4249_v26 = vpack.c.bf16 %v803_v24, %v801_v22  ;;  %v4250_v27 = vpack.c.bf16 %v916_v25, %v914_v23 }
 0x1b5   : > { %1140 = vst [vmem:[#allocation2 + $0x20] sm:$0xff] %v4249_v26  ;;  %1141 = vst [vmem:[#allocation2 + $0x98] sm:$0xff] %v4250_v27 }
 0x1b6 PF: > { %p4032_p2 = scmp.le.s32.totalorder %s5195_s12, 0 }
 0x1b8   : > { %1145 = sbr.rel (%p4032_p2) target bundleno = 2968 (0xb98), region = 64 }
 0x1bd   : > { %s5537_s3 = sadd.s32 4294967295, %s5195_s12 }
 0x1be   : > { %p4034_p13 = scmp.ge.s32.totalorder %s5537_s3, 3 }
 0x1bf   : > { %s4035_s16 = sshll.u32 (!%p4034_p13), %s5537_s3, 4 }
 0x1c0   : > { %1150 = sbr.rel (%p4034_p13) target bundleno = 456 (0x1c8), region = 68  ;;  %s1152_s15 = scalar_lea.vmem (!%p4034_p13), %s6872_s1, %s4035_s16 }
 0x1c1   : > { %s1157_s14 = scalar_lea.vmem (!%p4034_p13), %s6873_s2, %s4035_s16 }
 0x1c5   : > { %v1153_v48 = vld [vmem:[%s1152_s15] sm:$0xff]  ;;  %v1154_v49 = vld [vmem:[%s1152_s15 + $0x8] sm:$0xff] }
 0x1c6   : > { %v1158_v50 = vld [vmem:[%s1157_s14] sm:$0xff]  ;;  %1155 = vst [vmem:[#allocation3] sm:$0xff] %v1153_v48  ;;  %1156 = vst [vmem:[#allocation3 + $0x8] sm:$0xff] %v1154_v49  ;;  %v1159_v51 = vld [vmem:[%s1157_s14 + $0x8] sm:$0xff] }
 0x1c7   : > { %1160 = vst [vmem:[#allocation4] sm:$0xff] %v1158_v50  ;;  %1161 = vst [vmem:[#allocation4 + $0x8] sm:$0xff] %v1159_v51 }
 0x1c8 PF: > { %p4036_p3 = scmp.lt.s32.totalorder %s5537_s3, 3 }
 0x1c9   : > { %s4037_s18 = sadd.s32 (!%p4036_p3), 4294967292, %s5195_s12  ;;  %s7061_s6 = sld [smem:[#allocation51_spill]] (!%p4036_p3) }
 0x1ca   : > { %1165 = sbr.rel (%p4036_p3) target bundleno = 466 (0x1d2), region = 72  ;;  %s4038_s30 = sshll.u32 (!%p4036_p3), %s4037_s18, 4 }
 0x1cb   : > { %s1168_s20 = scalar_lea.vmem (!%p4036_p3), %s6878_s7, %s4038_s30 }
 0x1cf   : > { %s1173_s8 = scalar_lea.vmem %s7061_s6, %s4038_s30  ;;  %v1169_v28 = vld [vmem:[%s1168_s20] sm:$0xff]  ;;  %v1170_v29 = vld [vmem:[%s1168_s20 + $0x8] sm:$0xff] }
 0x1d0   : > { %v1174_v30 = vld [vmem:[%s1173_s8] sm:$0xff]  ;;  %1171 = vst [vmem:[#allocation3] sm:$0xff] %v1169_v28  ;;  %1172 = vst [vmem:[#allocation3 + $0x8] sm:$0xff] %v1170_v29  ;;  %v1175_v31 = vld [vmem:[%s1173_s8 + $0x8] sm:$0xff] }
 0x1d1   : > { %1176 = vst [vmem:[#allocation4] sm:$0xff] %v1174_v30  ;;  %1177 = vst [vmem:[#allocation4 + $0x8] sm:$0xff] %v1175_v31 }
 0x1d2 PF: > { %v5556_v32 = vld [vmem:[%s5377_s11 + $0xe4] ss:$16 sps:$4 sm:$0xff]   ;;  %v5559_v33 = vld [vmem:[%s5377_s11 + $0xe0] ss:$16 sps:$4 sm:$0xff]   ;;  %v6891_v34 = vmov 0   ;;  %s7088_s13 = sld [smem:[#allocation50_spill]] }
 0x1d3   : > { %7062 = vst [vmem:[#allocation18_spill] sm:$0xff] %v5556_v32  ;;  %1452 = vmatprep.mubr.bf16.mxu0 %v6891_v34  ;;  %1495 = vmatprep.mubr.bf16.mxu1 %v6891_v34  ;;  %v5565_v35 = vld [vmem:[%s5377_s11 + $0xc4] ss:$16 sps:$4 sm:$0xff]   ;;  %v5569_v36 = vld [vmem:[%s5377_s11 + $0xc0] ss:$16 sps:$4 sm:$0xff]   ;;  %s4213_s30 = sshll.u32 %s5537_s3, 4 }
 0x1d4   : > { %1420 = vmatprep.subr.bf16.mxu0 %v5556_v32  ;;  %v5573_v37 = vld [vmem:[%s5377_s11 + $0xa4] ss:$16 sps:$4 sm:$0xff]   ;;  %v5576_v38 = vld [vmem:[%s5377_s11 + $0xec] ss:$16 sps:$4 sm:$0xff]   ;;  %v5579_v39 = vld [vmem:[%s5377_s11 + $0xe8] ss:$16 sps:$4 sm:$0xff]   ;;  %s3828_s6 = scalar_lea.vmem %s6878_s7, %s4213_s30 }
 0x1d5   : > { %1421 = vmatpush1.bf16.msra.mxu0 %v5559_v33  ;;  %7063 = vst [vmem:[#allocation19_spill] sm:$0xff] %v5576_v38  ;;  %v5583_v40 = vld [vmem:[%s5377_s11 + $0xa0] ss:$16 sps:$4 sm:$0xff]   ;;  %1463 = vmatprep.subr.bf16.mxu1 %v5576_v38  ;;  %v5588_v41 = vld [vmem:[%s5377_s11 + $0x84] ss:$16 sps:$4 sm:$0xff]   ;;  %s7280_s20 = sld [smem:[#allocation51_spill]] }
 0x1d6   : > { %1422 = vmatprep.subr.bf16.mxu0 %v5565_v35  ;;  %1464 = vmatpush1.bf16.msra.mxu1 %v5579_v39  ;;  %v5592_v42 = vld [vmem:[%s5377_s11 + $0xcc] ss:$16 sps:$4 sm:$0xff]   ;;  %v5595_v43 = vld [vmem:[%s5377_s11 + $0xc8] ss:$16 sps:$4 sm:$0xff]   ;;  %v5600_v44 = vld [vmem:[%s5377_s11 + $0x80] ss:$16 sps:$4 sm:$0xff]  }
 0x1d7   : > { %1465 = vmatprep.subr.bf16.mxu1 %v5592_v42  ;;  %v5603_v45 = vld [vmem:[%s5377_s11 + $0x64] ss:$16 sps:$4 sm:$0xff]   ;;  %v5606_v46 = vld [vmem:[%s5377_s11 + $0xac] ss:$16 sps:$4 sm:$0xff]   ;;  %v5611_v47 = vld [vmem:[%s5377_s11 + $0xa8] ss:$16 sps:$4 sm:$0xff]  }
 0x1d8   : > { %v5615_v52 = vld [vmem:[%s5377_s11 + $0x8c] ss:$16 sps:$4 sm:$0xff]   ;;  %v5619_v53 = vld [vmem:[%s5377_s11 + $0x60] ss:$16 sps:$4 sm:$0xff]   ;;  %v5623_v54 = vld [vmem:[%s5377_s11 + $0x44] ss:$16 sps:$4 sm:$0xff]  }
 0x1d9   : > { %1423 = vmatpush1.bf16.msra.mxu0 %v5569_v36  ;;  %v5627_v55 = vld [vmem:[%s5377_s11 + $0x88] ss:$16 sps:$4 sm:$0xff]   ;;  %v5631_v56 = vld [vmem:[%s5377_s11 + $0x6c] ss:$16 sps:$4 sm:$0xff]   ;;  %v5635_v57 = vld [vmem:[%s5377_s11 + $0x40] ss:$16 sps:$4 sm:$0xff]  }
 0x1da   : > { %1424 = vmatprep.subr.bf16.mxu0 %v5573_v37  ;;  %1466 = vmatpush1.bf16.msra.mxu1 %v5595_v43  ;;  %v5639_v58 = vld [vmem:[%s5377_s11 + $0x24] ss:$16 sps:$4 sm:$0xff]   ;;  %v5643_v59 = vld [vmem:[%s5377_s11 + $0x68] ss:$16 sps:$4 sm:$0xff]   ;;  %v5646_v60 = vld [vmem:[%s5377_s11 + $0x20] ss:$16 sps:$4 sm:$0xff]  }
 0x1db   : > { %1467 = vmatprep.subr.bf16.mxu1 %v5606_v46  ;;  %v5650_v61 = vld [vmem:[%s5377_s11 + $0x4c] ss:$16 sps:$4 sm:$0xff]   ;;  %v5653_v62 = vld [vmem:[%s5377_s11 + $0x4] ss:$16 sps:$4 sm:$0xff]   ;;  %v5656_v63 = vld [vmem:[%s5377_s11 + $0x48] ss:$16 sps:$4 sm:$0xff]   ;;  %s3831_s25 = scalar_lea.vmem %s7280_s20, %s4213_s30 }
 0x1dc   : > { %v5660_v0 = vld [vmem:[%s5377_s11 + $0x2c] ss:$16 sps:$4 sm:$0xff]   ;;  %v5665_v1 = vld [vmem:[%s5377_s11] ss:$16 sps:$4 sm:$0xff]   ;;  %v5669_v4 = vld [vmem:[%s5377_s11 + $0x28] ss:$16 sps:$4 sm:$0xff]  }
 0x1dd   : > { %1425 = vmatpush1.bf16.msra.mxu0 %v5583_v40  ;;  %v1243_v2 = vld [vmem:[#allocation3] sm:$0xff]  ;;  %v1244_v3 = vld [vmem:[#allocation3 + $0x8] sm:$0xff] }
 0x1de   : > { %1426 = vmatprep.subr.bf16.mxu0 %v5588_v41  ;;  %1468 = vmatpush1.bf16.msra.mxu1 %v5611_v47  ;;  %v5673_v5 = vld [vmem:[%s5377_s11 + $0xc] ss:$16 sps:$4 sm:$0xff]   ;;  %v1259_v6 = vpack.c.bf16 %v1244_v3, %v1243_v2  ;;  %v5679_v7 = vld [vmem:[%s5377_s11 + $0x8] ss:$16 sps:$4 sm:$0xff]   ;;  %v5688_v8 = vld [vmem:[%s5369_s17 + $0xe4] ss:$16 sps:$4 sm:$0xff]  }
 0x1df   : > { %1469 = vmatprep.subr.bf16.mxu1 %v5615_v52  ;;  %v5691_v9 = vld [vmem:[%s5369_s17 + $0xec] ss:$16 sps:$4 sm:$0xff]   ;;  %v5694_v10 = vld [vmem:[%s5369_s17 + $0xe0] ss:$16 sps:$4 sm:$0xff]   ;;  %v5697_v11 = vld [vmem:[%s5369_s17 + $0xe8] ss:$16 sps:$4 sm:$0xff]  }
 0x1e0   : > { %v5704_v12 = vld [vmem:[%s5369_s17 + $0xc4] ss:$16 sps:$4 sm:$0xff]   ;;  %v5707_v13 = vld [vmem:[%s5369_s17 + $0xcc] ss:$16 sps:$4 sm:$0xff]   ;;  %v5710_v14 = vld [vmem:[%s5369_s17 + $0xc0] ss:$16 sps:$4 sm:$0xff]  }
 0x1e1   : > { %1427 = vmatpush1.bf16.msra.mxu0 %v5600_v44  ;;  %v5713_v15 = vld [vmem:[%s5369_s17 + $0xc8] ss:$16 sps:$4 sm:$0xff]   ;;  %v5720_v16 = vld [vmem:[%s5369_s17 + $0xa4] ss:$16 sps:$4 sm:$0xff]   ;;  %v5723_v17 = vld [vmem:[%s5369_s17 + $0xac] ss:$16 sps:$4 sm:$0xff]  }
 0x1e2   : > { %1428 = vmatprep.subr.bf16.mxu0 %v5603_v45  ;;  %1470 = vmatpush1.bf16.msra.mxu1 %v5627_v55  ;;  %7064 = vst [vmem:[#allocation20_spill] sm:$0xff] %v5720_v16  ;;  %7065 = vst [vmem:[#allocation21_spill] sm:$0xff] %v5723_v17  ;;  %v5726_v18 = vld [vmem:[%s5369_s17 + $0xa0] ss:$16 sps:$4 sm:$0xff]   ;;  %v5729_v19 = vld [vmem:[%s5369_s17 + $0xa8] ss:$16 sps:$4 sm:$0xff]  }
 0x1e3   : > { %1471 = vmatprep.subr.bf16.mxu1 %v5631_v56  ;;  %7066 = vst [vmem:[#allocation22_spill] sm:$0xff] %v5726_v18  ;;  %7067 = vst [vmem:[#allocation23_spill] sm:$0xff] %v5729_v19  ;;  %v5736_v20 = vld [vmem:[%s5369_s17 + $0x84] ss:$16 sps:$4 sm:$0xff]   ;;  %v5739_v21 = vld [vmem:[%s5369_s17 + $0x8c] ss:$16 sps:$4 sm:$0xff]  }
 0x1e4   : > { %7068 = vst [vmem:[#allocation24_spill] sm:$0xff] %v5736_v20  ;;  %7069 = vst [vmem:[#allocation25_spill] sm:$0xff] %v5739_v21  ;;  %v5742_v22 = vld [vmem:[%s5369_s17 + $0x80] ss:$16 sps:$4 sm:$0xff]   ;;  %v5745_v23 = vld [vmem:[%s5369_s17 + $0x88] ss:$16 sps:$4 sm:$0xff]  }
 0x1e5   : > { %1429 = vmatpush1.bf16.msra.mxu0 %v5619_v53  ;;  %7070 = vst [vmem:[#allocation26_spill] sm:$0xff] %v5742_v22  ;;  %7071 = vst [vmem:[#allocation27_spill] sm:$0xff] %v5745_v23  ;;  %v5752_v24 = vld [vmem:[%s5369_s17 + $0x64] ss:$16 sps:$4 sm:$0xff]   ;;  %v5755_v25 = vld [vmem:[%s5369_s17 + $0x6c] ss:$16 sps:$4 sm:$0xff]  }
 0x1e6   : > { %1430 = vmatprep.subr.bf16.mxu0 %v5623_v54  ;;  %1472 = vmatpush1.bf16.msra.mxu1 %v5643_v59  ;;  %7072 = vst [vmem:[#allocation28_spill] sm:$0xff] %v5752_v24  ;;  %7073 = vst [vmem:[#allocation29_spill] sm:$0xff] %v5755_v25  ;;  %v5758_v26 = vld [vmem:[%s5369_s17 + $0x60] ss:$16 sps:$4 sm:$0xff]   ;;  %v5761_v27 = vld [vmem:[%s5369_s17 + $0x68] ss:$16 sps:$4 sm:$0xff]  }
 0x1e7   : > { %1473 = vmatprep.subr.bf16.mxu1 %v5650_v61  ;;  %7074 = vst [vmem:[#allocation30_spill] sm:$0xff] %v5758_v26  ;;  %7075 = vst [vmem:[#allocation31_spill] sm:$0xff] %v5761_v27  ;;  %v5764_v48 = vld [vmem:[%s5369_s17 + $0x44] ss:$16 sps:$4 sm:$0xff]   ;;  %v5769_v49 = vld [vmem:[%s5369_s17 + $0x4c] ss:$16 sps:$4 sm:$0xff]  }
 0x1e8   : > { %7076 = vst [vmem:[#allocation32_spill] sm:$0xff] %v5764_v48  ;;  %7077 = vst [vmem:[#allocation33_spill] sm:$0xff] %v5769_v49  ;;  %v5774_v50 = vld [vmem:[%s5369_s17 + $0x40] ss:$16 sps:$4 sm:$0xff]   ;;  %v5777_v51 = vld [vmem:[%s5369_s17 + $0x48] ss:$16 sps:$4 sm:$0xff]  }
 0x1e9   : > { %1431 = vmatpush1.bf16.msra.mxu0 %v5635_v57  ;;  %7078 = vst [vmem:[#allocation34_spill] sm:$0xff] %v5774_v50  ;;  %7079 = vst [vmem:[#allocation35_spill] sm:$0xff] %v5777_v51  ;;  %v5782_v28 = vld [vmem:[%s5369_s17 + $0x24] ss:$16 sps:$4 sm:$0xff]   ;;  %v5785_v29 = vld [vmem:[%s5369_s17 + $0x2c] ss:$16 sps:$4 sm:$0xff]  }
 0x1ea   : > { %1432 = vmatprep.subr.bf16.mxu0 %v5639_v58  ;;  %1474 = vmatpush1.bf16.msra.mxu1 %v5656_v63  ;;  %7080 = vst [vmem:[#allocation36_spill] sm:$0xff] %v5782_v28  ;;  %7081 = vst [vmem:[#allocation37_spill] sm:$0xff] %v5785_v29  ;;  %v5790_v30 = vld [vmem:[%s5369_s17 + $0x20] ss:$16 sps:$4 sm:$0xff]   ;;  %v5793_v31 = vld [vmem:[%s5369_s17 + $0x28] ss:$16 sps:$4 sm:$0xff]  }
 0x1eb   : > { %1475 = vmatprep.subr.bf16.mxu1 %v5660_v0  ;;  %7082 = vst [vmem:[#allocation38_spill] sm:$0xff] %v5790_v30  ;;  %7083 = vst [vmem:[#allocation39_spill] sm:$0xff] %v5793_v31  ;;  %v5798_v2 = vld [vmem:[%s5369_s17 + $0x4] ss:$16 sps:$4 sm:$0xff]   ;;  %v5801_v3 = vld [vmem:[%s5369_s17 + $0xc] ss:$16 sps:$4 sm:$0xff]  }
 0x1ec   : > { %7084 = vst [vmem:[#allocation40_spill] sm:$0xff] %v5798_v2  ;;  %7085 = vst [vmem:[#allocation41_spill] sm:$0xff] %v5801_v3 }
 0x1ed   : > { %1433 = vmatpush1.bf16.msra.mxu0 %v5646_v60 }
 0x1ee   : > { %1434 = vmatprep.subr.bf16.mxu0 %v5653_v62  ;;  %1476 = vmatpush1.bf16.msra.mxu1 %v5669_v4 }
 0x1ef   : > { %1477 = vmatprep.subr.bf16.mxu1 %v5673_v5 }
 0x1f1   : > { %1435 = vmatpush1.bf16.msra.mxu0 %v5665_v1 }
 0x1f2   : > { %1478 = vmatpush1.bf16.msra.mxu1 %v5679_v7  ;;  %1753 = vmatprep.subr.bf16.mxu0 %v5688_v8 }
 0x1f3   : > { %1796 = vmatprep.subr.bf16.mxu1 %v5691_v9 }
 0x1f4   : > { %1453 = vmatmul.mubr.bf16.vlgmr.msra.gmra.mxu0 %v1259_v6 }
 0x1f5   : > { %1785 = vmatprep.mubr.bf16.mxu0 %v6891_v34  ;;  %1496 = vmatmul.mubr.bf16.vlgmr.msra.gmra.mxu1 %v1259_v6  ;;  %v5806_v6 = vld [vmem:[%s5369_s17] ss:$16 sps:$4 sm:$0xff]  }
 0x1f6   : > { %1828 = vmatprep.mubr.bf16.mxu1 %v6891_v34  ;;  %1754 = vmatpush1.bf16.msra.mxu0 %v5694_v10  ;;  %7086 = vst [vmem:[#allocation42_spill] sm:$0xff] %v5806_v6  ;;  %v5809_v34 = vld [vmem:[%s5369_s17 + $0x8] ss:$16 sps:$4 sm:$0xff]  }
 0x1f7   : > { %1797 = vmatpush1.bf16.msra.mxu1 %v5697_v11  ;;  %1755 = vmatprep.subr.bf16.mxu0 %v5704_v12  ;;  %7087 = vst [vmem:[#allocation43_spill] sm:$0xff] %v5809_v34 }
 0x1f8   : > { %1798 = vmatprep.subr.bf16.mxu1 %v5707_v13 }
 0x1fa   : > { %1756 = vmatpush1.bf16.msra.mxu0 %v5710_v14 }
 0x1fb   : > { %1799 = vmatpush1.bf16.msra.mxu1 %v5713_v15  ;;  %1757 = vmatprep.subr.bf16.mxu0 %v5720_v16 }
 0x1fc   : > { %1800 = vmatprep.subr.bf16.mxu1 %v5723_v17 }
 0x1fe   : > { %1758 = vmatpush1.bf16.msra.mxu0 %v5726_v18 }
 0x1ff   : > { %1801 = vmatpush1.bf16.msra.mxu1 %v5729_v19  ;;  %1759 = vmatprep.subr.bf16.mxu0 %v5736_v20 }
 0x200   : > { %1802 = vmatprep.subr.bf16.mxu1 %v5739_v21  ;;  %v1250_v21 = vld [vmem:[#allocation2 + $0x18] sm:$0xff] }
 0x201   : > { %v1257_v20 = vunpack.c.l.bf16 %v1250_v21 }
 0x202   : > { %1760 = vmatpush1.bf16.msra.mxu0 %v5742_v22 }
 0x203   : > { %1803 = vmatpush1.bf16.msra.mxu1 %v5745_v23  ;;  %1761 = vmatprep.subr.bf16.mxu0 %v5752_v24  ;;  %v1248_v23 = vld [vmem:[#allocation2] sm:$0xff] }
 0x204   : > { %1804 = vmatprep.subr.bf16.mxu1 %v5755_v25 }
 0x206   : > { %1762 = vmatpush1.bf16.msra.mxu0 %v5758_v26 }
 0x207   : > { %1805 = vmatpush1.bf16.msra.mxu1 %v5761_v27  ;;  %1763 = vmatprep.subr.bf16.mxu0 %v5764_v48 }
 0x208   : > { %1806 = vmatprep.subr.bf16.mxu1 %v5769_v49 }
 0x20a   : > { %1764 = vmatpush1.bf16.msra.mxu0 %v5774_v50 }
 0x20b   : > { %1807 = vmatpush1.bf16.msra.mxu1 %v5777_v51  ;;  %1765 = vmatprep.subr.bf16.mxu0 %v5782_v28  ;;  %v1249_v28 = vld [vmem:[#allocation2 + $0xd8] sm:$0xff] }
 0x20c   : > { %1808 = vmatprep.subr.bf16.mxu1 %v5785_v29  ;;  %v1247_v29 = vld [vmem:[#allocation2 + $0xb0] sm:$0xff]  ;;  %v1255_v49 = vunpack.c.l.bf16 %v1249_v28  ;;  %v1256_v26 = vunpack.c.h.bf16 %v1249_v28 }
 0x20e   : > { %1766 = vmatpush1.bf16.msra.mxu0 %v5790_v30  ;;  %v1251_v30 = vunpack.c.l.bf16 %v1247_v29 }
 0x20f   : > { %1809 = vmatpush1.bf16.msra.mxu1 %v5793_v31  ;;  %1767 = vmatprep.subr.bf16.mxu0 %v5798_v2  ;;  %v1252_v31 = vunpack.c.h.bf16 %v1247_v29 }
 0x210   : > { %1810 = vmatprep.subr.bf16.mxu1 %v5801_v3 }
 0x212   : > { %1768 = vmatpush1.bf16.msra.mxu0 %v5806_v6 }
 0x213   : > { %1811 = vmatpush1.bf16.msra.mxu1 %v5809_v34  ;;  %1880 = vmatprep.subr.bf16.mxu0 %v5556_v32 }
 0x214   : > { %1923 = vmatprep.subr.bf16.mxu1 %v5576_v38 }
 0x2b4   : > { %v1454_v51 = vpop.f32.mrf.mxu0 }
 0x2b5   : > { %v1506_v50 = vadd.f32 %v1454_v51, %v1251_v30  ;;  %v1497_v34 = vpop.f32.mrf.mxu1  ;;  %v1254_v30 = vunpack.c.h.bf16 %v1248_v23 }
 0x2b6   : > { %v1456_v48 = vpop.f32.mrf.mxu0 }
 0x2b7   : > { %v4071_v27 = vmul.f32 -1.442695, %v1506_v50  ;;  %v1507_v2 = vadd.f32 %v1456_v48, %v1252_v31  ;;  %v1499_v22 = vpop.f32.mrf.mxu1  ;;  %v1253_v50 = vunpack.c.l.bf16 %v1248_v23  ;;  %v1258_v48 = vunpack.c.h.bf16 %v1250_v21  ;;  %v1245_v21 = vld [vmem:[#allocation4] sm:$0xff] }
 0x2b8   : > { %v1458_v3 = vpop.f32.mrf.mxu0  ;;  %v1509_v31 = vadd.f32 %v1499_v22, %v1254_v30 }
 0x2b9   : > { %4575 = vpow2.f32 %v4071_v27  ;;  %v4073_v6 = vmul.f32 -1.442695, %v1507_v2  ;;  %v1510_v25 = vadd.f32 %v1458_v3, %v1255_v49  ;;  %v1501_v51 = vpop.f32.mrf.mxu1  ;;  %v1508_v27 = vadd.f32 %v1497_v34, %v1253_v50 }
 0x2ba   : > { %v1460_v24 = vpop.f32.mrf.mxu0  ;;  %v4075_v3 = vmul.f32 -1.442695, %v1509_v31 }
 0x2bb   : > { %4577 = vpow2.f32 %v4073_v6  ;;  %v4072_v32 = vmul.f32 -1.442695, %v1510_v25  ;;  %v1511_v38 = vadd.f32 %v1460_v24, %v1256_v26  ;;  %v1503_v28 = vpop.f32.mrf.mxu1  ;;  %v1512_v26 = vadd.f32 %v1501_v51, %v1257_v20 }
 0x2bc   : > { %v1513_v2 = vadd.f32 %v1503_v28, %v1258_v48 }
 0x2bd   : > { %4579 = vpow2.f32 %v4072_v32  ;;  %v4074_v29 = vmul.f32 -1.442695, %v1511_v38 }
 0x2be   : > { %v4076_v24 = vmul.f32 -1.442695, %v1513_v2 }
 0x2bf   : > { %4581 = vpow2.f32 %v4074_v29 }
 0x2c0   : > { %4583 = vtanh.f32 %v1508_v27 }
 0x2c6   : > { %v4576_v49 = vpop.eup %4575 }
 0x2c7   : > { %v1520_v6 = vadd.f32 1.0, %v4576_v49 }
 0x2c8   : > { %v4578_v25 = vpop.eup %4577 }
 0x2c9   : > { %4585 = vrcp.f32 %v1520_v6  ;;  %v1532_v32 = vadd.f32 1.0, %v4578_v25 }
 0x2ca   : > { %v4580_v38 = vpop.eup %4579  ;;  %4587 = vpow2.f32 %v4075_v3  ;;  %v1246_v3 = vld [vmem:[#allocation4 + $0x8] sm:$0xff] }
 0x2cb   : > { %4589 = vrcp.f32 %v1532_v32  ;;  %v1521_v29 = vadd.f32 1.0, %v4580_v38 }
 0x2cc   : > { %v4582_v23 = vpop.eup %4581  ;;  %4591 = vpow2.f32 %v4076_v24 }
 0x2cd   : > { %4593 = vrcp.f32 %v1521_v29  ;;  %v1533_v22 = vadd.f32 1.0, %v4582_v23  ;;  %v4584_v34 = vpop.eup %4583 }
 0x2ce   : > { %4595 = vtanh.f32 %v1512_v26 }
 0x2cf   : > { %4597 = vrcp.f32 %v1533_v22 }
 0x2d6   : > { %v4586_v30 = vpop.eup %4585 }
 0x2d7   : > { %v4588_v50 = vpop.eup %4587  ;;  %v1554_v27 = vmul.f32 %v4586_v30, %v4584_v34 }
 0x2d8   : > { %v4590_v48 = vpop.eup %4589  ;;  %v1546_v49 = vadd.f32 1.0, %v4588_v50  ;;  %v7089_v50 = vmov 0  }
 0x2d9   : > { %v4592_v28 = vpop.eup %4591  ;;  %v1552_v31 = vmul.f32 %v4590_v48, %v1245_v21  ;;  %v7090_v48 = vld [vmem:[#allocation24_spill] sm:$0xff] }
 0x2da   : > { %v4594_v2 = vpop.eup %4593  ;;  %v1547_v25 = vadd.f32 1.0, %v4592_v28  ;;  %4599 = vrcp.f32 %v1546_v49  ;;  %v7091_v28 = vld [vmem:[#allocation25_spill] sm:$0xff] }
 0x2db   : > { %v4596_v20 = vpop.eup %4595  ;;  %v5817_v51 = vadd.f32 %v1554_v27, %v1552_v31  ;;  %v7092_v31 = vld [vmem:[#allocation26_spill] sm:$0xff]  ;;  %v7093_v27 = vld [vmem:[#allocation27_spill] sm:$0xff]  ;;  %v7095_v49 = vld [vmem:[#allocation29_spill] sm:$0xff] }
 0x2dc   : > { %v4598_v6 = vpop.eup %4597  ;;  %v1555_v32 = vmul.f32 %v4596_v20, %v4594_v2  ;;  %v7094_v2 = vld [vmem:[#allocation28_spill] sm:$0xff]  ;;  %v7097_v20 = vld [vmem:[#allocation31_spill] sm:$0xff] }
 0x2dd   : > { %v1553_v24 = vmul.f32 %v4598_v6, %v1246_v3  ;;  %4601 = vtanh.f32 %v5817_v51  ;;  %v7096_v3 = vld [vmem:[#allocation30_spill] sm:$0xff]  ;;  %v7098_v6 = vld [vmem:[#allocation32_spill] sm:$0xff] }
 0x2de   : > { %4603 = vrcp.f32 %v1547_v25  ;;  %v7099_v25 = vld [vmem:[#allocation33_spill] sm:$0xff] }
 0x2df   : > { %v5820_v38 = vadd.f32 %v1555_v32, %v1553_v24  ;;  %v7100_v24 = vld [vmem:[#allocation34_spill] sm:$0xff]  ;;  %v7101_v32 = vld [vmem:[#allocation35_spill] sm:$0xff] }
 0x2e1   : > { %4605 = vtanh.f32 %v5820_v38 }
 0x2e7   : > { %v4600_v26 = vpop.eup %4599 }
 0x2ea   : > { %v4602_v29 = vpop.eup %4601 }
 0x2eb   : > { %v4604_v23 = vpop.eup %4603  ;;  %v1560_v34 = vmul.f32 %v4602_v29, %v4600_v26  ;;  %v7102_v26 = vld [vmem:[#allocation36_spill] sm:$0xff]  ;;  %v7103_v29 = vld [vmem:[#allocation37_spill] sm:$0xff] }
 0x2ee   : > { %v4606_v22 = vpop.eup %4605 }
 0x2ef   : > { %v1561_v30 = vmul.f32 %v4606_v22, %v4604_v23  ;;  %v7104_v23 = vld [vmem:[#allocation38_spill] sm:$0xff]  ;;  %v7105_v22 = vld [vmem:[#allocation39_spill] sm:$0xff] }
 0x2f1   : > { %v1562_v21 = vpack.c.bf16 %v1561_v30, %v1560_v34  ;;  %v7106_v34 = vld [vmem:[#allocation40_spill] sm:$0xff]  ;;  %v7107_v30 = vld [vmem:[#allocation41_spill] sm:$0xff] }
 0x2f3   : > { %4303 = vst [vmem:[%s7088_s13] sm:$0xff] %v1562_v21   ;;  %1786 = vmatmul.mubr.bf16.vlgmr.msra.gmra.mxu0 %v1562_v21  ;;  %1829 = vmatmul.mubr.bf16.vlgmr.msra.gmra.mxu1 %v1562_v21 }
 0x2f4   : > { %1881 = vmatpush1.bf16.msra.mxu0 %v5559_v33  ;;  %1924 = vmatpush1.bf16.msra.mxu1 %v5579_v39 }
 0x2f5   : > { %1882 = vmatprep.subr.bf16.mxu0 %v5565_v35  ;;  %1925 = vmatprep.subr.bf16.mxu1 %v5592_v42 }
 0x2f6   : > { %1912 = vmatprep.mubr.bf16.mxu0 %v7089_v50  ;;  %1955 = vmatprep.mubr.bf16.mxu1 %v7089_v50 }
 0x2f8   : > { %1883 = vmatpush1.bf16.msra.mxu0 %v5569_v36  ;;  %1926 = vmatpush1.bf16.msra.mxu1 %v5595_v43 }
 0x2f9   : > { %1884 = vmatprep.subr.bf16.mxu0 %v5573_v37  ;;  %1927 = vmatprep.subr.bf16.mxu1 %v5606_v46 }
 0x2fc   : > { %1885 = vmatpush1.bf16.msra.mxu0 %v5583_v40  ;;  %1928 = vmatpush1.bf16.msra.mxu1 %v5611_v47 }
 0x2fd   : > { %1886 = vmatprep.subr.bf16.mxu0 %v5588_v41  ;;  %1929 = vmatprep.subr.bf16.mxu1 %v5615_v52 }
 0x300   : > { %1887 = vmatpush1.bf16.msra.mxu0 %v5600_v44  ;;  %1930 = vmatpush1.bf16.msra.mxu1 %v5627_v55 }
 0x301   : > { %1888 = vmatprep.subr.bf16.mxu0 %v5603_v45  ;;  %1931 = vmatprep.subr.bf16.mxu1 %v5631_v56 }
 0x304   : > { %1889 = vmatpush1.bf16.msra.mxu0 %v5619_v53  ;;  %1932 = vmatpush1.bf16.msra.mxu1 %v5643_v59 }
 0x305   : > { %1890 = vmatprep.subr.bf16.mxu0 %v5623_v54  ;;  %1933 = vmatprep.subr.bf16.mxu1 %v5650_v61 }
 0x308   : > { %1891 = vmatpush1.bf16.msra.mxu0 %v5635_v57  ;;  %1934 = vmatpush1.bf16.msra.mxu1 %v5656_v63 }
 0x309   : > { %1892 = vmatprep.subr.bf16.mxu0 %v5639_v58  ;;  %1935 = vmatprep.subr.bf16.mxu1 %v5660_v0 }
 0x30c   : > { %1893 = vmatpush1.bf16.msra.mxu0 %v5646_v60  ;;  %1936 = vmatpush1.bf16.msra.mxu1 %v5669_v4 }
 0x30d   : > { %1894 = vmatprep.subr.bf16.mxu0 %v5653_v62  ;;  %1937 = vmatprep.subr.bf16.mxu1 %v5673_v5 }
 0x310   : > { %1895 = vmatpush1.bf16.msra.mxu0 %v5665_v1  ;;  %1938 = vmatpush1.bf16.msra.mxu1 %v5679_v7 }
 0x311   : > { %2033 = vmatprep.subr.bf16.mxu0 %v5688_v8  ;;  %2076 = vmatprep.subr.bf16.mxu1 %v5691_v9 }
 0x313   : > { %1913 = vmatmul.mubr.bf16.vlgmr.msra.gmra.mxu0 %v1562_v21  ;;  %1956 = vmatmul.mubr.bf16.vlgmr.msra.gmra.mxu1 %v1562_v21  ;;  %v7108_v21 = vld [vmem:[#allocation42_spill] sm:$0xff] }
 0x314   : > { %2034 = vmatpush1.bf16.msra.mxu0 %v5694_v10  ;;  %2077 = vmatpush1.bf16.msra.mxu1 %v5697_v11 }
 0x315   : > { %2035 = vmatprep.subr.bf16.mxu0 %v5704_v12  ;;  %2078 = vmatprep.subr.bf16.mxu1 %v5707_v13 }
 0x316   : > { %2065 = vmatprep.mubr.bf16.mxu0 %v7089_v50  ;;  %2108 = vmatprep.mubr.bf16.mxu1 %v7089_v50 }
 0x318   : > { %2036 = vmatpush1.bf16.msra.mxu0 %v5710_v14  ;;  %2079 = vmatpush1.bf16.msra.mxu1 %v5713_v15 }
 0x319   : > { %2037 = vmatprep.subr.bf16.mxu0 %v5720_v16  ;;  %2080 = vmatprep.subr.bf16.mxu1 %v5723_v17 }
 0x31c   : > { %2038 = vmatpush1.bf16.msra.mxu0 %v5726_v18  ;;  %2081 = vmatpush1.bf16.msra.mxu1 %v5729_v19 }
 0x31d   : > { %2039 = vmatprep.subr.bf16.mxu0 %v7090_v48  ;;  %2082 = vmatprep.subr.bf16.mxu1 %v7091_v28 }
 0x320   : > { %2040 = vmatpush1.bf16.msra.mxu0 %v7092_v31  ;;  %2083 = vmatpush1.bf16.msra.mxu1 %v7093_v27 }
 0x321   : > { %2041 = vmatprep.subr.bf16.mxu0 %v7094_v2  ;;  %2084 = vmatprep.subr.bf16.mxu1 %v7095_v49  ;;  %v1242_v49 = vld [vmem:[%s5383_s24] sm:$0xf] }
 0x324   : > { %2042 = vmatpush1.bf16.msra.mxu0 %v7096_v3  ;;  %2085 = vmatpush1.bf16.msra.mxu1 %v7097_v20 }
 0x325   : > { %2043 = vmatprep.subr.bf16.mxu0 %v7098_v6  ;;  %2086 = vmatprep.subr.bf16.mxu1 %v7099_v25  ;;  %v7109_v25 = vld [vmem:[#allocation43_spill] sm:$0xff] }
 0x328   : > { %2044 = vmatpush1.bf16.msra.mxu0 %v7100_v24  ;;  %2087 = vmatpush1.bf16.msra.mxu1 %v7101_v32  ;;  %v7110_v24 = vld [vmem:[#allocation18_spill] sm:$0xff]  ;;  %v7111_v32 = vld [vmem:[#allocation19_spill] sm:$0xff] }
 0x329   : > { %2045 = vmatprep.subr.bf16.mxu0 %v7102_v26  ;;  %2088 = vmatprep.subr.bf16.mxu1 %v7103_v29  ;;  %v1573_v26 = vlaneseq }
 0x32b   : > { %v1574_v6 = vshrl.u32 %v1573_v26, 7 }
 0x32c   : > { %2046 = vmatpush1.bf16.msra.mxu0 %v7104_v23  ;;  %2089 = vmatpush1.bf16.msra.mxu1 %v7105_v22 }
 0x32d   : > { %2047 = vmatprep.subr.bf16.mxu0 %v7106_v34  ;;  %2090 = vmatprep.subr.bf16.mxu1 %v7107_v30  ;;  %v1575_v20 = vsub.s32 0, %v1574_v6  ;;  %v1583_v29 = vsub.s32 2, %v1574_v6  ;;  %v1579_v3 = vsub.s32 1, %v1574_v6  ;;  %v1587_v23 = vsub.s32 3, %v1574_v6 }
 0x32f   : > { %v5895_v22 = vrot.slane %v1242_v49, %v1575_v20  ;;  %v5897_v34 = vrot.slane %v1242_v49, %v1583_v29  ;;  %v5899_v30 = vrot.slane %v1242_v49, %v1579_v3 }
 0x330   : > { %2048 = vmatpush1.bf16.msra.mxu0 %v7108_v21  ;;  %2091 = vmatpush1.bf16.msra.mxu1 %v7109_v25  ;;  %v5901_v21 = vrot.slane %v1242_v49, %v1587_v23 }
 0x331   : > { %2160 = vmatprep.subr.bf16.mxu0 %v7110_v24  ;;  %2203 = vmatprep.subr.bf16.mxu1 %v7111_v32  ;;  %7112 = vst [vmem:[#allocation18_spill] sm:$0xff] %v5895_v22  ;;  %7113 = vst [vmem:[#allocation19_spill] sm:$0xff] %v5897_v34 }
 0x332   : > { %7114 = vst [vmem:[#allocation44_spill] sm:$0xff] %v5899_v30  ;;  %7115 = vst [vmem:[#allocation45_spill] sm:$0xff] %v5901_v21 }
 0x3b3   : > { %v1787_v25 = vpop.f32.mrf.mxu0  ;;  %v1830_v2 = vpop.f32.mrf.mxu1 }
 0x3b4   : > { %v1788_v32 = vadd.f32 %v1787_v25, %v5895_v22  ;;  %v1831_v26 = vadd.f32 %v1830_v2, %v5897_v34 }
 0x3b5   : > { %v1789_v24 = vpop.f32.mrf.mxu0  ;;  %v1832_v27 = vpop.f32.mrf.mxu1 }
 0x3b6   : > { %v1790_v31 = vadd.f32 %v1789_v24, %v5899_v30  ;;  %v1833_v6 = vadd.f32 %v1832_v27, %v5901_v21  ;;  %v1868_v27 = vld [vmem:[#allocation2 + $0x50] sm:$0xff] }
 0x3b7   : > { %v1791_v20 = vpop.f32.mrf.mxu0  ;;  %v1834_v28 = vpop.f32.mrf.mxu1  ;;  %v1872_v17 = vunpack.c.l.bf16 %v1868_v27 }
 0x3b8   : > { %v4253_v29 = vpack.c.bf16 %v1790_v31, %v1788_v32  ;;  %v4254_v48 = vpack.c.bf16 %v1833_v6, %v1831_v26  ;;  %v1792_v49 = vadd.f32 %v1791_v20, %v5895_v22  ;;  %v1835_v23 = vadd.f32 %v1834_v28, %v5897_v34  ;;  %v1870_v31 = vld [vmem:[#allocation2 + $0x30] sm:$0xff] }
 0x3b9   : > { %v1793_v3 = vpop.f32.mrf.mxu0  ;;  %v1836_v19 = vpop.f32.mrf.mxu1  ;;  %v1873_v32 = vunpack.c.h.bf16 %v1868_v27  ;;  %v1877_v28 = vunpack.c.h.bf16 %v1870_v31 }
 0x3ba   : > { %1863 = vst [vmem:[#allocation2 + $0xb0] sm:$0xff] %v4253_v29  ;;  %1864 = vst [vmem:[#allocation2] sm:$0xff] %v4254_v48  ;;  %v1794_v25 = vadd.f32 %v1793_v3, %v5899_v30  ;;  %v1837_v2 = vadd.f32 %v1836_v19, %v5901_v21  ;;  %v1876_v48 = vunpack.c.l.bf16 %v1870_v31 }
 0x3bc   : > { %v4255_v18 = vpack.c.bf16 %v1794_v25, %v1792_v49  ;;  %v4256_v24 = vpack.c.bf16 %v1837_v2, %v1835_v23  ;;  %v1869_v2 = vld [vmem:[#allocation2 + $0x68] sm:$0xff] }
 0x3bd   : > { %v1874_v21 = vunpack.c.l.bf16 %v1869_v2 }
 0x3be   : > { %1865 = vst [vmem:[#allocation2 + $0xd8] sm:$0xff] %v4255_v18  ;;  %1866 = vst [vmem:[#allocation2 + $0x18] sm:$0xff] %v4256_v24 }
 0x3d3   : > { %v1914_v26 = vpop.f32.mrf.mxu0  ;;  %v1957_v29 = vpop.f32.mrf.mxu1 }
 0x3d4   : > { %v1966_v6 = vadd.f32 %v1914_v26, %v1872_v17  ;;  %v1875_v17 = vunpack.c.h.bf16 %v1869_v2  ;;  %v1871_v26 = vld [vmem:[#allocation2 + $0x48] sm:$0xff] }
 0x3d5   : > { %v1916_v16 = vpop.f32.mrf.mxu0  ;;  %v1959_v19 = vpop.f32.mrf.mxu1 }
 0x3d6   : > { %v4115_v20 = vmul.f32 -1.442695, %v1966_v6  ;;  %v1967_v22 = vadd.f32 %v1916_v16, %v1873_v32  ;;  %v1879_v6 = vunpack.c.h.bf16 %v1871_v26  ;;  %v1969_v31 = vadd.f32 %v1959_v19, %v1875_v17 }
 0x3d7   : > { %v1918_v34 = vpop.f32.mrf.mxu0  ;;  %v1961_v24 = vpop.f32.mrf.mxu1  ;;  %v1968_v32 = vadd.f32 %v1957_v29, %v1874_v21 }
 0x3d8   : > { %4607 = vpow2.f32 %v4115_v20  ;;  %v4117_v3 = vmul.f32 -1.442695, %v1967_v22  ;;  %v1970_v49 = vadd.f32 %v1918_v34, %v1876_v48  ;;  %v4119_v30 = vmul.f32 -1.442695, %v1969_v31 }
 0x3d9   : > { %v1920_v23 = vpop.f32.mrf.mxu0  ;;  %v1963_v16 = vpop.f32.mrf.mxu1  ;;  %v1878_v34 = vunpack.c.l.bf16 %v1871_v26 }
 0x3da   : > { %4609 = vpow2.f32 %v4117_v3  ;;  %v4116_v18 = vmul.f32 -1.442695, %v1970_v49  ;;  %v1971_v25 = vadd.f32 %v1920_v23, %v1877_v28  ;;  %v1973_v20 = vadd.f32 %v1963_v16, %v1879_v6 }
 0x3dc   : > { %4611 = vpow2.f32 %v4116_v18  ;;  %v4118_v27 = vmul.f32 -1.442695, %v1971_v25  ;;  %v4120_v28 = vmul.f32 -1.442695, %v1973_v20  ;;  %v1972_v18 = vadd.f32 %v1961_v24, %v1878_v34 }
 0x3de   : > { %4613 = vpow2.f32 %v4118_v27 }
 0x3df   : > { %4615 = vtanh.f32 %v1968_v32 }
 0x3e5   : > { %v4608_v22 = vpop.eup %4607 }
 0x3e6   : > { %v1980_v48 = vadd.f32 1.0, %v4608_v22 }
 0x3e7   : > { %v4610_v3 = vpop.eup %4609 }
 0x3e8   : > { %4617 = vrcp.f32 %v1980_v48  ;;  %v1992_v49 = vadd.f32 1.0, %v4610_v3 }
 0x3e9   : > { %v4612_v23 = vpop.eup %4611  ;;  %4619 = vpow2.f32 %v4119_v30 }
 0x3ea   : > { %4621 = vrcp.f32 %v1992_v49  ;;  %v1981_v25 = vadd.f32 1.0, %v4612_v23 }
 0x3eb   : > { %v4614_v2 = vpop.eup %4613  ;;  %4623 = vpow2.f32 %v4120_v28 }
 0x3ec   : > { %4625 = vrcp.f32 %v1981_v25  ;;  %v1993_v19 = vadd.f32 1.0, %v4614_v2  ;;  %v4616_v21 = vpop.eup %4615 }
 0x3ed   : > { %4627 = vtanh.f32 %v1972_v18 }
 0x3ee   : > { %4629 = vrcp.f32 %v1993_v19 }
 0x3f5   : > { %v4618_v29 = vpop.eup %4617 }
 0x3f6   : > { %v4620_v27 = vpop.eup %4619  ;;  %v2014_v6 = vmul.f32 %v4618_v29, %v4616_v21 }
 0x3f7   : > { %v4622_v17 = vpop.eup %4621  ;;  %v2006_v32 = vadd.f32 1.0, %v4620_v27 }
 0x3f8   : > { %v4624_v26 = vpop.eup %4623  ;;  %v2012_v16 = vmul.f32 %v4622_v17, %v5817_v51 }
 0x3f9   : > { %v4626_v31 = vpop.eup %4625  ;;  %v2007_v22 = vadd.f32 1.0, %v4624_v26  ;;  %4631 = vrcp.f32 %v2006_v32 }
 0x3fa   : > { %v4628_v30 = vpop.eup %4627  ;;  %v5912_v24 = vadd.f32 %v2014_v6, %v2012_v16 }
 0x3fb   : > { %v4630_v20 = vpop.eup %4629  ;;  %v2015_v34 = vmul.f32 %v4628_v30, %v4626_v31 }
 0x3fc   : > { %v2013_v48 = vmul.f32 %v4630_v20, %v5820_v38  ;;  %4633 = vtanh.f32 %v5912_v24  ;;  %v2148_v20 = vld [vmem:[#allocation2 + $0x80] sm:$0xff] }
 0x3fd   : > { %4635 = vrcp.f32 %v2007_v22  ;;  %v2152_v22 = vunpack.c.l.bf16 %v2148_v20 }
 0x3fe   : > { %v5916_v3 = vadd.f32 %v2015_v34, %v2013_v48  ;;  %v2150_v34 = vld [vmem:[#allocation2 + $0xe8] sm:$0xff]  ;;  %v2153_v48 = vunpack.c.h.bf16 %v2148_v20 }
 0x400   : > { %4637 = vtanh.f32 %v5916_v3 }
 0x406   : > { %v4632_v28 = vpop.eup %4631 }
 0x409   : > { %v4634_v51 = vpop.eup %4633 }
 0x40a   : > { %v4636_v49 = vpop.eup %4635  ;;  %v2020_v18 = vmul.f32 %v4634_v51, %v4632_v28 }
 0x40d   : > { %v4638_v23 = vpop.eup %4637 }
 0x40e   : > { %v2021_v25 = vmul.f32 %v4638_v23, %v4636_v49  ;;  %v2156_v23 = vunpack.c.l.bf16 %v2150_v34 }
 0x410   : > { %v2022_v2 = vpack.c.bf16 %v2021_v25, %v2020_v18 }
 0x412   : > { %4339 = vst [vmem:[%s7088_s13 + $0x8] sm:$0xff] %v2022_v2   ;;  %2066 = vmatmul.mubr.bf16.vlgmr.msra.gmra.mxu0 %v2022_v2  ;;  %2109 = vmatmul.mubr.bf16.vlgmr.msra.gmra.mxu1 %v2022_v2 }
 0x413   : > { %2161 = vmatpush1.bf16.msra.mxu0 %v5559_v33  ;;  %2204 = vmatpush1.bf16.msra.mxu1 %v5579_v39  ;;  %v7116_v33 = vld [vmem:[#allocation20_spill] sm:$0xff] }
 0x414   : > { %2162 = vmatprep.subr.bf16.mxu0 %v5565_v35  ;;  %2205 = vmatprep.subr.bf16.mxu1 %v5592_v42  ;;  %v7117_v35 = vld [vmem:[#allocation21_spill] sm:$0xff]  ;;  %v7120_v39 = vld [vmem:[#allocation24_spill] sm:$0xff]  ;;  %v7123_v42 = vld [vmem:[#allocation27_spill] sm:$0xff] }
 0x415   : > { %2192 = vmatprep.mubr.bf16.mxu0 %v7089_v50  ;;  %2235 = vmatprep.mubr.bf16.mxu1 %v7089_v50 }
 0x417   : > { %2163 = vmatpush1.bf16.msra.mxu0 %v5569_v36  ;;  %2206 = vmatpush1.bf16.msra.mxu1 %v5595_v43  ;;  %v7118_v36 = vld [vmem:[#allocation22_spill] sm:$0xff]  ;;  %v7124_v43 = vld [vmem:[#allocation28_spill] sm:$0xff] }
 0x418   : > { %2164 = vmatprep.subr.bf16.mxu0 %v5573_v37  ;;  %2207 = vmatprep.subr.bf16.mxu1 %v5606_v46  ;;  %v7119_v37 = vld [vmem:[#allocation23_spill] sm:$0xff] }
 0x419   : > { %v7127_v46 = vld [vmem:[#allocation31_spill] sm:$0xff] }
 0x41b   : > { %2165 = vmatpush1.bf16.msra.mxu0 %v5583_v40  ;;  %2208 = vmatpush1.bf16.msra.mxu1 %v5611_v47  ;;  %v7121_v40 = vld [vmem:[#allocation25_spill] sm:$0xff]  ;;  %v7128_v47 = vld [vmem:[#allocation32_spill] sm:$0xff] }
 0x41c   : > { %2166 = vmatprep.subr.bf16.mxu0 %v5588_v41  ;;  %2209 = vmatprep.subr.bf16.mxu1 %v5615_v52  ;;  %v7122_v41 = vld [vmem:[#allocation26_spill] sm:$0xff]  ;;  %v7129_v52 = vld [vmem:[#allocation33_spill] sm:$0xff] }
 0x41f   : > { %2167 = vmatpush1.bf16.msra.mxu0 %v5600_v44  ;;  %2210 = vmatpush1.bf16.msra.mxu1 %v5627_v55  ;;  %v7125_v44 = vld [vmem:[#allocation29_spill] sm:$0xff]  ;;  %v7132_v55 = vld [vmem:[#allocation36_spill] sm:$0xff] }
 0x420   : > { %2168 = vmatprep.subr.bf16.mxu0 %v5603_v45  ;;  %2211 = vmatprep.subr.bf16.mxu1 %v5631_v56  ;;  %v7126_v45 = vld [vmem:[#allocation30_spill] sm:$0xff]  ;;  %v7133_v56 = vld [vmem:[#allocation37_spill] sm:$0xff] }
 0x423   : > { %2169 = vmatpush1.bf16.msra.mxu0 %v5619_v53  ;;  %2212 = vmatpush1.bf16.msra.mxu1 %v5643_v59  ;;  %v7130_v53 = vld [vmem:[#allocation34_spill] sm:$0xff]  ;;  %v7136_v59 = vld [vmem:[#allocation40_spill] sm:$0xff] }
 0x424   : > { %2170 = vmatprep.subr.bf16.mxu0 %v5623_v54  ;;  %2213 = vmatprep.subr.bf16.mxu1 %v5650_v61  ;;  %v7131_v54 = vld [vmem:[#allocation35_spill] sm:$0xff]  ;;  %v7138_v61 = vld [vmem:[#allocation42_spill] sm:$0xff] }
 0x427   : > { %2171 = vmatpush1.bf16.msra.mxu0 %v5635_v57  ;;  %2214 = vmatpush1.bf16.msra.mxu1 %v5656_v63  ;;  %v7134_v57 = vld [vmem:[#allocation38_spill] sm:$0xff]  ;;  %v5989_v63 = vld [vmem:[%s5377_s11 + $0xe4] ss:$16 sps:$4 sm:$0xff]  }
 0x428   : > { %2172 = vmatprep.subr.bf16.mxu0 %v5639_v58  ;;  %2215 = vmatprep.subr.bf16.mxu1 %v5660_v0  ;;  %v7135_v58 = vld [vmem:[#allocation39_spill] sm:$0xff]  ;;  %7140 = vst [vmem:[#allocation20_spill] sm:$0xff] %v5989_v63  ;;  %v5993_v0 = vld [vmem:[%s5377_s11 + $0xec] ss:$16 sps:$4 sm:$0xff]  }
 0x429   : > { %7141 = vst [vmem:[#allocation21_spill] sm:$0xff] %v5993_v0 }
 0x42b   : > { %2173 = vmatpush1.bf16.msra.mxu0 %v5646_v60  ;;  %2216 = vmatpush1.bf16.msra.mxu1 %v5669_v4  ;;  %v7137_v60 = vld [vmem:[#allocation41_spill] sm:$0xff] }
 0x42c   : > { %2174 = vmatprep.subr.bf16.mxu0 %v5653_v62  ;;  %2217 = vmatprep.subr.bf16.mxu1 %v5673_v5  ;;  %v7139_v62 = vld [vmem:[#allocation43_spill] sm:$0xff] }
 0x42f   : > { %2175 = vmatpush1.bf16.msra.mxu0 %v5665_v1  ;;  %2218 = vmatpush1.bf16.msra.mxu1 %v5679_v7 }
 0x430   : > { %2313 = vmatprep.subr.bf16.mxu0 %v5688_v8  ;;  %2356 = vmatprep.subr.bf16.mxu1 %v5691_v9  ;;  %v7142_v8 = vld [vmem:[#allocation18_spill] sm:$0xff] }
 0x432   : > { %2193 = vmatmul.mubr.bf16.vlgmr.msra.gmra.mxu0 %v2022_v2  ;;  %2236 = vmatmul.mubr.bf16.vlgmr.msra.gmra.mxu1 %v2022_v2 }
 0x433   : > { %2314 = vmatpush1.bf16.msra.mxu0 %v5694_v10  ;;  %2357 = vmatpush1.bf16.msra.mxu1 %v5697_v11  ;;  %v7143_v10 = vld [vmem:[#allocation19_spill] sm:$0xff] }
 0x434   : > { %2315 = vmatprep.subr.bf16.mxu0 %v5704_v12  ;;  %2358 = vmatprep.subr.bf16.mxu1 %v5707_v13  ;;  %v7144_v12 = vld [vmem:[#allocation44_spill] sm:$0xff] }
 0x435   : > { %2345 = vmatprep.mubr.bf16.mxu0 %v7089_v50  ;;  %2388 = vmatprep.mubr.bf16.mxu1 %v7089_v50 }
 0x437   : > { %2316 = vmatpush1.bf16.msra.mxu0 %v5710_v14  ;;  %2359 = vmatpush1.bf16.msra.mxu1 %v5713_v15  ;;  %v7145_v14 = vld [vmem:[#allocation45_spill] sm:$0xff] }
 0x438   : > { %2317 = vmatprep.subr.bf16.mxu0 %v7116_v33  ;;  %2360 = vmatprep.subr.bf16.mxu1 %v7117_v35  ;;  %v2157_v33 = vunpack.c.h.bf16 %v2150_v34 }
 0x43b   : > { %2318 = vmatpush1.bf16.msra.mxu0 %v7118_v36  ;;  %2361 = vmatpush1.bf16.msra.mxu1 %v7119_v37 }
 0x43c   : > { %2319 = vmatprep.subr.bf16.mxu0 %v7120_v39  ;;  %2362 = vmatprep.subr.bf16.mxu1 %v7121_v40 }
 0x43f   : > { %2320 = vmatpush1.bf16.msra.mxu0 %v7122_v41  ;;  %2363 = vmatpush1.bf16.msra.mxu1 %v7123_v42 }
 0x440   : > { %2321 = vmatprep.subr.bf16.mxu0 %v7124_v43  ;;  %2364 = vmatprep.subr.bf16.mxu1 %v7125_v44  ;;  %v2149_v43 = vld [vmem:[#allocation2 + $0x88] sm:$0xff] }
 0x443   : > { %2322 = vmatpush1.bf16.msra.mxu0 %v7126_v45  ;;  %2365 = vmatpush1.bf16.msra.mxu1 %v7127_v46  ;;  %v2155_v46 = vunpack.c.h.bf16 %v2149_v43 }
 0x444   : > { %2323 = vmatprep.subr.bf16.mxu0 %v7128_v47  ;;  %2366 = vmatprep.subr.bf16.mxu1 %v7129_v52  ;;  %v2151_v47 = vld [vmem:[#allocation2 + $0xb8] sm:$0xff]  ;;  %v2154_v52 = vunpack.c.l.bf16 %v2149_v43 }
 0x445   : > { %v6067_v43 = vld [vmem:[%s5377_s11 + $0x8c] ss:$16 sps:$4 sm:$0xff]  }
 0x447   : > { %2324 = vmatpush1.bf16.msra.mxu0 %v7130_v53  ;;  %2367 = vmatpush1.bf16.msra.mxu1 %v7131_v54  ;;  %v2159_v53 = vunpack.c.h.bf16 %v2151_v47 }
 0x448   : > { %2325 = vmatprep.subr.bf16.mxu0 %v7132_v55  ;;  %2368 = vmatprep.subr.bf16.mxu1 %v7133_v56 }
 0x44b   : > { %2326 = vmatpush1.bf16.msra.mxu0 %v7134_v57  ;;  %2369 = vmatpush1.bf16.msra.mxu1 %v7135_v58 }
 0x44c   : > { %2327 = vmatprep.subr.bf16.mxu0 %v7136_v59  ;;  %2370 = vmatprep.subr.bf16.mxu1 %v7137_v60  ;;  %v2158_v60 = vunpack.c.l.bf16 %v2151_v47  ;;  %v6083_v47 = vld [vmem:[%s5377_s11 + $0x6c] ss:$16 sps:$4 sm:$0xff]  }
 0x44f   : > { %2328 = vmatpush1.bf16.msra.mxu0 %v7138_v61  ;;  %2371 = vmatpush1.bf16.msra.mxu1 %v7139_v62 }
 0x450   : > { %2440 = vmatprep.subr.bf16.mxu0 %v5989_v63  ;;  %2483 = vmatprep.subr.bf16.mxu1 %v5993_v0 }
 0x4d2   : > { %v2067_v1 = vpop.f32.mrf.mxu0  ;;  %v2110_v4 = vpop.f32.mrf.mxu1 }
 0x4d3   : > { %v2068_v9 = vadd.f32 %v2067_v1, %v7142_v8  ;;  %v2111_v11 = vadd.f32 %v2110_v4, %v7143_v10 }
 0x4d4   : > { %v2069_v5 = vpop.f32.mrf.mxu0  ;;  %v2112_v7 = vpop.f32.mrf.mxu1 }
 0x4d5   : > { %v2070_v13 = vadd.f32 %v2069_v5, %v7144_v12  ;;  %v2113_v15 = vadd.f32 %v2112_v7, %v7145_v14 }
 0x4d6   : > { %v2071_v38 = vpop.f32.mrf.mxu0  ;;  %v2114_v19 = vpop.f32.mrf.mxu1 }
 0x4d7   : > { %v4259_v21 = vpack.c.bf16 %v2070_v13, %v2068_v9  ;;  %v4260_v29 = vpack.c.bf16 %v2113_v15, %v2111_v11  ;;  %v2072_v26 = vadd.f32 %v2071_v38, %v7142_v8  ;;  %v2115_v6 = vadd.f32 %v2114_v19, %v7143_v10 }
 0x4d8   : > { %v2073_v27 = vpop.f32.mrf.mxu0  ;;  %v2116_v17 = vpop.f32.mrf.mxu1 }
 0x4d9   : > { %2143 = vst [vmem:[#allocation2 + $0x50] sm:$0xff] %v4259_v21  ;;  %2144 = vst [vmem:[#allocation2 + $0x68] sm:$0xff] %v4260_v29  ;;  %v2074_v16 = vadd.f32 %v2073_v27, %v7144_v12  ;;  %v2117_v31 = vadd.f32 %v2116_v17, %v7145_v14 }
 0x4db   : > { %v4261_v32 = vpack.c.bf16 %v2074_v16, %v2072_v26  ;;  %v4262_v30 = vpack.c.bf16 %v2117_v31, %v2115_v6 }
 0x4dd   : > { %2145 = vst [vmem:[#allocation2 + $0x30] sm:$0xff] %v4261_v32  ;;  %2146 = vst [vmem:[#allocation2 + $0x48] sm:$0xff] %v4262_v30 }
 0x4f2   : > { %v2194_v28 = vpop.f32.mrf.mxu0  ;;  %v2237_v49 = vpop.f32.mrf.mxu1 }
 0x4f3   : > { %v2246_v51 = vadd.f32 %v2194_v28, %v2152_v22  ;;  %v2248_v56 = vadd.f32 %v2237_v49, %v2154_v52  ;;  %v6087_v52 = vld [vmem:[%s5377_s11 + $0x60] ss:$16 sps:$4 sm:$0xff]  }
 0x4f4   : > { %v2196_v18 = vpop.f32.mrf.mxu0  ;;  %v2239_v37 = vpop.f32.mrf.mxu1 }
 0x4f5   : > { %v4129_v25 = vmul.f32 -1.442695, %v2246_v51  ;;  %v2247_v2 = vadd.f32 %v2196_v18, %v2153_v48  ;;  %v2249_v55 = vadd.f32 %v2239_v37, %v2155_v46  ;;  %v6021_v18 = vld [vmem:[%s5377_s11 + $0xe0] ss:$16 sps:$4 sm:$0xff]   ;;  %v6047_v37 = vld [vmem:[%s5377_s11 + $0xa4] ss:$16 sps:$4 sm:$0xff]  }
 0x4f6   : > { %v2198_v35 = vpop.f32.mrf.mxu0  ;;  %v2241_v44 = vpop.f32.mrf.mxu1  ;;  %v6079_v46 = vld [vmem:[%s5377_s11 + $0x64] ss:$16 sps:$4 sm:$0xff]  }
 0x4f7   : > { %4639 = vpow2.f32 %v4129_v25  ;;  %v4131_v36 = vmul.f32 -1.442695, %v2247_v2  ;;  %v2250_v39 = vadd.f32 %v2198_v35, %v2156_v23  ;;  %v4133_v59 = vmul.f32 -1.442695, %v2249_v55  ;;  %v6025_v25 = vld [vmem:[%s5377_s11 + $0xe8] ss:$16 sps:$4 sm:$0xff]  }
 0x4f8   : > { %v2200_v40 = vpop.f32.mrf.mxu0  ;;  %v2243_v54 = vpop.f32.mrf.mxu1  ;;  %v2252_v7 = vadd.f32 %v2241_v44, %v2158_v60  ;;  %v6029_v2 = vld [vmem:[%s5377_s11 + $0xc4] ss:$16 sps:$4 sm:$0xff]   ;;  %v6039_v35 = vld [vmem:[%s5377_s11 + $0xc0] ss:$16 sps:$4 sm:$0xff]   ;;  %v6099_v55 = vld [vmem:[%s5377_s11 + $0x4c] ss:$16 sps:$4 sm:$0xff]  }
 0x4f9   : > { %4641 = vpow2.f32 %v4131_v36  ;;  %v4130_v41 = vmul.f32 -1.442695, %v2250_v39  ;;  %v2251_v42 = vadd.f32 %v2200_v40, %v2157_v33  ;;  %v2253_v57 = vadd.f32 %v2243_v54, %v2159_v53  ;;  %v6033_v33 = vld [vmem:[%s5377_s11 + $0xcc] ss:$16 sps:$4 sm:$0xff]   ;;  %v6043_v36 = vld [vmem:[%s5377_s11 + $0xc8] ss:$16 sps:$4 sm:$0xff]  }
 0x4fa   : > { %v6051_v39 = vld [vmem:[%s5377_s11 + $0xac] ss:$16 sps:$4 sm:$0xff]   ;;  %v6055_v40 = vld [vmem:[%s5377_s11 + $0xa0] ss:$16 sps:$4 sm:$0xff]   ;;  %v6091_v53 = vld [vmem:[%s5377_s11 + $0x68] ss:$16 sps:$4 sm:$0xff]  }
 0x4fb   : > { %4643 = vpow2.f32 %v4130_v41  ;;  %v4132_v45 = vmul.f32 -1.442695, %v2251_v42  ;;  %v4134_v1 = vmul.f32 -1.442695, %v2253_v57  ;;  %v6059_v41 = vld [vmem:[%s5377_s11 + $0xa8] ss:$16 sps:$4 sm:$0xff]  }
 0x4fc   : > { %v6063_v42 = vld [vmem:[%s5377_s11 + $0x84] ss:$16 sps:$4 sm:$0xff]   ;;  %v6071_v44 = vld [vmem:[%s5377_s11 + $0x80] ss:$16 sps:$4 sm:$0xff]   ;;  %v6107_v57 = vld [vmem:[%s5377_s11 + $0x48] ss:$16 sps:$4 sm:$0xff]  }
 0x4fd   : > { %4645 = vpow2.f32 %v4132_v45  ;;  %v6075_v45 = vld [vmem:[%s5377_s11 + $0x88] ss:$16 sps:$4 sm:$0xff]   ;;  %v6095_v54 = vld [vmem:[%s5377_s11 + $0x44] ss:$16 sps:$4 sm:$0xff]   ;;  %v6119_v60 = vld [vmem:[%s5377_s11 + $0x20] ss:$16 sps:$4 sm:$0xff]  }
 0x4fe   : > { %4647 = vtanh.f32 %v2248_v56  ;;  %v6103_v56 = vld [vmem:[%s5377_s11 + $0x40] ss:$16 sps:$4 sm:$0xff]  }
 0x504   : > { %v4640_v58 = vpop.eup %4639 }
 0x505   : > { %v2260_v61 = vadd.f32 1.0, %v4640_v58  ;;  %v6111_v58 = vld [vmem:[%s5377_s11 + $0x24] ss:$16 sps:$4 sm:$0xff]  }
 0x506   : > { %v4642_v62 = vpop.eup %4641 }
 0x507   : > { %4649 = vrcp.f32 %v2260_v61  ;;  %v2272_v4 = vadd.f32 1.0, %v4642_v62  ;;  %v6123_v61 = vld [vmem:[%s5377_s11 + $0x28] ss:$16 sps:$4 sm:$0xff]   ;;  %v6127_v62 = vld [vmem:[%s5377_s11 + $0x4] ss:$16 sps:$4 sm:$0xff]  }
 0x508   : > { %v4644_v5 = vpop.eup %4643  ;;  %4651 = vpow2.f32 %v4133_v59  ;;  %v6115_v59 = vld [vmem:[%s5377_s11 + $0x2c] ss:$16 sps:$4 sm:$0xff]  }
 0x509   : > { %4653 = vrcp.f32 %v2272_v4  ;;  %v2261_v9 = vadd.f32 1.0, %v4644_v5  ;;  %v6135_v4 = vld [vmem:[%s5377_s11] ss:$16 sps:$4 sm:$0xff]   ;;  %v6139_v5 = vld [vmem:[%s5377_s11 + $0x8] ss:$16 sps:$4 sm:$0xff]  }
 0x50a   : > { %v4646_v11 = vpop.eup %4645  ;;  %4655 = vpow2.f32 %v4134_v1  ;;  %v6131_v1 = vld [vmem:[%s5377_s11 + $0xc] ss:$16 sps:$4 sm:$0xff]  }
 0x50b   : > { %4657 = vrcp.f32 %v2261_v9  ;;  %v2273_v13 = vadd.f32 1.0, %v4646_v11  ;;  %v4648_v15 = vpop.eup %4647  ;;  %v6147_v9 = vld [vmem:[%s5369_s17 + $0xec] ss:$16 sps:$4 sm:$0xff]   ;;  %v6153_v11 = vld [vmem:[%s5369_s17 + $0xe0] ss:$16 sps:$4 sm:$0xff]  }
 0x50c   : > { %4659 = vtanh.f32 %v2252_v7  ;;  %v6143_v7 = vld [vmem:[%s5369_s17 + $0xe4] ss:$16 sps:$4 sm:$0xff]  }
 0x50d   : > { %4661 = vrcp.f32 %v2273_v13  ;;  %v6157_v13 = vld [vmem:[%s5369_s17 + $0xe8] ss:$16 sps:$4 sm:$0xff]  }
 0x514   : > { %v4650_v38 = vpop.eup %4649 }
 0x515   : > { %v4652_v19 = vpop.eup %4651  ;;  %v2294_v27 = vmul.f32 %v4650_v38, %v4648_v15  ;;  %v6161_v15 = vld [vmem:[%s5369_s17 + $0xc4] ss:$16 sps:$4 sm:$0xff]   ;;  %v6165_v38 = vld [vmem:[%s5369_s17 + $0xcc] ss:$16 sps:$4 sm:$0xff]  }
 0x516   : > { %v4654_v21 = vpop.eup %4653  ;;  %v2286_v6 = vadd.f32 1.0, %v4652_v19  ;;  %v6171_v19 = vld [vmem:[%s5369_s17 + $0xc0] ss:$16 sps:$4 sm:$0xff]  }
 0x517   : > { %v4656_v29 = vpop.eup %4655  ;;  %v2292_v17 = vmul.f32 %v4654_v21, %v5912_v24  ;;  %v6175_v21 = vld [vmem:[%s5369_s17 + $0xc8] ss:$16 sps:$4 sm:$0xff]  }
 0x518   : > { %v4658_v26 = vpop.eup %4657  ;;  %v2287_v30 = vadd.f32 1.0, %v4656_v29  ;;  %4663 = vrcp.f32 %v2286_v6  ;;  %v6179_v29 = vld [vmem:[%s5369_s17 + $0xa4] ss:$16 sps:$4 sm:$0xff]  }
 0x519   : > { %v4660_v16 = vpop.eup %4659  ;;  %v6005_v31 = vadd.f32 %v2294_v27, %v2292_v17  ;;  %7146 = vst [vmem:[#allocation22_spill] sm:$0xff] %v6179_v29  ;;  %v6183_v27 = vld [vmem:[%s5369_s17 + $0xac] ss:$16 sps:$4 sm:$0xff]   ;;  %v6187_v17 = vld [vmem:[%s5369_s17 + $0xa0] ss:$16 sps:$4 sm:$0xff]  }
 0x51a   : > { %v4662_v32 = vpop.eup %4661  ;;  %v2295_v20 = vmul.f32 %v4660_v16, %v4658_v26  ;;  %7147 = vst [vmem:[#allocation23_spill] sm:$0xff] %v6183_v27  ;;  %7148 = vst [vmem:[#allocation24_spill] sm:$0xff] %v6187_v17  ;;  %v6191_v26 = vld [vmem:[%s5369_s17 + $0xa8] ss:$16 sps:$4 sm:$0xff]   ;;  %v6195_v6 = vld [vmem:[%s5369_s17 + $0x84] ss:$16 sps:$4 sm:$0xff]  }
 0x51b   : > { %v2293_v22 = vmul.f32 %v4662_v32, %v5916_v3  ;;  %4665 = vtanh.f32 %v6005_v31  ;;  %7149 = vst [vmem:[#allocation25_spill] sm:$0xff] %v6191_v26  ;;  %7150 = vst [vmem:[#allocation26_spill] sm:$0xff] %v6195_v6  ;;  %v6199_v16 = vld [vmem:[%s5369_s17 + $0x8c] ss:$16 sps:$4 sm:$0xff]   ;;  %v6203_v32 = vld [vmem:[%s5369_s17 + $0x80] ss:$16 sps:$4 sm:$0xff]  }
 0x51c   : > { %4667 = vrcp.f32 %v2287_v30  ;;  %7151 = vst [vmem:[#allocation27_spill] sm:$0xff] %v6199_v16  ;;  %7152 = vst [vmem:[#allocation28_spill] sm:$0xff] %v6203_v32  ;;  %v6207_v30 = vld [vmem:[%s5369_s17 + $0x88] ss:$16 sps:$4 sm:$0xff]  }
 0x51d   : > { %v6009_v34 = vadd.f32 %v2295_v20, %v2293_v22  ;;  %7153 = vst [vmem:[#allocation29_spill] sm:$0xff] %v6207_v30  ;;  %v6211_v20 = vld [vmem:[%s5369_s17 + $0x64] ss:$16 sps:$4 sm:$0xff]   ;;  %v6215_v22 = vld [vmem:[%s5369_s17 + $0x6c] ss:$16 sps:$4 sm:$0xff]  }
 0x51e   : > { %7154 = vst [vmem:[#allocation30_spill] sm:$0xff] %v6211_v20  ;;  %7155 = vst [vmem:[#allocation31_spill] sm:$0xff] %v6215_v22 }
 0x51f   : > { %4669 = vtanh.f32 %v6009_v34 }
 0x525   : > { %v4664_v24 = vpop.eup %4663 }
 0x528   : > { %v4666_v48 = vpop.eup %4665 }
 0x529   : > { %v4668_v28 = vpop.eup %4667  ;;  %v2300_v49 = vmul.f32 %v4666_v48, %v4664_v24  ;;  %v6219_v24 = vld [vmem:[%s5369_s17 + $0x60] ss:$16 sps:$4 sm:$0xff]   ;;  %v6223_v48 = vld [vmem:[%s5369_s17 + $0x68] ss:$16 sps:$4 sm:$0xff]  }
 0x52a   : > { %7156 = vst [vmem:[#allocation32_spill] sm:$0xff] %v6219_v24  ;;  %7157 = vst [vmem:[#allocation33_spill] sm:$0xff] %v6223_v48 }
 0x52c   : > { %v4670_v51 = vpop.eup %4669 }
 0x52d   : > { %v2301_v23 = vmul.f32 %v4670_v51, %v4668_v28  ;;  %v6227_v28 = vld [vmem:[%s5369_s17 + $0x44] ss:$16 sps:$4 sm:$0xff]   ;;  %v6231_v51 = vld [vmem:[%s5369_s17 + $0x4c] ss:$16 sps:$4 sm:$0xff]  }
 0x52e   : > { %7158 = vst [vmem:[#allocation34_spill] sm:$0xff] %v6227_v28  ;;  %7159 = vst [vmem:[#allocation35_spill] sm:$0xff] %v6231_v51 }
 0x52f   : > { %v6012_v3 = vpack.c.bf16 %v2301_v23, %v2300_v49  ;;  %v6235_v49 = vld [vmem:[%s5369_s17 + $0x40] ss:$16 sps:$4 sm:$0xff]   ;;  %v6239_v23 = vld [vmem:[%s5369_s17 + $0x48] ss:$16 sps:$4 sm:$0xff]  }
 0x530   : > { %7160 = vst [vmem:[#allocation36_spill] sm:$0xff] %v6235_v49  ;;  %7161 = vst [vmem:[#allocation37_spill] sm:$0xff] %v6239_v23 }
 0x531   : > { %4340 = vst [vmem:[%s7088_s13 + $0x10] sm:$0xff] %v6012_v3   ;;  %2346 = vmatmul.mubr.bf16.vlgmr.msra.gmra.mxu0 %v6012_v3  ;;  %2389 = vmatmul.mubr.bf16.vlgmr.msra.gmra.mxu1 %v6012_v3 }
 0x532   : > { %2441 = vmatpush1.bf16.msra.mxu0 %v6021_v18  ;;  %2484 = vmatpush1.bf16.msra.mxu1 %v6025_v25 }
 0x533   : > { %2442 = vmatprep.subr.bf16.mxu0 %v6029_v2  ;;  %2485 = vmatprep.subr.bf16.mxu1 %v6033_v33 }
 0x534   : > { %2472 = vmatprep.mubr.bf16.mxu0 %v7089_v50  ;;  %2515 = vmatprep.mubr.bf16.mxu1 %v7089_v50 }
 0x536   : > { %2443 = vmatpush1.bf16.msra.mxu0 %v6039_v35  ;;  %2486 = vmatpush1.bf16.msra.mxu1 %v6043_v36 }
 0x537   : > { %2444 = vmatprep.subr.bf16.mxu0 %v6047_v37  ;;  %2487 = vmatprep.subr.bf16.mxu1 %v6051_v39 }
 0x53a   : > { %2445 = vmatpush1.bf16.msra.mxu0 %v6055_v40  ;;  %2488 = vmatpush1.bf16.msra.mxu1 %v6059_v41 }
 0x53b   : > { %2446 = vmatprep.subr.bf16.mxu0 %v6063_v42  ;;  %2489 = vmatprep.subr.bf16.mxu1 %v6067_v43 }
 0x53e   : > { %2447 = vmatpush1.bf16.msra.mxu0 %v6071_v44  ;;  %2490 = vmatpush1.bf16.msra.mxu1 %v6075_v45 }
 0x53f   : > { %2448 = vmatprep.subr.bf16.mxu0 %v6079_v46  ;;  %2491 = vmatprep.subr.bf16.mxu1 %v6083_v47 }
 0x542   : > { %2449 = vmatpush1.bf16.msra.mxu0 %v6087_v52  ;;  %2492 = vmatpush1.bf16.msra.mxu1 %v6091_v53 }
 0x543   : > { %2450 = vmatprep.subr.bf16.mxu0 %v6095_v54  ;;  %2493 = vmatprep.subr.bf16.mxu1 %v6099_v55 }
 0x546   : > { %2451 = vmatpush1.bf16.msra.mxu0 %v6103_v56  ;;  %2494 = vmatpush1.bf16.msra.mxu1 %v6107_v57 }
 0x547   : > { %2452 = vmatprep.subr.bf16.mxu0 %v6111_v58  ;;  %2495 = vmatprep.subr.bf16.mxu1 %v6115_v59 }
 0x54a   : > { %2453 = vmatpush1.bf16.msra.mxu0 %v6119_v60  ;;  %2496 = vmatpush1.bf16.msra.mxu1 %v6123_v61 }
 0x54b   : > { %2454 = vmatprep.subr.bf16.mxu0 %v6127_v62  ;;  %2497 = vmatprep.subr.bf16.mxu1 %v6131_v1 }
 0x54e   : > { %2455 = vmatpush1.bf16.msra.mxu0 %v6135_v4  ;;  %2498 = vmatpush1.bf16.msra.mxu1 %v6139_v5 }
 0x54f   : > { %2593 = vmatprep.subr.bf16.mxu0 %v6143_v7  ;;  %2636 = vmatprep.subr.bf16.mxu1 %v6147_v9 }
 0x551   : > { %2473 = vmatmul.mubr.bf16.vlgmr.msra.gmra.mxu0 %v6012_v3  ;;  %2516 = vmatmul.mubr.bf16.vlgmr.msra.gmra.mxu1 %v6012_v3  ;;  %v6243_v3 = vld [vmem:[%s5369_s17 + $0x24] ss:$16 sps:$4 sm:$0xff]  }
 0x552   : > { %2594 = vmatpush1.bf16.msra.mxu0 %v6153_v11  ;;  %2637 = vmatpush1.bf16.msra.mxu1 %v6157_v13  ;;  %7162 = vst [vmem:[#allocation38_spill] sm:$0xff] %v6243_v3 }
 0x553   : > { %2595 = vmatprep.subr.bf16.mxu0 %v6161_v15  ;;  %2638 = vmatprep.subr.bf16.mxu1 %v6165_v38 }
 0x554   : > { %2625 = vmatprep.mubr.bf16.mxu0 %v7089_v50  ;;  %2668 = vmatprep.mubr.bf16.mxu1 %v7089_v50 }
 0x556   : > { %2596 = vmatpush1.bf16.msra.mxu0 %v6171_v19  ;;  %2639 = vmatpush1.bf16.msra.mxu1 %v6175_v21 }
 0x557   : > { %2597 = vmatprep.subr.bf16.mxu0 %v6179_v29  ;;  %2640 = vmatprep.subr.bf16.mxu1 %v6183_v27 }
 0x55a   : > { %2598 = vmatpush1.bf16.msra.mxu0 %v6187_v17  ;;  %2641 = vmatpush1.bf16.msra.mxu1 %v6191_v26 }
 0x55b   : > { %2599 = vmatprep.subr.bf16.mxu0 %v6195_v6  ;;  %2642 = vmatprep.subr.bf16.mxu1 %v6199_v16 }
 0x55e   : > { %2600 = vmatpush1.bf16.msra.mxu0 %v6203_v32  ;;  %2643 = vmatpush1.bf16.msra.mxu1 %v6207_v30 }
 0x55f   : > { %2601 = vmatprep.subr.bf16.mxu0 %v6211_v20  ;;  %2644 = vmatprep.subr.bf16.mxu1 %v6215_v22 }
 0x562   : > { %2602 = vmatpush1.bf16.msra.mxu0 %v6219_v24  ;;  %2645 = vmatpush1.bf16.msra.mxu1 %v6223_v48  ;;  %v6251_v48 = vld [vmem:[%s5369_s17 + $0x20] ss:$16 sps:$4 sm:$0xff]  }
 0x563   : > { %2603 = vmatprep.subr.bf16.mxu0 %v6227_v28  ;;  %2646 = vmatprep.subr.bf16.mxu1 %v6231_v51  ;;  %v6247_v28 = vld [vmem:[%s5369_s17 + $0x2c] ss:$16 sps:$4 sm:$0xff]   ;;  %7164 = vst [vmem:[#allocation40_spill] sm:$0xff] %v6251_v48  ;;  %v6255_v51 = vld [vmem:[%s5369_s17 + $0x28] ss:$16 sps:$4 sm:$0xff]  }
 0x564   : > { %7163 = vst [vmem:[#allocation39_spill] sm:$0xff] %v6247_v28  ;;  %7165 = vst [vmem:[#allocation41_spill] sm:$0xff] %v6255_v51 }
 0x566   : > { %2604 = vmatpush1.bf16.msra.mxu0 %v6235_v49  ;;  %2647 = vmatpush1.bf16.msra.mxu1 %v6239_v23  ;;  %v6259_v49 = vld [vmem:[%s5369_s17 + $0x4] ss:$16 sps:$4 sm:$0xff]   ;;  %v6263_v23 = vld [vmem:[%s5369_s17 + $0xc] ss:$16 sps:$4 sm:$0xff]  }
 0x567   : > { %2605 = vmatprep.subr.bf16.mxu0 %v6243_v3  ;;  %2648 = vmatprep.subr.bf16.mxu1 %v6247_v28  ;;  %7166 = vst [vmem:[#allocation42_spill] sm:$0xff] %v6259_v49  ;;  %7167 = vst [vmem:[#allocation43_spill] sm:$0xff] %v6263_v23  ;;  %v6267_v3 = vld [vmem:[%s5369_s17] ss:$16 sps:$4 sm:$0xff]   ;;  %v6271_v28 = vld [vmem:[%s5369_s17 + $0x8] ss:$16 sps:$4 sm:$0xff]  }
 0x568   : > { %7168 = vst [vmem:[#allocation46_spill] sm:$0xff] %v6267_v3  ;;  %7169 = vst [vmem:[#allocation47_spill] sm:$0xff] %v6271_v28 }
 0x56a   : > { %2606 = vmatpush1.bf16.msra.mxu0 %v6251_v48  ;;  %2649 = vmatpush1.bf16.msra.mxu1 %v6255_v51 }
 0x56b   : > { %2607 = vmatprep.subr.bf16.mxu0 %v6259_v49  ;;  %2650 = vmatprep.subr.bf16.mxu1 %v6263_v23 }
 0x56e   : > { %2608 = vmatpush1.bf16.msra.mxu0 %v6267_v3  ;;  %2651 = vmatpush1.bf16.msra.mxu1 %v6271_v28 }
 0x56f   : > { %2720 = vmatprep.subr.bf16.mxu0 %v5989_v63  ;;  %2763 = vmatprep.subr.bf16.mxu1 %v5993_v0 }
 0x5f1   : > { %v2347_v51 = vpop.f32.mrf.mxu0  ;;  %v2390_v48 = vpop.f32.mrf.mxu1 }
 0x5f2   : > { %v2348_v22 = vadd.f32 %v2347_v51, %v7142_v8  ;;  %v2391_v23 = vadd.f32 %v2390_v48, %v7143_v10 }
 0x5f3   : > { %v2349_v24 = vpop.f32.mrf.mxu0  ;;  %v2392_v49 = vpop.f32.mrf.mxu1 }
 0x5f4   : > { %v2350_v20 = vadd.f32 %v2349_v24, %v7144_v12  ;;  %v2393_v3 = vadd.f32 %v2392_v49, %v7145_v14  ;;  %v2428_v49 = vld [vmem:[#allocation2 + $0x60] sm:$0xff] }
 0x5f5   : > { %v2351_v30 = vpop.f32.mrf.mxu0  ;;  %v2394_v32 = vpop.f32.mrf.mxu1  ;;  %v2432_v27 = vunpack.c.l.bf16 %v2428_v49 }
 0x5f6   : > { %v4265_v16 = vpack.c.bf16 %v2350_v20, %v2348_v22  ;;  %v4266_v28 = vpack.c.bf16 %v2393_v3, %v2391_v23  ;;  %v2352_v0 = vadd.f32 %v2351_v30, %v7142_v8  ;;  %v2395_v26 = vadd.f32 %v2394_v32, %v7143_v10  ;;  %v2430_v20 = vld [vmem:[#allocation2 + $0x8] sm:$0xff] }
 0x5f7   : > { %v2353_v6 = vpop.f32.mrf.mxu0  ;;  %v2396_v63 = vpop.f32.mrf.mxu1  ;;  %v2433_v22 = vunpack.c.h.bf16 %v2428_v49  ;;  %v2437_v32 = vunpack.c.h.bf16 %v2430_v20 }
 0x5f8   : > { %2423 = vst [vmem:[#allocation2 + $0x80] sm:$0xff] %v4265_v16  ;;  %2424 = vst [vmem:[#allocation2 + $0x88] sm:$0xff] %v4266_v28  ;;  %v2354_v51 = vadd.f32 %v2353_v6, %v7144_v12  ;;  %v2397_v48 = vadd.f32 %v2396_v63, %v7145_v14  ;;  %v2436_v28 = vunpack.c.l.bf16 %v2430_v20 }
 0x5fa   : > { %v4267_v17 = vpack.c.bf16 %v2354_v51, %v2352_v0  ;;  %v4268_v24 = vpack.c.bf16 %v2397_v48, %v2395_v26  ;;  %v2429_v48 = vld [vmem:[#allocation2 + $0xf0] sm:$0xff] }
 0x5fb   : > { %v2434_v14 = vunpack.c.l.bf16 %v2429_v48 }
 0x5fc   : > { %2425 = vst [vmem:[#allocation2 + $0xe8] sm:$0xff] %v4267_v17  ;;  %2426 = vst [vmem:[#allocation2 + $0xb8] sm:$0xff] %v4268_v24 }
 0x611   : > { %v2474_v23 = vpop.f32.mrf.mxu0  ;;  %v2517_v16 = vpop.f32.mrf.mxu1 }
 0x612   : > { %v2526_v3 = vadd.f32 %v2474_v23, %v2432_v27  ;;  %v2435_v27 = vunpack.c.h.bf16 %v2429_v48  ;;  %v2431_v23 = vld [vmem:[#allocation2 + $0x78] sm:$0xff] }
 0x613   : > { %v2476_v29 = vpop.f32.mrf.mxu0  ;;  %v2519_v63 = vpop.f32.mrf.mxu1 }
 0x614   : > { %v4143_v30 = vmul.f32 -1.442695, %v2526_v3  ;;  %v2527_v8 = vadd.f32 %v2476_v29, %v2433_v22  ;;  %v2439_v3 = vunpack.c.h.bf16 %v2431_v23  ;;  %v2529_v20 = vadd.f32 %v2519_v63, %v2435_v27 }
 0x615   : > { %v2478_v10 = vpop.f32.mrf.mxu0  ;;  %v2521_v24 = vpop.f32.mrf.mxu1  ;;  %v2528_v22 = vadd.f32 %v2517_v16, %v2434_v14 }
 0x616   : > { %4671 = vpow2.f32 %v4143_v30  ;;  %v4145_v6 = vmul.f32 -1.442695, %v2527_v8  ;;  %v2530_v0 = vadd.f32 %v2478_v10, %v2436_v28  ;;  %v4147_v12 = vmul.f32 -1.442695, %v2529_v20 }
 0x617   : > { %v2480_v26 = vpop.f32.mrf.mxu0  ;;  %v2523_v29 = vpop.f32.mrf.mxu1  ;;  %v2438_v10 = vunpack.c.l.bf16 %v2431_v23 }
 0x618   : > { %4673 = vpow2.f32 %v4145_v6  ;;  %v4144_v17 = vmul.f32 -1.442695, %v2530_v0  ;;  %v2531_v51 = vadd.f32 %v2480_v26, %v2437_v32  ;;  %v2533_v30 = vadd.f32 %v2523_v29, %v2439_v3 }
 0x61a   : > { %4675 = vpow2.f32 %v4144_v17  ;;  %v4146_v49 = vmul.f32 -1.442695, %v2531_v51  ;;  %v4148_v32 = vmul.f32 -1.442695, %v2533_v30  ;;  %v2532_v17 = vadd.f32 %v2521_v24, %v2438_v10 }
 0x61c   : > { %4677 = vpow2.f32 %v4146_v49 }
 0x61d   : > { %4679 = vtanh.f32 %v2528_v22 }
 0x623   : > { %v4672_v8 = vpop.eup %4671 }
 0x624   : > { %v2540_v28 = vadd.f32 1.0, %v4672_v8 }
 0x625   : > { %v4674_v6 = vpop.eup %4673 }
 0x626   : > { %4681 = vrcp.f32 %v2540_v28  ;;  %v2552_v0 = vadd.f32 1.0, %v4674_v6 }
 0x627   : > { %v4676_v26 = vpop.eup %4675  ;;  %4683 = vpow2.f32 %v4147_v12 }
 0x628   : > { %4685 = vrcp.f32 %v2552_v0  ;;  %v2541_v51 = vadd.f32 1.0, %v4676_v26 }
 0x629   : > { %v4678_v48 = vpop.eup %4677  ;;  %4687 = vpow2.f32 %v4148_v32 }
 0x62a   : > { %4689 = vrcp.f32 %v2541_v51  ;;  %v2553_v63 = vadd.f32 1.0, %v4678_v48  ;;  %v4680_v14 = vpop.eup %4679 }
 0x62b   : > { %4691 = vtanh.f32 %v2532_v17 }
 0x62c   : > { %4693 = vrcp.f32 %v2553_v63  ;;  %v7171_v63 = vld [vmem:[#allocation23_spill] sm:$0xff] }
 0x633   : > { %v4682_v16 = vpop.eup %4681 }
 0x634   : > { %v4684_v49 = vpop.eup %4683  ;;  %v2574_v3 = vmul.f32 %v4682_v16, %v4680_v14  ;;  %v7172_v14 = vld [vmem:[#allocation24_spill] sm:$0xff]  ;;  %v7173_v16 = vld [vmem:[#allocation25_spill] sm:$0xff] }
 0x635   : > { %v4686_v27 = vpop.eup %4685  ;;  %v2566_v22 = vadd.f32 1.0, %v4684_v49  ;;  %v7174_v49 = vld [vmem:[#allocation26_spill] sm:$0xff] }
 0x636   : > { %v4688_v23 = vpop.eup %4687  ;;  %v2572_v29 = vmul.f32 %v4686_v27, %v6005_v31  ;;  %v7175_v27 = vld [vmem:[#allocation27_spill] sm:$0xff] }
 0x637   : > { %v4690_v20 = vpop.eup %4689  ;;  %v2567_v8 = vadd.f32 1.0, %v4688_v23  ;;  %4695 = vrcp.f32 %v2566_v22  ;;  %v7176_v23 = vld [vmem:[#allocation28_spill] sm:$0xff] }
 0x638   : > { %v4692_v12 = vpop.eup %4691  ;;  %v6285_v24 = vadd.f32 %v2574_v3, %v2572_v29  ;;  %v7177_v3 = vld [vmem:[#allocation29_spill] sm:$0xff]  ;;  %v7178_v29 = vld [vmem:[#allocation30_spill] sm:$0xff]  ;;  %v7180_v22 = vld [vmem:[#allocation32_spill] sm:$0xff] }
 0x639   : > { %v4694_v30 = vpop.eup %4693  ;;  %v2575_v10 = vmul.f32 %v4692_v12, %v4690_v20  ;;  %v7179_v20 = vld [vmem:[#allocation31_spill] sm:$0xff]  ;;  %v7181_v12 = vld [vmem:[#allocation33_spill] sm:$0xff] }
 0x63a   : > { %v2573_v28 = vmul.f32 %v4694_v30, %v6009_v34  ;;  %4697 = vtanh.f32 %v6285_v24  ;;  %v7170_v34 = vld [vmem:[#allocation22_spill] sm:$0xff] }
 0x63b   : > { %4699 = vrcp.f32 %v2567_v8  ;;  %v7182_v30 = vld [vmem:[#allocation34_spill] sm:$0xff]  ;;  %v7183_v8 = vld [vmem:[#allocation35_spill] sm:$0xff] }
 0x63c   : > { %v6289_v6 = vadd.f32 %v2575_v10, %v2573_v28  ;;  %v7184_v10 = vld [vmem:[#allocation36_spill] sm:$0xff]  ;;  %v7185_v28 = vld [vmem:[#allocation37_spill] sm:$0xff] }
 0x63e   : > { %4701 = vtanh.f32 %v6289_v6 }
 0x644   : > { %v4696_v32 = vpop.eup %4695 }
 0x647   : > { %v4698_v31 = vpop.eup %4697 }
 0x648   : > { %v4700_v0 = vpop.eup %4699  ;;  %v2580_v17 = vmul.f32 %v4698_v31, %v4696_v32  ;;  %v7186_v32 = vld [vmem:[#allocation38_spill] sm:$0xff]  ;;  %v7187_v31 = vld [vmem:[#allocation39_spill] sm:$0xff] }
 0x64b   : > { %v4702_v26 = vpop.eup %4701 }
 0x64c   : > { %v2581_v51 = vmul.f32 %v4702_v26, %v4700_v0  ;;  %v7188_v0 = vld [vmem:[#allocation40_spill] sm:$0xff]  ;;  %v7189_v26 = vld [vmem:[#allocation41_spill] sm:$0xff] }
 0x64e   : > { %v2582_v48 = vpack.c.bf16 %v2581_v51, %v2580_v17  ;;  %v7190_v17 = vld [vmem:[#allocation42_spill] sm:$0xff]  ;;  %v7191_v51 = vld [vmem:[#allocation43_spill] sm:$0xff] }
 0x650   : > { %4341 = vst [vmem:[%s7088_s13 + $0x18] sm:$0xff] %v2582_v48   ;;  %2626 = vmatmul.mubr.bf16.vlgmr.msra.gmra.mxu0 %v2582_v48  ;;  %2669 = vmatmul.mubr.bf16.vlgmr.msra.gmra.mxu1 %v2582_v48 }
 0x651   : > { %2721 = vmatpush1.bf16.msra.mxu0 %v6021_v18  ;;  %2764 = vmatpush1.bf16.msra.mxu1 %v6025_v25 }
 0x652   : > { %2722 = vmatprep.subr.bf16.mxu0 %v6029_v2  ;;  %2765 = vmatprep.subr.bf16.mxu1 %v6033_v33 }
 0x653   : > { %2752 = vmatprep.mubr.bf16.mxu0 %v7089_v50  ;;  %2795 = vmatprep.mubr.bf16.mxu1 %v7089_v50 }
 0x655   : > { %2723 = vmatpush1.bf16.msra.mxu0 %v6039_v35  ;;  %2766 = vmatpush1.bf16.msra.mxu1 %v6043_v36 }
 0x656   : > { %2724 = vmatprep.subr.bf16.mxu0 %v6047_v37  ;;  %2767 = vmatprep.subr.bf16.mxu1 %v6051_v39 }
 0x659   : > { %2725 = vmatpush1.bf16.msra.mxu0 %v6055_v40  ;;  %2768 = vmatpush1.bf16.msra.mxu1 %v6059_v41 }
 0x65a   : > { %2726 = vmatprep.subr.bf16.mxu0 %v6063_v42  ;;  %2769 = vmatprep.subr.bf16.mxu1 %v6067_v43 }
 0x65d   : > { %2727 = vmatpush1.bf16.msra.mxu0 %v6071_v44  ;;  %2770 = vmatpush1.bf16.msra.mxu1 %v6075_v45 }
 0x65e   : > { %2728 = vmatprep.subr.bf16.mxu0 %v6079_v46  ;;  %2771 = vmatprep.subr.bf16.mxu1 %v6083_v47 }
 0x661   : > { %2729 = vmatpush1.bf16.msra.mxu0 %v6087_v52  ;;  %2772 = vmatpush1.bf16.msra.mxu1 %v6091_v53 }
 0x662   : > { %2730 = vmatprep.subr.bf16.mxu0 %v6095_v54  ;;  %2773 = vmatprep.subr.bf16.mxu1 %v6099_v55 }
 0x665   : > { %2731 = vmatpush1.bf16.msra.mxu0 %v6103_v56  ;;  %2774 = vmatpush1.bf16.msra.mxu1 %v6107_v57 }
 0x666   : > { %2732 = vmatprep.subr.bf16.mxu0 %v6111_v58  ;;  %2775 = vmatprep.subr.bf16.mxu1 %v6115_v59 }
 0x669   : > { %2733 = vmatpush1.bf16.msra.mxu0 %v6119_v60  ;;  %2776 = vmatpush1.bf16.msra.mxu1 %v6123_v61 }
 0x66a   : > { %2734 = vmatprep.subr.bf16.mxu0 %v6127_v62  ;;  %2777 = vmatprep.subr.bf16.mxu1 %v6131_v1 }
 0x66d   : > { %2735 = vmatpush1.bf16.msra.mxu0 %v6135_v4  ;;  %2778 = vmatpush1.bf16.msra.mxu1 %v6139_v5 }
 0x66e   : > { %2873 = vmatprep.subr.bf16.mxu0 %v6143_v7  ;;  %2916 = vmatprep.subr.bf16.mxu1 %v6147_v9 }
 0x670   : > { %2753 = vmatmul.mubr.bf16.vlgmr.msra.gmra.mxu0 %v2582_v48  ;;  %2796 = vmatmul.mubr.bf16.vlgmr.msra.gmra.mxu1 %v2582_v48  ;;  %v7192_v48 = vld [vmem:[#allocation46_spill] sm:$0xff] }
 0x671   : > { %2874 = vmatpush1.bf16.msra.mxu0 %v6153_v11  ;;  %2917 = vmatpush1.bf16.msra.mxu1 %v6157_v13 }
 0x672   : > { %2875 = vmatprep.subr.bf16.mxu0 %v6161_v15  ;;  %2918 = vmatprep.subr.bf16.mxu1 %v6165_v38 }
 0x673   : > { %2905 = vmatprep.mubr.bf16.mxu0 %v7089_v50  ;;  %2948 = vmatprep.mubr.bf16.mxu1 %v7089_v50 }
 0x675   : > { %2876 = vmatpush1.bf16.msra.mxu0 %v6171_v19  ;;  %2919 = vmatpush1.bf16.msra.mxu1 %v6175_v21 }
 0x676   : > { %2877 = vmatprep.subr.bf16.mxu0 %v7170_v34  ;;  %2920 = vmatprep.subr.bf16.mxu1 %v7171_v63 }
 0x679   : > { %2878 = vmatpush1.bf16.msra.mxu0 %v7172_v14  ;;  %2921 = vmatpush1.bf16.msra.mxu1 %v7173_v16 }
 0x67a   : > { %2879 = vmatprep.subr.bf16.mxu0 %v7174_v49  ;;  %2922 = vmatprep.subr.bf16.mxu1 %v7175_v27 }
 0x67d   : > { %2880 = vmatpush1.bf16.msra.mxu0 %v7176_v23  ;;  %2923 = vmatpush1.bf16.msra.mxu1 %v7177_v3  ;;  %v7199_v3 = vld [vmem:[#allocation45_spill] sm:$0xff] }
 0x67e   : > { %2881 = vmatprep.subr.bf16.mxu0 %v7178_v29  ;;  %2924 = vmatprep.subr.bf16.mxu1 %v7179_v20  ;;  %v7197_v20 = vld [vmem:[#allocation19_spill] sm:$0xff]  ;;  %v7198_v29 = vld [vmem:[#allocation44_spill] sm:$0xff] }
 0x681   : > { %2882 = vmatpush1.bf16.msra.mxu0 %v7180_v22  ;;  %2925 = vmatpush1.bf16.msra.mxu1 %v7181_v12  ;;  %v7196_v22 = vld [vmem:[#allocation18_spill] sm:$0xff] }
 0x682   : > { %2883 = vmatprep.subr.bf16.mxu0 %v7182_v30  ;;  %2926 = vmatprep.subr.bf16.mxu1 %v7183_v8  ;;  %v7193_v30 = vld [vmem:[#allocation47_spill] sm:$0xff]  ;;  %v7194_v8 = vld [vmem:[#allocation20_spill] sm:$0xff] }
 0x685   : > { %2884 = vmatpush1.bf16.msra.mxu0 %v7184_v10  ;;  %2927 = vmatpush1.bf16.msra.mxu1 %v7185_v28  ;;  %v7195_v10 = vld [vmem:[#allocation21_spill] sm:$0xff] }
 0x686   : > { %2885 = vmatprep.subr.bf16.mxu0 %v7186_v32  ;;  %2928 = vmatprep.subr.bf16.mxu1 %v7187_v31 }
 0x689   : > { %2886 = vmatpush1.bf16.msra.mxu0 %v7188_v0  ;;  %2929 = vmatpush1.bf16.msra.mxu1 %v7189_v26 }
 0x68a   : > { %2887 = vmatprep.subr.bf16.mxu0 %v7190_v17  ;;  %2930 = vmatprep.subr.bf16.mxu1 %v7191_v51 }
 0x68d   : > { %2888 = vmatpush1.bf16.msra.mxu0 %v7192_v48  ;;  %2931 = vmatpush1.bf16.msra.mxu1 %v7193_v30 }
 0x68e   : > { %3000 = vmatprep.subr.bf16.mxu0 %v7194_v8  ;;  %3043 = vmatprep.subr.bf16.mxu1 %v7195_v10 }
 0x710   : > { %v2627_v28 = vpop.f32.mrf.mxu0  ;;  %v2670_v32 = vpop.f32.mrf.mxu1 }
 0x711   : > { %v2628_v0 = vadd.f32 %v2627_v28, %v7196_v22  ;;  %v2671_v26 = vadd.f32 %v2670_v32, %v7197_v20 }
 0x712   : > { %v2629_v12 = vpop.f32.mrf.mxu0  ;;  %v2672_v31 = vpop.f32.mrf.mxu1 }
 0x713   : > { %v2630_v17 = vadd.f32 %v2629_v12, %v7198_v29  ;;  %v2673_v51 = vadd.f32 %v2672_v31, %v7199_v3  ;;  %v2708_v31 = vld [vmem:[#allocation2 + $0x38] sm:$0xff] }
 0x714   : > { %v2631_v23 = vpop.f32.mrf.mxu0  ;;  %v2674_v48 = vpop.f32.mrf.mxu1  ;;  %v2712_v63 = vunpack.c.l.bf16 %v2708_v31 }
 0x715   : > { %v4271_v27 = vpack.c.bf16 %v2630_v17, %v2628_v0  ;;  %v4272_v30 = vpack.c.bf16 %v2673_v51, %v2671_v26  ;;  %v2632_v10 = vadd.f32 %v2631_v23, %v7196_v22  ;;  %v2675_v16 = vadd.f32 %v2674_v48, %v7197_v20  ;;  %v2710_v0 = vld [vmem:[#allocation2 + $0x40] sm:$0xff] }
 0x716   : > { %v2633_v49 = vpop.f32.mrf.mxu0  ;;  %v2676_v8 = vpop.f32.mrf.mxu1  ;;  %v2713_v26 = vunpack.c.h.bf16 %v2708_v31  ;;  %v2717_v48 = vunpack.c.h.bf16 %v2710_v0 }
 0x717   : > { %2703 = vst [vmem:[#allocation2 + $0x60] sm:$0xff] %v4271_v27  ;;  %2704 = vst [vmem:[#allocation2 + $0xf0] sm:$0xff] %v4272_v30  ;;  %v2634_v28 = vadd.f32 %v2633_v49, %v7198_v29  ;;  %v2677_v32 = vadd.f32 %v2676_v8, %v7199_v3  ;;  %v2716_v30 = vunpack.c.l.bf16 %v2710_v0 }
 0x719   : > { %v4273_v14 = vpack.c.bf16 %v2634_v28, %v2632_v10  ;;  %v4274_v12 = vpack.c.bf16 %v2677_v32, %v2675_v16  ;;  %v2709_v32 = vld [vmem:[#allocation2 + $0x58] sm:$0xff] }
 0x71a   : > { %v2714_v3 = vunpack.c.l.bf16 %v2709_v32 }
 0x71b   : > { %2705 = vst [vmem:[#allocation2 + $0x8] sm:$0xff] %v4273_v14  ;;  %2706 = vst [vmem:[#allocation2 + $0x78] sm:$0xff] %v4274_v12 }
 0x730   : > { %v2754_v17 = vpop.f32.mrf.mxu0  ;;  %v2797_v27 = vpop.f32.mrf.mxu1 }
 0x731   : > { %v2806_v51 = vadd.f32 %v2754_v17, %v2712_v63  ;;  %v2715_v63 = vunpack.c.h.bf16 %v2709_v32  ;;  %v2711_v17 = vld [vmem:[#allocation2 + $0xc8] sm:$0xff] }
 0x732   : > { %v2756_v34 = vpop.f32.mrf.mxu0  ;;  %v2799_v8 = vpop.f32.mrf.mxu1 }
 0x733   : > { %v4157_v23 = vmul.f32 -1.442695, %v2806_v51  ;;  %v2807_v22 = vadd.f32 %v2756_v34, %v2713_v26  ;;  %v2719_v51 = vunpack.c.h.bf16 %v2711_v17  ;;  %v2809_v0 = vadd.f32 %v2799_v8, %v2715_v63 }
 0x734   : > { %v2758_v20 = vpop.f32.mrf.mxu0  ;;  %v2801_v12 = vpop.f32.mrf.mxu1  ;;  %v2808_v26 = vadd.f32 %v2797_v27, %v2714_v3 }
 0x735   : > { %4703 = vpow2.f32 %v4157_v23  ;;  %v4159_v49 = vmul.f32 -1.442695, %v2807_v22  ;;  %v2810_v10 = vadd.f32 %v2758_v20, %v2716_v30  ;;  %v4161_v29 = vmul.f32 -1.442695, %v2809_v0 }
 0x736   : > { %v2760_v16 = vpop.f32.mrf.mxu0  ;;  %v2803_v34 = vpop.f32.mrf.mxu1  ;;  %v2718_v20 = vunpack.c.l.bf16 %v2711_v17 }
 0x737   : > { %4705 = vpow2.f32 %v4159_v49  ;;  %v4158_v14 = vmul.f32 -1.442695, %v2810_v10  ;;  %v2811_v28 = vadd.f32 %v2760_v16, %v2717_v48  ;;  %v2813_v23 = vadd.f32 %v2803_v34, %v2719_v51 }
 0x739   : > { %4707 = vpow2.f32 %v4158_v14  ;;  %v4160_v31 = vmul.f32 -1.442695, %v2811_v28  ;;  %v4162_v48 = vmul.f32 -1.442695, %v2813_v23  ;;  %v2812_v14 = vadd.f32 %v2801_v12, %v2718_v20 }
 0x73b   : > { %4709 = vpow2.f32 %v4160_v31 }
 0x73c   : > { %4711 = vtanh.f32 %v2808_v26 }
 0x742   : > { %v4704_v22 = vpop.eup %4703 }
 0x743   : > { %v2820_v30 = vadd.f32 1.0, %v4704_v22 }
 0x744   : > { %v4706_v49 = vpop.eup %4705 }
 0x745   : > { %4713 = vrcp.f32 %v2820_v30  ;;  %v2832_v10 = vadd.f32 1.0, %v4706_v49 }
 0x746   : > { %v4708_v16 = vpop.eup %4707  ;;  %4715 = vpow2.f32 %v4161_v29 }
 0x747   : > { %4717 = vrcp.f32 %v2832_v10  ;;  %v2821_v28 = vadd.f32 1.0, %v4708_v16 }
 0x748   : > { %v4710_v32 = vpop.eup %4709  ;;  %4719 = vpow2.f32 %v4162_v48 }
 0x749   : > { %4721 = vrcp.f32 %v2821_v28  ;;  %v2833_v8 = vadd.f32 1.0, %v4710_v32  ;;  %v4712_v3 = vpop.eup %4711 }
 0x74a   : > { %4723 = vtanh.f32 %v2812_v14 }
 0x74b   : > { %4725 = vrcp.f32 %v2833_v8 }
 0x752   : > { %v4714_v27 = vpop.eup %4713 }
 0x753   : > { %v4716_v31 = vpop.eup %4715  ;;  %v2854_v51 = vmul.f32 %v4714_v27, %v4712_v3 }
 0x754   : > { %v4718_v63 = vpop.eup %4717  ;;  %v2846_v26 = vadd.f32 1.0, %v4716_v31 }
 0x755   : > { %v4720_v17 = vpop.eup %4719  ;;  %v2852_v34 = vmul.f32 %v4718_v63, %v6285_v24 }
 0x756   : > { %v4722_v0 = vpop.eup %4721  ;;  %v2847_v22 = vadd.f32 1.0, %v4720_v17  ;;  %4727 = vrcp.f32 %v2846_v26 }
 0x757   : > { %v4724_v29 = vpop.eup %4723  ;;  %v6372_v12 = vadd.f32 %v2854_v51, %v2852_v34 }
 0x758   : > { %v4726_v23 = vpop.eup %4725  ;;  %v2855_v20 = vmul.f32 %v4724_v29, %v4722_v0 }
 0x759   : > { %v2853_v30 = vmul.f32 %v4726_v23, %v6289_v6  ;;  %4729 = vtanh.f32 %v6372_v12  ;;  %v2988_v23 = vld [vmem:[#allocation2 + $0xe0] sm:$0xff] }
 0x75a   : > { %4731 = vrcp.f32 %v2847_v22  ;;  %v2992_v22 = vunpack.c.l.bf16 %v2988_v23 }
 0x75b   : > { %v6376_v49 = vadd.f32 %v2855_v20, %v2853_v30  ;;  %v2990_v20 = vld [vmem:[#allocation2 + $0x70] sm:$0xff]  ;;  %v2993_v30 = vunpack.c.h.bf16 %v2988_v23 }
 0x75d   : > { %4733 = vtanh.f32 %v6376_v49 }
 0x763   : > { %v4728_v48 = vpop.eup %4727 }
 0x766   : > { %v4730_v24 = vpop.eup %4729 }
 0x767   : > { %v4732_v10 = vpop.eup %4731  ;;  %v2860_v14 = vmul.f32 %v4730_v24, %v4728_v48 }
 0x76a   : > { %v4734_v16 = vpop.eup %4733 }
 0x76b   : > { %v2861_v28 = vmul.f32 %v4734_v16, %v4732_v10  ;;  %v2996_v16 = vunpack.c.l.bf16 %v2990_v20 }
 0x76d   : > { %v2862_v32 = vpack.c.bf16 %v2861_v28, %v2860_v14 }
 0x76f   : > { %4342 = vst [vmem:[%s7088_s13 + $0x20] sm:$0xff] %v2862_v32   ;;  %2906 = vmatmul.mubr.bf16.vlgmr.msra.gmra.mxu0 %v2862_v32  ;;  %2949 = vmatmul.mubr.bf16.vlgmr.msra.gmra.mxu1 %v2862_v32 }
 0x770   : > { %3001 = vmatpush1.bf16.msra.mxu0 %v6021_v18  ;;  %3044 = vmatpush1.bf16.msra.mxu1 %v6025_v25  ;;  %v7200_v18 = vld [vmem:[#allocation22_spill] sm:$0xff]  ;;  %v7201_v25 = vld [vmem:[#allocation23_spill] sm:$0xff] }
 0x771   : > { %3002 = vmatprep.subr.bf16.mxu0 %v6029_v2  ;;  %3045 = vmatprep.subr.bf16.mxu1 %v6033_v33  ;;  %v7202_v2 = vld [vmem:[#allocation24_spill] sm:$0xff]  ;;  %v7203_v33 = vld [vmem:[#allocation25_spill] sm:$0xff] }
 0x772   : > { %3032 = vmatprep.mubr.bf16.mxu0 %v7089_v50  ;;  %3075 = vmatprep.mubr.bf16.mxu1 %v7089_v50 }
 0x774   : > { %3003 = vmatpush1.bf16.msra.mxu0 %v6039_v35  ;;  %3046 = vmatpush1.bf16.msra.mxu1 %v6043_v36  ;;  %v7204_v35 = vld [vmem:[#allocation26_spill] sm:$0xff]  ;;  %v7205_v36 = vld [vmem:[#allocation27_spill] sm:$0xff] }
 0x775   : > { %3004 = vmatprep.subr.bf16.mxu0 %v6047_v37  ;;  %3047 = vmatprep.subr.bf16.mxu1 %v6051_v39  ;;  %v7206_v37 = vld [vmem:[#allocation28_spill] sm:$0xff]  ;;  %v7207_v39 = vld [vmem:[#allocation29_spill] sm:$0xff] }
 0x778   : > { %3005 = vmatpush1.bf16.msra.mxu0 %v6055_v40  ;;  %3048 = vmatpush1.bf16.msra.mxu1 %v6059_v41  ;;  %v7208_v40 = vld [vmem:[#allocation30_spill] sm:$0xff]  ;;  %v7209_v41 = vld [vmem:[#allocation31_spill] sm:$0xff] }
 0x779   : > { %3006 = vmatprep.subr.bf16.mxu0 %v6063_v42  ;;  %3049 = vmatprep.subr.bf16.mxu1 %v6067_v43  ;;  %v7210_v42 = vld [vmem:[#allocation32_spill] sm:$0xff]  ;;  %v7211_v43 = vld [vmem:[#allocation33_spill] sm:$0xff] }
 0x77c   : > { %3007 = vmatpush1.bf16.msra.mxu0 %v6071_v44  ;;  %3050 = vmatpush1.bf16.msra.mxu1 %v6075_v45  ;;  %v7212_v44 = vld [vmem:[#allocation34_spill] sm:$0xff]  ;;  %v7213_v45 = vld [vmem:[#allocation35_spill] sm:$0xff] }
 0x77d   : > { %3008 = vmatprep.subr.bf16.mxu0 %v6079_v46  ;;  %3051 = vmatprep.subr.bf16.mxu1 %v6083_v47  ;;  %v7214_v46 = vld [vmem:[#allocation36_spill] sm:$0xff]  ;;  %v7215_v47 = vld [vmem:[#allocation37_spill] sm:$0xff] }
 0x780   : > { %3009 = vmatpush1.bf16.msra.mxu0 %v6087_v52  ;;  %3052 = vmatpush1.bf16.msra.mxu1 %v6091_v53  ;;  %v7216_v52 = vld [vmem:[#allocation38_spill] sm:$0xff]  ;;  %v7217_v53 = vld [vmem:[#allocation39_spill] sm:$0xff] }
 0x781   : > { %3010 = vmatprep.subr.bf16.mxu0 %v6095_v54  ;;  %3053 = vmatprep.subr.bf16.mxu1 %v6099_v55  ;;  %v7218_v54 = vld [vmem:[#allocation40_spill] sm:$0xff]  ;;  %v7219_v55 = vld [vmem:[#allocation41_spill] sm:$0xff] }
 0x784   : > { %3011 = vmatpush1.bf16.msra.mxu0 %v6103_v56  ;;  %3054 = vmatpush1.bf16.msra.mxu1 %v6107_v57  ;;  %v7220_v56 = vld [vmem:[#allocation42_spill] sm:$0xff]  ;;  %v7221_v57 = vld [vmem:[#allocation43_spill] sm:$0xff] }
 0x785   : > { %3012 = vmatprep.subr.bf16.mxu0 %v6111_v58  ;;  %3055 = vmatprep.subr.bf16.mxu1 %v6115_v59  ;;  %v7222_v58 = vld [vmem:[#allocation46_spill] sm:$0xff]  ;;  %v7223_v59 = vld [vmem:[#allocation47_spill] sm:$0xff] }
 0x788   : > { %3013 = vmatpush1.bf16.msra.mxu0 %v6119_v60  ;;  %3056 = vmatpush1.bf16.msra.mxu1 %v6123_v61  ;;  %v6449_v60 = vld [vmem:[%s5377_s11 + $0xe4] ss:$16 sps:$4 sm:$0xff]   ;;  %v6453_v61 = vld [vmem:[%s5377_s11 + $0xec] ss:$16 sps:$4 sm:$0xff]  }
 0x789   : > { %3014 = vmatprep.subr.bf16.mxu0 %v6127_v62  ;;  %3057 = vmatprep.subr.bf16.mxu1 %v6131_v1 }
 0x78c   : > { %3015 = vmatpush1.bf16.msra.mxu0 %v6135_v4  ;;  %3058 = vmatpush1.bf16.msra.mxu1 %v6139_v5 }
 0x78d   : > { %3153 = vmatprep.subr.bf16.mxu0 %v6143_v7  ;;  %3196 = vmatprep.subr.bf16.mxu1 %v6147_v9  ;;  %v7224_v7 = vld [vmem:[#allocation18_spill] sm:$0xff] }
 0x78f   : > { %3033 = vmatmul.mubr.bf16.vlgmr.msra.gmra.mxu0 %v2862_v32  ;;  %3076 = vmatmul.mubr.bf16.vlgmr.msra.gmra.mxu1 %v2862_v32 }
 0x790   : > { %3154 = vmatpush1.bf16.msra.mxu0 %v6153_v11  ;;  %3197 = vmatpush1.bf16.msra.mxu1 %v6157_v13  ;;  %v7225_v11 = vld [vmem:[#allocation19_spill] sm:$0xff] }
 0x791   : > { %3155 = vmatprep.subr.bf16.mxu0 %v6161_v15  ;;  %3198 = vmatprep.subr.bf16.mxu1 %v6165_v38  ;;  %v7226_v15 = vld [vmem:[#allocation44_spill] sm:$0xff] }
 0x792   : > { %3185 = vmatprep.mubr.bf16.mxu0 %v7089_v50  ;;  %3228 = vmatprep.mubr.bf16.mxu1 %v7089_v50 }
 0x794   : > { %3156 = vmatpush1.bf16.msra.mxu0 %v6171_v19  ;;  %3199 = vmatpush1.bf16.msra.mxu1 %v6175_v21  ;;  %v7227_v19 = vld [vmem:[#allocation45_spill] sm:$0xff] }
 0x795   : > { %3157 = vmatprep.subr.bf16.mxu0 %v7200_v18  ;;  %3200 = vmatprep.subr.bf16.mxu1 %v7201_v25  ;;  %v2997_v18 = vunpack.c.h.bf16 %v2990_v20 }
 0x798   : > { %3158 = vmatpush1.bf16.msra.mxu0 %v7202_v2  ;;  %3201 = vmatpush1.bf16.msra.mxu1 %v7203_v33 }
 0x799   : > { %3159 = vmatprep.subr.bf16.mxu0 %v7204_v35  ;;  %3202 = vmatprep.subr.bf16.mxu1 %v7205_v36 }
 0x79c   : > { %3160 = vmatpush1.bf16.msra.mxu0 %v7206_v37  ;;  %3203 = vmatpush1.bf16.msra.mxu1 %v7207_v39 }
 0x79d   : > { %3161 = vmatprep.subr.bf16.mxu0 %v7208_v40  ;;  %3204 = vmatprep.subr.bf16.mxu1 %v7209_v41  ;;  %v2989_v40 = vld [vmem:[#allocation2 + $0x90] sm:$0xff] }
 0x7a0   : > { %3162 = vmatpush1.bf16.msra.mxu0 %v7210_v42  ;;  %3205 = vmatpush1.bf16.msra.mxu1 %v7211_v43  ;;  %v2995_v43 = vunpack.c.h.bf16 %v2989_v40 }
 0x7a1   : > { %3163 = vmatprep.subr.bf16.mxu0 %v7212_v44  ;;  %3206 = vmatprep.subr.bf16.mxu1 %v7213_v45  ;;  %v2991_v44 = vld [vmem:[#allocation2 + $0xc0] sm:$0xff]  ;;  %v2994_v45 = vunpack.c.l.bf16 %v2989_v40  ;;  %v6527_v40 = vld [vmem:[%s5377_s11 + $0x8c] ss:$16 sps:$4 sm:$0xff]  }
 0x7a4   : > { %3164 = vmatpush1.bf16.msra.mxu0 %v7214_v46  ;;  %3207 = vmatpush1.bf16.msra.mxu1 %v7215_v47  ;;  %v2999_v46 = vunpack.c.h.bf16 %v2991_v44 }
 0x7a5   : > { %3165 = vmatprep.subr.bf16.mxu0 %v7216_v52  ;;  %3208 = vmatprep.subr.bf16.mxu1 %v7217_v53 }
 0x7a8   : > { %3166 = vmatpush1.bf16.msra.mxu0 %v7218_v54  ;;  %3209 = vmatpush1.bf16.msra.mxu1 %v7219_v55 }
 0x7a9   : > { %3167 = vmatprep.subr.bf16.mxu0 %v7220_v56  ;;  %3210 = vmatprep.subr.bf16.mxu1 %v7221_v57  ;;  %v2998_v57 = vunpack.c.l.bf16 %v2991_v44  ;;  %v6543_v44 = vld [vmem:[%s5377_s11 + $0x6c] ss:$16 sps:$4 sm:$0xff]  }
 0x7ac   : > { %3168 = vmatpush1.bf16.msra.mxu0 %v7222_v58  ;;  %3211 = vmatpush1.bf16.msra.mxu1 %v7223_v59 }
 0x7ad   : > { %3280 = vmatprep.subr.bf16.mxu0 %v6449_v60  ;;  %3323 = vmatprep.subr.bf16.mxu1 %v6453_v61 }
 0x82f   : > { %v2907_v62 = vpop.f32.mrf.mxu0  ;;  %v2950_v1 = vpop.f32.mrf.mxu1 }
 0x830   : > { %v2908_v9 = vadd.f32 %v2907_v62, %v7224_v7  ;;  %v2951_v13 = vadd.f32 %v2950_v1, %v7225_v11 }
 0x831   : > { %v2909_v4 = vpop.f32.mrf.mxu0  ;;  %v2952_v5 = vpop.f32.mrf.mxu1 }
 0x832   : > { %v2910_v38 = vadd.f32 %v2909_v4, %v7226_v15  ;;  %v2953_v21 = vadd.f32 %v2952_v5, %v7227_v19 }
 0x833   : > { %v2911_v6 = vpop.f32.mrf.mxu0  ;;  %v2954_v8 = vpop.f32.mrf.mxu1 }
 0x834   : > { %v4277_v3 = vpack.c.bf16 %v2910_v38, %v2908_v9  ;;  %v4278_v27 = vpack.c.bf16 %v2953_v21, %v2951_v13  ;;  %v2912_v17 = vadd.f32 %v2911_v6, %v7224_v7  ;;  %v2955_v51 = vadd.f32 %v2954_v8, %v7225_v11 }
 0x835   : > { %v2913_v31 = vpop.f32.mrf.mxu0  ;;  %v2956_v63 = vpop.f32.mrf.mxu1 }
 0x836   : > { %2983 = vst [vmem:[#allocation2 + $0x38] sm:$0xff] %v4277_v3  ;;  %2984 = vst [vmem:[#allocation2 + $0x58] sm:$0xff] %v4278_v27  ;;  %v2914_v34 = vadd.f32 %v2913_v31, %v7226_v15  ;;  %v2957_v0 = vadd.f32 %v2956_v63, %v7227_v19 }
 0x838   : > { %v4279_v26 = vpack.c.bf16 %v2914_v34, %v2912_v17  ;;  %v4280_v29 = vpack.c.bf16 %v2957_v0, %v2955_v51 }
 0x83a   : > { %2985 = vst [vmem:[#allocation2 + $0x40] sm:$0xff] %v4279_v26  ;;  %2986 = vst [vmem:[#allocation2 + $0xc8] sm:$0xff] %v4280_v29 }
 0x84f   : > { %v3034_v48 = vpop.f32.mrf.mxu0  ;;  %v3077_v10 = vpop.f32.mrf.mxu1 }
 0x850   : > { %v3086_v24 = vadd.f32 %v3034_v48, %v2992_v22  ;;  %v3088_v53 = vadd.f32 %v3077_v10, %v2994_v45  ;;  %v6547_v45 = vld [vmem:[%s5377_s11 + $0x60] ss:$16 sps:$4 sm:$0xff]  }
 0x851   : > { %v3036_v14 = vpop.f32.mrf.mxu0  ;;  %v3079_v33 = vpop.f32.mrf.mxu1 }
 0x852   : > { %v4171_v28 = vmul.f32 -1.442695, %v3086_v24  ;;  %v3087_v32 = vadd.f32 %v3036_v14, %v2993_v30  ;;  %v3089_v52 = vadd.f32 %v3079_v33, %v2995_v43  ;;  %v6481_v14 = vld [vmem:[%s5377_s11 + $0xe0] ss:$16 sps:$4 sm:$0xff]   ;;  %v6507_v33 = vld [vmem:[%s5377_s11 + $0xa4] ss:$16 sps:$4 sm:$0xff]  }
 0x853   : > { %v3038_v25 = vpop.f32.mrf.mxu0  ;;  %v3081_v41 = vpop.f32.mrf.mxu1  ;;  %v6539_v43 = vld [vmem:[%s5377_s11 + $0x64] ss:$16 sps:$4 sm:$0xff]  }
 0x854   : > { %4735 = vpow2.f32 %v4171_v28  ;;  %v4173_v2 = vmul.f32 -1.442695, %v3087_v32  ;;  %v3090_v35 = vadd.f32 %v3038_v25, %v2996_v16  ;;  %v4175_v56 = vmul.f32 -1.442695, %v3089_v52  ;;  %v6485_v28 = vld [vmem:[%s5377_s11 + $0xe8] ss:$16 sps:$4 sm:$0xff]  }
 0x855   : > { %v3040_v36 = vpop.f32.mrf.mxu0  ;;  %v3083_v47 = vpop.f32.mrf.mxu1  ;;  %v3092_v5 = vadd.f32 %v3081_v41, %v2998_v57  ;;  %v6489_v32 = vld [vmem:[%s5377_s11 + $0xc4] ss:$16 sps:$4 sm:$0xff]   ;;  %v6499_v25 = vld [vmem:[%s5377_s11 + $0xc0] ss:$16 sps:$4 sm:$0xff]   ;;  %v6559_v52 = vld [vmem:[%s5377_s11 + $0x4c] ss:$16 sps:$4 sm:$0xff]  }
 0x856   : > { %4737 = vpow2.f32 %v4173_v2  ;;  %v4172_v37 = vmul.f32 -1.442695, %v3090_v35  ;;  %v3091_v39 = vadd.f32 %v3040_v36, %v2997_v18  ;;  %v3093_v54 = vadd.f32 %v3083_v47, %v2999_v46  ;;  %v6493_v18 = vld [vmem:[%s5377_s11 + $0xcc] ss:$16 sps:$4 sm:$0xff]   ;;  %v6503_v2 = vld [vmem:[%s5377_s11 + $0xc8] ss:$16 sps:$4 sm:$0xff]  }
 0x857   : > { %v6511_v35 = vld [vmem:[%s5377_s11 + $0xac] ss:$16 sps:$4 sm:$0xff]   ;;  %v6515_v36 = vld [vmem:[%s5377_s11 + $0xa0] ss:$16 sps:$4 sm:$0xff]   ;;  %v6551_v46 = vld [vmem:[%s5377_s11 + $0x68] ss:$16 sps:$4 sm:$0xff]  }
 0x858   : > { %4739 = vpow2.f32 %v4172_v37  ;;  %v4174_v42 = vmul.f32 -1.442695, %v3091_v39  ;;  %v4176_v62 = vmul.f32 -1.442695, %v3093_v54  ;;  %v6519_v37 = vld [vmem:[%s5377_s11 + $0xa8] ss:$16 sps:$4 sm:$0xff]  }
 0x859   : > { %v6523_v39 = vld [vmem:[%s5377_s11 + $0x84] ss:$16 sps:$4 sm:$0xff]   ;;  %v6531_v41 = vld [vmem:[%s5377_s11 + $0x80] ss:$16 sps:$4 sm:$0xff]   ;;  %v6567_v54 = vld [vmem:[%s5377_s11 + $0x48] ss:$16 sps:$4 sm:$0xff]  }
 0x85a   : > { %4741 = vpow2.f32 %v4174_v42  ;;  %v6535_v42 = vld [vmem:[%s5377_s11 + $0x88] ss:$16 sps:$4 sm:$0xff]   ;;  %v6555_v47 = vld [vmem:[%s5377_s11 + $0x44] ss:$16 sps:$4 sm:$0xff]   ;;  %v6579_v57 = vld [vmem:[%s5377_s11 + $0x20] ss:$16 sps:$4 sm:$0xff]  }
 0x85b   : > { %4743 = vtanh.f32 %v3088_v53  ;;  %v6563_v53 = vld [vmem:[%s5377_s11 + $0x40] ss:$16 sps:$4 sm:$0xff]  }
 0x861   : > { %v4736_v55 = vpop.eup %4735 }
 0x862   : > { %v3100_v58 = vadd.f32 1.0, %v4736_v55  ;;  %v6571_v55 = vld [vmem:[%s5377_s11 + $0x24] ss:$16 sps:$4 sm:$0xff]  }
 0x863   : > { %v4738_v59 = vpop.eup %4737 }
 0x864   : > { %4745 = vrcp.f32 %v3100_v58  ;;  %v3112_v1 = vadd.f32 1.0, %v4738_v59  ;;  %v6583_v58 = vld [vmem:[%s5377_s11 + $0x28] ss:$16 sps:$4 sm:$0xff]   ;;  %v6587_v59 = vld [vmem:[%s5377_s11 + $0x4] ss:$16 sps:$4 sm:$0xff]  }
 0x865   : > { %v4740_v4 = vpop.eup %4739  ;;  %4747 = vpow2.f32 %v4175_v56  ;;  %v6575_v56 = vld [vmem:[%s5377_s11 + $0x2c] ss:$16 sps:$4 sm:$0xff]  }
 0x866   : > { %4749 = vrcp.f32 %v3112_v1  ;;  %v3101_v9 = vadd.f32 1.0, %v4740_v4  ;;  %v6595_v1 = vld [vmem:[%s5377_s11] ss:$16 sps:$4 sm:$0xff]   ;;  %v6599_v4 = vld [vmem:[%s5377_s11 + $0x8] ss:$16 sps:$4 sm:$0xff]  }
 0x867   : > { %v4742_v13 = vpop.eup %4741  ;;  %4751 = vpow2.f32 %v4176_v62  ;;  %v6591_v62 = vld [vmem:[%s5377_s11 + $0xc] ss:$16 sps:$4 sm:$0xff]  }
 0x868   : > { %4753 = vrcp.f32 %v3101_v9  ;;  %v3113_v38 = vadd.f32 1.0, %v4742_v13  ;;  %v4744_v21 = vpop.eup %4743  ;;  %v6607_v9 = vld [vmem:[%s5369_s17 + $0xec] ss:$16 sps:$4 sm:$0xff]   ;;  %v6613_v13 = vld [vmem:[%s5369_s17 + $0xe0] ss:$16 sps:$4 sm:$0xff]  }
 0x869   : > { %4755 = vtanh.f32 %v3092_v5  ;;  %v6603_v5 = vld [vmem:[%s5369_s17 + $0xe4] ss:$16 sps:$4 sm:$0xff]  }
 0x86a   : > { %4757 = vrcp.f32 %v3113_v38  ;;  %v6617_v38 = vld [vmem:[%s5369_s17 + $0xe8] ss:$16 sps:$4 sm:$0xff]  }
 0x871   : > { %v4746_v6 = vpop.eup %4745 }
 0x872   : > { %v4748_v8 = vpop.eup %4747  ;;  %v3134_v31 = vmul.f32 %v4746_v6, %v4744_v21  ;;  %v6621_v21 = vld [vmem:[%s5369_s17 + $0xc4] ss:$16 sps:$4 sm:$0xff]   ;;  %v6625_v6 = vld [vmem:[%s5369_s17 + $0xcc] ss:$16 sps:$4 sm:$0xff]  }
 0x873   : > { %v4750_v3 = vpop.eup %4749  ;;  %v3126_v51 = vadd.f32 1.0, %v4748_v8  ;;  %v6631_v8 = vld [vmem:[%s5369_s17 + $0xc0] ss:$16 sps:$4 sm:$0xff]  }
 0x874   : > { %v4752_v27 = vpop.eup %4751  ;;  %v3132_v63 = vmul.f32 %v4750_v3, %v6372_v12  ;;  %v6635_v3 = vld [vmem:[%s5369_s17 + $0xc8] ss:$16 sps:$4 sm:$0xff]  }
 0x875   : > { %v4754_v17 = vpop.eup %4753  ;;  %v3127_v29 = vadd.f32 1.0, %v4752_v27  ;;  %4759 = vrcp.f32 %v3126_v51  ;;  %v6639_v27 = vld [vmem:[%s5369_s17 + $0xa4] ss:$16 sps:$4 sm:$0xff]  }
 0x876   : > { %v4756_v34 = vpop.eup %4755  ;;  %v6465_v0 = vadd.f32 %v3134_v31, %v3132_v63  ;;  %7228 = vst [vmem:[#allocation20_spill] sm:$0xff] %v6639_v27  ;;  %v6643_v31 = vld [vmem:[%s5369_s17 + $0xac] ss:$16 sps:$4 sm:$0xff]   ;;  %v6647_v63 = vld [vmem:[%s5369_s17 + $0xa0] ss:$16 sps:$4 sm:$0xff]  }
 0x877   : > { %v4758_v26 = vpop.eup %4757  ;;  %v3135_v23 = vmul.f32 %v4756_v34, %v4754_v17  ;;  %7229 = vst [vmem:[#allocation21_spill] sm:$0xff] %v6643_v31  ;;  %7230 = vst [vmem:[#allocation22_spill] sm:$0xff] %v6647_v63  ;;  %v6651_v17 = vld [vmem:[%s5369_s17 + $0xa8] ss:$16 sps:$4 sm:$0xff]   ;;  %v6655_v51 = vld [vmem:[%s5369_s17 + $0x84] ss:$16 sps:$4 sm:$0xff]  }
 0x878   : > { %v3133_v22 = vmul.f32 %v4758_v26, %v6376_v49  ;;  %4761 = vtanh.f32 %v6465_v0  ;;  %7231 = vst [vmem:[#allocation23_spill] sm:$0xff] %v6651_v17  ;;  %7232 = vst [vmem:[#allocation24_spill] sm:$0xff] %v6655_v51  ;;  %v6659_v34 = vld [vmem:[%s5369_s17 + $0x8c] ss:$16 sps:$4 sm:$0xff]   ;;  %v6663_v26 = vld [vmem:[%s5369_s17 + $0x80] ss:$16 sps:$4 sm:$0xff]  }
 0x879   : > { %4763 = vrcp.f32 %v3127_v29  ;;  %7233 = vst [vmem:[#allocation25_spill] sm:$0xff] %v6659_v34  ;;  %7234 = vst [vmem:[#allocation26_spill] sm:$0xff] %v6663_v26  ;;  %v6667_v29 = vld [vmem:[%s5369_s17 + $0x88] ss:$16 sps:$4 sm:$0xff]  }
 0x87a   : > { %v6469_v20 = vadd.f32 %v3135_v23, %v3133_v22  ;;  %7235 = vst [vmem:[#allocation27_spill] sm:$0xff] %v6667_v29  ;;  %v6671_v23 = vld [vmem:[%s5369_s17 + $0x64] ss:$16 sps:$4 sm:$0xff]   ;;  %v6675_v22 = vld [vmem:[%s5369_s17 + $0x6c] ss:$16 sps:$4 sm:$0xff]  }
 0x87b   : > { %7236 = vst [vmem:[#allocation28_spill] sm:$0xff] %v6671_v23  ;;  %7237 = vst [vmem:[#allocation29_spill] sm:$0xff] %v6675_v22 }
 0x87c   : > { %4765 = vtanh.f32 %v6469_v20 }
 0x882   : > { %v4760_v12 = vpop.eup %4759 }
 0x885   : > { %v4762_v30 = vpop.eup %4761 }
 0x886   : > { %v4764_v48 = vpop.eup %4763  ;;  %v3140_v10 = vmul.f32 %v4762_v30, %v4760_v12  ;;  %v6679_v12 = vld [vmem:[%s5369_s17 + $0x60] ss:$16 sps:$4 sm:$0xff]   ;;  %v6683_v30 = vld [vmem:[%s5369_s17 + $0x68] ss:$16 sps:$4 sm:$0xff]  }
 0x887   : > { %7238 = vst [vmem:[#allocation30_spill] sm:$0xff] %v6679_v12  ;;  %7239 = vst [vmem:[#allocation31_spill] sm:$0xff] %v6683_v30 }
 0x889   : > { %v4766_v24 = vpop.eup %4765 }
 0x88a   : > { %v3141_v16 = vmul.f32 %v4766_v24, %v4764_v48  ;;  %v6687_v48 = vld [vmem:[%s5369_s17 + $0x44] ss:$16 sps:$4 sm:$0xff]   ;;  %v6691_v24 = vld [vmem:[%s5369_s17 + $0x4c] ss:$16 sps:$4 sm:$0xff]  }
 0x88b   : > { %7240 = vst [vmem:[#allocation32_spill] sm:$0xff] %v6687_v48  ;;  %7241 = vst [vmem:[#allocation33_spill] sm:$0xff] %v6691_v24 }
 0x88c   : > { %v6472_v49 = vpack.c.bf16 %v3141_v16, %v3140_v10  ;;  %v6695_v10 = vld [vmem:[%s5369_s17 + $0x40] ss:$16 sps:$4 sm:$0xff]   ;;  %v6699_v16 = vld [vmem:[%s5369_s17 + $0x48] ss:$16 sps:$4 sm:$0xff]  }
 0x88d   : > { %7242 = vst [vmem:[#allocation34_spill] sm:$0xff] %v6695_v10  ;;  %7243 = vst [vmem:[#allocation35_spill] sm:$0xff] %v6699_v16 }
 0x88e   : > { %4343 = vst [vmem:[%s7088_s13 + $0x28] sm:$0xff] %v6472_v49   ;;  %3186 = vmatmul.mubr.bf16.vlgmr.msra.gmra.mxu0 %v6472_v49  ;;  %3229 = vmatmul.mubr.bf16.vlgmr.msra.gmra.mxu1 %v6472_v49 }
 0x88f   : > { %3281 = vmatpush1.bf16.msra.mxu0 %v6481_v14  ;;  %3324 = vmatpush1.bf16.msra.mxu1 %v6485_v28 }
 0x890   : > { %3282 = vmatprep.subr.bf16.mxu0 %v6489_v32  ;;  %3325 = vmatprep.subr.bf16.mxu1 %v6493_v18 }
 0x891   : > { %3312 = vmatprep.mubr.bf16.mxu0 %v7089_v50  ;;  %3355 = vmatprep.mubr.bf16.mxu1 %v7089_v50 }
 0x893   : > { %3283 = vmatpush1.bf16.msra.mxu0 %v6499_v25  ;;  %3326 = vmatpush1.bf16.msra.mxu1 %v6503_v2 }
 0x894   : > { %3284 = vmatprep.subr.bf16.mxu0 %v6507_v33  ;;  %3327 = vmatprep.subr.bf16.mxu1 %v6511_v35 }
 0x897   : > { %3285 = vmatpush1.bf16.msra.mxu0 %v6515_v36  ;;  %3328 = vmatpush1.bf16.msra.mxu1 %v6519_v37 }
 0x898   : > { %3286 = vmatprep.subr.bf16.mxu0 %v6523_v39  ;;  %3329 = vmatprep.subr.bf16.mxu1 %v6527_v40 }
 0x89b   : > { %3287 = vmatpush1.bf16.msra.mxu0 %v6531_v41  ;;  %3330 = vmatpush1.bf16.msra.mxu1 %v6535_v42 }
 0x89c   : > { %3288 = vmatprep.subr.bf16.mxu0 %v6539_v43  ;;  %3331 = vmatprep.subr.bf16.mxu1 %v6543_v44 }
 0x89f   : > { %3289 = vmatpush1.bf16.msra.mxu0 %v6547_v45  ;;  %3332 = vmatpush1.bf16.msra.mxu1 %v6551_v46 }
 0x8a0   : > { %3290 = vmatprep.subr.bf16.mxu0 %v6555_v47  ;;  %3333 = vmatprep.subr.bf16.mxu1 %v6559_v52 }
 0x8a3   : > { %3291 = vmatpush1.bf16.msra.mxu0 %v6563_v53  ;;  %3334 = vmatpush1.bf16.msra.mxu1 %v6567_v54 }
 0x8a4   : > { %3292 = vmatprep.subr.bf16.mxu0 %v6571_v55  ;;  %3335 = vmatprep.subr.bf16.mxu1 %v6575_v56 }
 0x8a7   : > { %3293 = vmatpush1.bf16.msra.mxu0 %v6579_v57  ;;  %3336 = vmatpush1.bf16.msra.mxu1 %v6583_v58 }
 0x8a8   : > { %3294 = vmatprep.subr.bf16.mxu0 %v6587_v59  ;;  %3337 = vmatprep.subr.bf16.mxu1 %v6591_v62 }
 0x8ab   : > { %3295 = vmatpush1.bf16.msra.mxu0 %v6595_v1  ;;  %3338 = vmatpush1.bf16.msra.mxu1 %v6599_v4 }
 0x8ac   : > { %3433 = vmatprep.subr.bf16.mxu0 %v6603_v5  ;;  %3476 = vmatprep.subr.bf16.mxu1 %v6607_v9 }
 0x8ae   : > { %3313 = vmatmul.mubr.bf16.vlgmr.msra.gmra.mxu0 %v6472_v49  ;;  %3356 = vmatmul.mubr.bf16.vlgmr.msra.gmra.mxu1 %v6472_v49  ;;  %v6703_v49 = vld [vmem:[%s5369_s17 + $0x24] ss:$16 sps:$4 sm:$0xff]  }
 0x8af   : > { %3434 = vmatpush1.bf16.msra.mxu0 %v6613_v13  ;;  %3477 = vmatpush1.bf16.msra.mxu1 %v6617_v38  ;;  %7244 = vst [vmem:[#allocation36_spill] sm:$0xff] %v6703_v49 }
 0x8b0   : > { %3435 = vmatprep.subr.bf16.mxu0 %v6621_v21  ;;  %3478 = vmatprep.subr.bf16.mxu1 %v6625_v6 }
 0x8b1   : > { %3465 = vmatprep.mubr.bf16.mxu0 %v7089_v50  ;;  %3508 = vmatprep.mubr.bf16.mxu1 %v7089_v50 }
 0x8b3   : > { %3436 = vmatpush1.bf16.msra.mxu0 %v6631_v8  ;;  %3479 = vmatpush1.bf16.msra.mxu1 %v6635_v3 }
 0x8b4   : > { %3437 = vmatprep.subr.bf16.mxu0 %v6639_v27  ;;  %3480 = vmatprep.subr.bf16.mxu1 %v6643_v31 }
 0x8b7   : > { %3438 = vmatpush1.bf16.msra.mxu0 %v6647_v63  ;;  %3481 = vmatpush1.bf16.msra.mxu1 %v6651_v17 }
 0x8b8   : > { %3439 = vmatprep.subr.bf16.mxu0 %v6655_v51  ;;  %3482 = vmatprep.subr.bf16.mxu1 %v6659_v34 }
 0x8bb   : > { %3440 = vmatpush1.bf16.msra.mxu0 %v6663_v26  ;;  %3483 = vmatpush1.bf16.msra.mxu1 %v6667_v29 }
 0x8bc   : > { %3441 = vmatprep.subr.bf16.mxu0 %v6671_v23  ;;  %3484 = vmatprep.subr.bf16.mxu1 %v6675_v22 }
 0x8bf   : > { %3442 = vmatpush1.bf16.msra.mxu0 %v6679_v12  ;;  %3485 = vmatpush1.bf16.msra.mxu1 %v6683_v30  ;;  %v6711_v30 = vld [vmem:[%s5369_s17 + $0x20] ss:$16 sps:$4 sm:$0xff]  }
 0x8c0   : > { %3443 = vmatprep.subr.bf16.mxu0 %v6687_v48  ;;  %3486 = vmatprep.subr.bf16.mxu1 %v6691_v24  ;;  %v6707_v48 = vld [vmem:[%s5369_s17 + $0x2c] ss:$16 sps:$4 sm:$0xff]   ;;  %7246 = vst [vmem:[#allocation38_spill] sm:$0xff] %v6711_v30  ;;  %v6715_v24 = vld [vmem:[%s5369_s17 + $0x28] ss:$16 sps:$4 sm:$0xff]  }
 0x8c1   : > { %7245 = vst [vmem:[#allocation37_spill] sm:$0xff] %v6707_v48  ;;  %7247 = vst [vmem:[#allocation39_spill] sm:$0xff] %v6715_v24 }
 0x8c3   : > { %3444 = vmatpush1.bf16.msra.mxu0 %v6695_v10  ;;  %3487 = vmatpush1.bf16.msra.mxu1 %v6699_v16  ;;  %v6719_v10 = vld [vmem:[%s5369_s17 + $0x4] ss:$16 sps:$4 sm:$0xff]   ;;  %v6723_v16 = vld [vmem:[%s5369_s17 + $0xc] ss:$16 sps:$4 sm:$0xff]  }
 0x8c4   : > { %3445 = vmatprep.subr.bf16.mxu0 %v6703_v49  ;;  %3488 = vmatprep.subr.bf16.mxu1 %v6707_v48  ;;  %7248 = vst [vmem:[#allocation40_spill] sm:$0xff] %v6719_v10  ;;  %7249 = vst [vmem:[#allocation41_spill] sm:$0xff] %v6723_v16  ;;  %v6727_v49 = vld [vmem:[%s5369_s17] ss:$16 sps:$4 sm:$0xff]   ;;  %v6731_v48 = vld [vmem:[%s5369_s17 + $0x8] ss:$16 sps:$4 sm:$0xff]  }
 0x8c5   : > { %7250 = vst [vmem:[#allocation42_spill] sm:$0xff] %v6727_v49  ;;  %7251 = vst [vmem:[#allocation43_spill] sm:$0xff] %v6731_v48 }
 0x8c7   : > { %3446 = vmatpush1.bf16.msra.mxu0 %v6711_v30  ;;  %3489 = vmatpush1.bf16.msra.mxu1 %v6715_v24 }
 0x8c8   : > { %3447 = vmatprep.subr.bf16.mxu0 %v6719_v10  ;;  %3490 = vmatprep.subr.bf16.mxu1 %v6723_v16 }
 0x8cb   : > { %3448 = vmatpush1.bf16.msra.mxu0 %v6727_v49  ;;  %3491 = vmatpush1.bf16.msra.mxu1 %v6731_v48 }
 0x8cc   : > { %3560 = vmatprep.subr.bf16.mxu0 %v6449_v60  ;;  %3603 = vmatprep.subr.bf16.mxu1 %v6453_v61 }
 0x94e   : > { %v3187_v24 = vpop.f32.mrf.mxu0  ;;  %v3230_v30 = vpop.f32.mrf.mxu1 }
 0x94f   : > { %v3188_v22 = vadd.f32 %v3187_v24, %v7224_v7  ;;  %v3231_v16 = vadd.f32 %v3230_v30, %v7225_v11 }
 0x950   : > { %v3189_v12 = vpop.f32.mrf.mxu0  ;;  %v3232_v10 = vpop.f32.mrf.mxu1 }
 0x951   : > { %v3190_v23 = vadd.f32 %v3189_v12, %v7226_v15  ;;  %v3233_v49 = vadd.f32 %v3232_v10, %v7227_v19  ;;  %v3268_v10 = vld [vmem:[#allocation2 + $0xa8] sm:$0xff] }
 0x952   : > { %v3191_v29 = vpop.f32.mrf.mxu0  ;;  %v3234_v26 = vpop.f32.mrf.mxu1  ;;  %v3272_v31 = vunpack.c.l.bf16 %v3268_v10 }
 0x953   : > { %v4283_v34 = vpack.c.bf16 %v3190_v23, %v3188_v22  ;;  %v4284_v48 = vpack.c.bf16 %v3233_v49, %v3231_v16  ;;  %v3192_v61 = vadd.f32 %v3191_v29, %v7224_v7  ;;  %v3235_v17 = vadd.f32 %v3234_v26, %v7225_v11  ;;  %v3270_v23 = vld [vmem:[#allocation2 + $0x10] sm:$0xff] }
 0x954   : > { %v3193_v51 = vpop.f32.mrf.mxu0  ;;  %v3236_v60 = vpop.f32.mrf.mxu1  ;;  %v3273_v22 = vunpack.c.h.bf16 %v3268_v10  ;;  %v3277_v26 = vunpack.c.h.bf16 %v3270_v23 }
 0x955   : > { %3263 = vst [vmem:[#allocation2 + $0xe0] sm:$0xff] %v4283_v34  ;;  %3264 = vst [vmem:[#allocation2 + $0x90] sm:$0xff] %v4284_v48  ;;  %v3194_v24 = vadd.f32 %v3193_v51, %v7226_v15  ;;  %v3237_v30 = vadd.f32 %v3236_v60, %v7227_v19  ;;  %v3276_v48 = vunpack.c.l.bf16 %v3270_v23 }
 0x957   : > { %v4285_v63 = vpack.c.bf16 %v3194_v24, %v3192_v61  ;;  %v4286_v12 = vpack.c.bf16 %v3237_v30, %v3235_v17  ;;  %v3269_v30 = vld [vmem:[#allocation2 + $0xd0] sm:$0xff] }
 0x958   : > { %v3274_v19 = vunpack.c.l.bf16 %v3269_v30 }
 0x959   : > { %3265 = vst [vmem:[#allocation2 + $0x70] sm:$0xff] %v4285_v63  ;;  %3266 = vst [vmem:[#allocation2 + $0xc0] sm:$0xff] %v4286_v12 }
 0x96e   : > { %v3314_v16 = vpop.f32.mrf.mxu0  ;;  %v3357_v34 = vpop.f32.mrf.mxu1 }
 0x96f   : > { %v3366_v49 = vadd.f32 %v3314_v16, %v3272_v31  ;;  %v3275_v31 = vunpack.c.h.bf16 %v3269_v30  ;;  %v3271_v16 = vld [vmem:[#allocation2 + $0x28] sm:$0xff] }
 0x970   : > { %v3316_v27 = vpop.f32.mrf.mxu0  ;;  %v3359_v60 = vpop.f32.mrf.mxu1 }
 0x971   : > { %v4185_v29 = vmul.f32 -1.442695, %v3366_v49  ;;  %v3367_v7 = vadd.f32 %v3316_v27, %v3273_v22  ;;  %v3279_v49 = vunpack.c.h.bf16 %v3271_v16  ;;  %v3369_v23 = vadd.f32 %v3359_v60, %v3275_v31 }
 0x972   : > { %v3318_v11 = vpop.f32.mrf.mxu0  ;;  %v3361_v12 = vpop.f32.mrf.mxu1  ;;  %v3368_v22 = vadd.f32 %v3357_v34, %v3274_v19 }
 0x973   : > { %4767 = vpow2.f32 %v4185_v29  ;;  %v4187_v51 = vmul.f32 -1.442695, %v3367_v7  ;;  %v3370_v61 = vadd.f32 %v3318_v11, %v3276_v48  ;;  %v4189_v15 = vmul.f32 -1.442695, %v3369_v23 }
 0x974   : > { %v3320_v17 = vpop.f32.mrf.mxu0  ;;  %v3363_v27 = vpop.f32.mrf.mxu1  ;;  %v3278_v11 = vunpack.c.l.bf16 %v3271_v16 }
 0x975   : > { %4769 = vpow2.f32 %v4187_v51  ;;  %v4186_v63 = vmul.f32 -1.442695, %v3370_v61  ;;  %v3371_v24 = vadd.f32 %v3320_v17, %v3277_v26  ;;  %v3373_v29 = vadd.f32 %v3363_v27, %v3279_v49 }
 0x977   : > { %4771 = vpow2.f32 %v4186_v63  ;;  %v4188_v10 = vmul.f32 -1.442695, %v3371_v24  ;;  %v4190_v26 = vmul.f32 -1.442695, %v3373_v29  ;;  %v3372_v63 = vadd.f32 %v3361_v12, %v3278_v11 }
 0x979   : > { %4773 = vpow2.f32 %v4188_v10 }
 0x97a   : > { %4775 = vtanh.f32 %v3368_v22 }
 0x980   : > { %v4768_v7 = vpop.eup %4767 }
 0x981   : > { %v3380_v48 = vadd.f32 1.0, %v4768_v7 }
 0x982   : > { %v4770_v51 = vpop.eup %4769 }
 0x983   : > { %4777 = vrcp.f32 %v3380_v48  ;;  %v3392_v61 = vadd.f32 1.0, %v4770_v51 }
 0x984   : > { %v4772_v17 = vpop.eup %4771  ;;  %4779 = vpow2.f32 %v4189_v15 }
 0x985   : > { %4781 = vrcp.f32 %v3392_v61  ;;  %v3381_v24 = vadd.f32 1.0, %v4772_v17 }
 0x986   : > { %v4774_v30 = vpop.eup %4773  ;;  %4783 = vpow2.f32 %v4190_v26 }
 0x987   : > { %4785 = vrcp.f32 %v3381_v24  ;;  %v3393_v60 = vadd.f32 1.0, %v4774_v30  ;;  %v4776_v19 = vpop.eup %4775 }
 0x988   : > { %4787 = vtanh.f32 %v3372_v63 }
 0x989   : > { %4789 = vrcp.f32 %v3393_v60 }
 0x990   : > { %v4778_v34 = vpop.eup %4777 }
 0x991   : > { %v4780_v10 = vpop.eup %4779  ;;  %v3414_v49 = vmul.f32 %v4778_v34, %v4776_v19 }
 0x992   : > { %v4782_v31 = vpop.eup %4781  ;;  %v3406_v22 = vadd.f32 1.0, %v4780_v10 }
 0x993   : > { %v4784_v16 = vpop.eup %4783  ;;  %v3412_v27 = vmul.f32 %v4782_v31, %v6465_v0 }
 0x994   : > { %v4786_v23 = vpop.eup %4785  ;;  %v3407_v7 = vadd.f32 1.0, %v4784_v16  ;;  %4791 = vrcp.f32 %v3406_v22 }
 0x995   : > { %v4788_v15 = vpop.eup %4787  ;;  %v6745_v12 = vadd.f32 %v3414_v49, %v3412_v27 }
 0x996   : > { %v4790_v29 = vpop.eup %4789  ;;  %v3415_v11 = vmul.f32 %v4788_v15, %v4786_v23  ;;  %v3548_v23 = vld [vmem:[#allocation2 + $0xa0] sm:$0xff] }
 0x997   : > { %v3413_v48 = vmul.f32 %v4790_v29, %v6469_v20  ;;  %4793 = vtanh.f32 %v6745_v12  ;;  %v7252_v20 = vld [vmem:[#allocation20_spill] sm:$0xff]  ;;  %v3552_v22 = vunpack.c.l.bf16 %v3548_v23  ;;  %v3550_v15 = vld [vmem:[#allocation2 + $0x20] sm:$0xff]  ;;  %v3553_v29 = vunpack.c.h.bf16 %v3548_v23 }
 0x998   : > { %4795 = vrcp.f32 %v3407_v7 }
 0x999   : > { %v6749_v51 = vadd.f32 %v3415_v11, %v3413_v48 }
 0x99b   : > { %4797 = vtanh.f32 %v6749_v51 }
 0x9a1   : > { %v4792_v26 = vpop.eup %4791 }
 0x9a4   : > { %v4794_v0 = vpop.eup %4793 }
 0x9a5   : > { %v4796_v61 = vpop.eup %4795  ;;  %v3420_v63 = vmul.f32 %v4794_v0, %v4792_v26  ;;  %v3556_v26 = vunpack.c.l.bf16 %v3550_v15 }
 0x9a8   : > { %v4798_v17 = vpop.eup %4797 }
 0x9a9   : > { %v3421_v24 = vmul.f32 %v4798_v17, %v4796_v61 }
 0x9ab   : > { %v3422_v30 = vpack.c.bf16 %v3421_v24, %v3420_v63  ;;  %v3557_v63 = vunpack.c.h.bf16 %v3550_v15 }
 0x9ad   : > { %4344 = vst [vmem:[%s7088_s13 + $0x30] sm:$0xff] %v3422_v30   ;;  %3466 = vmatmul.mubr.bf16.vlgmr.msra.gmra.mxu0 %v3422_v30  ;;  %3509 = vmatmul.mubr.bf16.vlgmr.msra.gmra.mxu1 %v3422_v30 }
 0x9ae   : > { %3561 = vmatpush1.bf16.msra.mxu0 %v6481_v14  ;;  %3604 = vmatpush1.bf16.msra.mxu1 %v6485_v28  ;;  %v7253_v14 = vld [vmem:[#allocation21_spill] sm:$0xff]  ;;  %v7254_v28 = vld [vmem:[#allocation22_spill] sm:$0xff] }
 0x9af   : > { %3562 = vmatprep.subr.bf16.mxu0 %v6489_v32  ;;  %3605 = vmatprep.subr.bf16.mxu1 %v6493_v18  ;;  %v7255_v32 = vld [vmem:[#allocation23_spill] sm:$0xff]  ;;  %v7256_v18 = vld [vmem:[#allocation24_spill] sm:$0xff] }
 0x9b0   : > { %3592 = vmatprep.mubr.bf16.mxu0 %v7089_v50  ;;  %3635 = vmatprep.mubr.bf16.mxu1 %v7089_v50 }
 0x9b2   : > { %3563 = vmatpush1.bf16.msra.mxu0 %v6499_v25  ;;  %3606 = vmatpush1.bf16.msra.mxu1 %v6503_v2  ;;  %v7257_v25 = vld [vmem:[#allocation25_spill] sm:$0xff]  ;;  %v7258_v2 = vld [vmem:[#allocation26_spill] sm:$0xff] }
 0x9b3   : > { %3564 = vmatprep.subr.bf16.mxu0 %v6507_v33  ;;  %3607 = vmatprep.subr.bf16.mxu1 %v6511_v35  ;;  %v7259_v33 = vld [vmem:[#allocation27_spill] sm:$0xff]  ;;  %v7261_v35 = vld [vmem:[#allocation29_spill] sm:$0xff] }
 0x9b6   : > { %3565 = vmatpush1.bf16.msra.mxu0 %v6515_v36  ;;  %3608 = vmatpush1.bf16.msra.mxu1 %v6519_v37  ;;  %v7262_v36 = vld [vmem:[#allocation30_spill] sm:$0xff]  ;;  %v7263_v37 = vld [vmem:[#allocation31_spill] sm:$0xff] }
 0x9b7   : > { %3566 = vmatprep.subr.bf16.mxu0 %v6523_v39  ;;  %3609 = vmatprep.subr.bf16.mxu1 %v6527_v40  ;;  %v7264_v39 = vld [vmem:[#allocation32_spill] sm:$0xff]  ;;  %v7265_v40 = vld [vmem:[#allocation33_spill] sm:$0xff] }
 0x9ba   : > { %3567 = vmatpush1.bf16.msra.mxu0 %v6531_v41  ;;  %3610 = vmatpush1.bf16.msra.mxu1 %v6535_v42  ;;  %v7266_v41 = vld [vmem:[#allocation34_spill] sm:$0xff]  ;;  %v7267_v42 = vld [vmem:[#allocation35_spill] sm:$0xff] }
 0x9bb   : > { %3568 = vmatprep.subr.bf16.mxu0 %v6539_v43  ;;  %3611 = vmatprep.subr.bf16.mxu1 %v6543_v44  ;;  %v7268_v43 = vld [vmem:[#allocation36_spill] sm:$0xff]  ;;  %v7269_v44 = vld [vmem:[#allocation37_spill] sm:$0xff] }
 0x9be   : > { %3569 = vmatpush1.bf16.msra.mxu0 %v6547_v45  ;;  %3612 = vmatpush1.bf16.msra.mxu1 %v6551_v46  ;;  %v7270_v45 = vld [vmem:[#allocation38_spill] sm:$0xff]  ;;  %v7271_v46 = vld [vmem:[#allocation39_spill] sm:$0xff] }
 0x9bf   : > { %3570 = vmatprep.subr.bf16.mxu0 %v6555_v47  ;;  %3613 = vmatprep.subr.bf16.mxu1 %v6559_v52  ;;  %v7272_v47 = vld [vmem:[#allocation40_spill] sm:$0xff]  ;;  %v7273_v52 = vld [vmem:[#allocation41_spill] sm:$0xff] }
 0x9c2   : > { %3571 = vmatpush1.bf16.msra.mxu0 %v6563_v53  ;;  %3614 = vmatpush1.bf16.msra.mxu1 %v6567_v54  ;;  %v7274_v53 = vld [vmem:[#allocation42_spill] sm:$0xff]  ;;  %v7275_v54 = vld [vmem:[#allocation43_spill] sm:$0xff] }
 0x9c3   : > { %3572 = vmatprep.subr.bf16.mxu0 %v6571_v55  ;;  %3615 = vmatprep.subr.bf16.mxu1 %v6575_v56 }
 0x9c6   : > { %3573 = vmatpush1.bf16.msra.mxu0 %v6579_v57  ;;  %3616 = vmatpush1.bf16.msra.mxu1 %v6583_v58 }
 0x9c7   : > { %3574 = vmatprep.subr.bf16.mxu0 %v6587_v59  ;;  %3617 = vmatprep.subr.bf16.mxu1 %v6591_v62  ;;  %v7276_v59 = vld [vmem:[#allocation18_spill] sm:$0xff] }
 0x9ca   : > { %3575 = vmatpush1.bf16.msra.mxu0 %v6595_v1  ;;  %3618 = vmatpush1.bf16.msra.mxu1 %v6599_v4  ;;  %v7277_v1 = vld [vmem:[#allocation19_spill] sm:$0xff] }
 0x9cb   : > { %3713 = vmatprep.subr.bf16.mxu0 %v6603_v5  ;;  %3756 = vmatprep.subr.bf16.mxu1 %v6607_v9  ;;  %v7278_v5 = vld [vmem:[#allocation44_spill] sm:$0xff] }
 0x9cd   : > { %3593 = vmatmul.mubr.bf16.vlgmr.msra.gmra.mxu0 %v3422_v30  ;;  %3636 = vmatmul.mubr.bf16.vlgmr.msra.gmra.mxu1 %v3422_v30 }
 0x9ce   : > { %3714 = vmatpush1.bf16.msra.mxu0 %v6613_v13  ;;  %3757 = vmatpush1.bf16.msra.mxu1 %v6617_v38  ;;  %v7279_v13 = vld [vmem:[#allocation45_spill] sm:$0xff] }
 0x9cf   : > { %3715 = vmatprep.subr.bf16.mxu0 %v6621_v21  ;;  %3758 = vmatprep.subr.bf16.mxu1 %v6625_v6 }
 0x9d0   : > { %3745 = vmatprep.mubr.bf16.mxu0 %v7089_v50  ;;  %3788 = vmatprep.mubr.bf16.mxu1 %v7089_v50  ;;  %v7260_v50 = vld [vmem:[#allocation28_spill] sm:$0xff] }
 0x9d2   : > { %3716 = vmatpush1.bf16.msra.mxu0 %v6631_v8  ;;  %3759 = vmatpush1.bf16.msra.mxu1 %v6635_v3 }
 0x9d3   : > { %3717 = vmatprep.subr.bf16.mxu0 %v7252_v20  ;;  %3760 = vmatprep.subr.bf16.mxu1 %v7253_v14 }
 0x9d6   : > { %3718 = vmatpush1.bf16.msra.mxu0 %v7254_v28  ;;  %3761 = vmatpush1.bf16.msra.mxu1 %v7255_v32  ;;  %v3549_v32 = vld [vmem:[#allocation2 + $0xf8] sm:$0xff] }
 0x9d7   : > { %3719 = vmatprep.subr.bf16.mxu0 %v7256_v18  ;;  %3762 = vmatprep.subr.bf16.mxu1 %v7257_v25 }
 0x9da   : > { %3720 = vmatpush1.bf16.msra.mxu0 %v7258_v2  ;;  %3763 = vmatpush1.bf16.msra.mxu1 %v7259_v33  ;;  %v3555_v2 = vunpack.c.h.bf16 %v3549_v32 }
 0x9db   : > { %3721 = vmatprep.subr.bf16.mxu0 %v7260_v50  ;;  %3764 = vmatprep.subr.bf16.mxu1 %v7261_v35  ;;  %v3551_v35 = vld [vmem:[#allocation2 + $0x98] sm:$0xff] }
 0x9de   : > { %3722 = vmatpush1.bf16.msra.mxu0 %v7262_v36  ;;  %3765 = vmatpush1.bf16.msra.mxu1 %v7263_v37  ;;  %v3559_v37 = vunpack.c.h.bf16 %v3551_v35 }
 0x9df   : > { %3723 = vmatprep.subr.bf16.mxu0 %v7264_v39  ;;  %3766 = vmatprep.subr.bf16.mxu1 %v7265_v40  ;;  %v3554_v40 = vunpack.c.l.bf16 %v3549_v32 }
 0x9e2   : > { %3724 = vmatpush1.bf16.msra.mxu0 %v7266_v41  ;;  %3767 = vmatpush1.bf16.msra.mxu1 %v7267_v42 }
 0x9e3   : > { %3725 = vmatprep.subr.bf16.mxu0 %v7268_v43  ;;  %3768 = vmatprep.subr.bf16.mxu1 %v7269_v44 }
 0x9e6   : > { %3726 = vmatpush1.bf16.msra.mxu0 %v7270_v45  ;;  %3769 = vmatpush1.bf16.msra.mxu1 %v7271_v46  ;;  %v3558_v45 = vunpack.c.l.bf16 %v3551_v35 }
 0x9e7   : > { %3727 = vmatprep.subr.bf16.mxu0 %v7272_v47  ;;  %3770 = vmatprep.subr.bf16.mxu1 %v7273_v52 }
 0x9ea   : > { %3728 = vmatpush1.bf16.msra.mxu0 %v7274_v53  ;;  %3771 = vmatpush1.bf16.msra.mxu1 %v7275_v54 }
 0xa6d   : > { %v3467_v55 = vpop.f32.mrf.mxu0  ;;  %v3510_v56 = vpop.f32.mrf.mxu1 }
 0xa6e   : > { %v3468_v62 = vadd.f32 %v3467_v55, %v7276_v59  ;;  %v3511_v4 = vadd.f32 %v3510_v56, %v7277_v1 }
 0xa6f   : > { %v3469_v57 = vpop.f32.mrf.mxu0  ;;  %v3512_v58 = vpop.f32.mrf.mxu1 }
 0xa70   : > { %v3470_v9 = vadd.f32 %v3469_v57, %v7278_v5  ;;  %v3513_v38 = vadd.f32 %v3512_v58, %v7279_v13 }
 0xa71   : > { %v3471_v21 = vpop.f32.mrf.mxu0  ;;  %v3514_v6 = vpop.f32.mrf.mxu1 }
 0xa72   : > { %v4289_v8 = vpack.c.bf16 %v3470_v9, %v3468_v62  ;;  %v4290_v3 = vpack.c.bf16 %v3513_v38, %v3511_v4  ;;  %v3472_v34 = vadd.f32 %v3471_v21, %v7276_v59  ;;  %v3515_v10 = vadd.f32 %v3514_v6, %v7277_v1 }
 0xa73   : > { %v3473_v60 = vpop.f32.mrf.mxu0  ;;  %v3516_v19 = vpop.f32.mrf.mxu1 }
 0xa74   : > { %3543 = vst [vmem:[#allocation2 + $0xa8] sm:$0xff] %v4289_v8  ;;  %3544 = vst [vmem:[#allocation2 + $0xd0] sm:$0xff] %v4290_v3  ;;  %v3474_v31 = vadd.f32 %v3473_v60, %v7278_v5  ;;  %v3517_v16 = vadd.f32 %v3516_v19, %v7279_v13 }
 0xa76   : > { %v4291_v49 = vpack.c.bf16 %v3474_v31, %v3472_v34  ;;  %v4292_v27 = vpack.c.bf16 %v3517_v16, %v3515_v10 }
 0xa78   : > { %3545 = vst [vmem:[#allocation2 + $0x10] sm:$0xff] %v4291_v49  ;;  %3546 = vst [vmem:[#allocation2 + $0x28] sm:$0xff] %v4292_v27 }
 0xa8d   : > { %v3594_v7 = vpop.f32.mrf.mxu0  ;;  %v3637_v48 = vpop.f32.mrf.mxu1 }
 0xa8e   : > { %v3646_v11 = vadd.f32 %v3594_v7, %v3552_v22  ;;  %v3648_v44 = vadd.f32 %v3637_v48, %v3554_v40 }
 0xa8f   : > { %v3596_v0 = vpop.f32.mrf.mxu0  ;;  %v3639_v20 = vpop.f32.mrf.mxu1 }
 0xa90   : > { %v4199_v61 = vmul.f32 -1.442695, %v3646_v11  ;;  %v3647_v17 = vadd.f32 %v3596_v0, %v3553_v29  ;;  %v3649_v36 = vadd.f32 %v3639_v20, %v3555_v2 }
 0xa91   : > { %v3598_v24 = vpop.f32.mrf.mxu0  ;;  %v3641_v33 = vpop.f32.mrf.mxu1 }
 0xa92   : > { %4799 = vpow2.f32 %v4199_v61  ;;  %v4201_v30 = vmul.f32 -1.442695, %v3647_v17  ;;  %v3650_v14 = vadd.f32 %v3598_v24, %v3556_v26  ;;  %v4203_v41 = vmul.f32 -1.442695, %v3649_v36 }
 0xa93   : > { %v3600_v28 = vpop.f32.mrf.mxu0  ;;  %v3643_v39 = vpop.f32.mrf.mxu1  ;;  %v3652_v55 = vadd.f32 %v3641_v33, %v3558_v45 }
 0xa94   : > { %4801 = vpow2.f32 %v4201_v30  ;;  %v4200_v18 = vmul.f32 -1.442695, %v3650_v14  ;;  %v3651_v25 = vadd.f32 %v3600_v28, %v3557_v63  ;;  %v3653_v42 = vadd.f32 %v3643_v39, %v3559_v37 }
 0xa96   : > { %4803 = vpow2.f32 %v4200_v18  ;;  %v4202_v50 = vmul.f32 -1.442695, %v3651_v25  ;;  %v4204_v52 = vmul.f32 -1.442695, %v3653_v42 }
 0xa98   : > { %4805 = vpow2.f32 %v4202_v50 }
 0xa99   : > { %4807 = vpow2.f32 %v4203_v41 }
 0xa9f   : > { %v4800_v43 = vpop.eup %4799 }
 0xaa0   : > { %v3660_v46 = vadd.f32 1.0, %v4800_v43 }
 0xaa1   : > { %v4802_v47 = vpop.eup %4801 }
 0xaa2   : > { %4809 = vrcp.f32 %v3660_v46  ;;  %v3672_v53 = vadd.f32 1.0, %v4802_v47 }
 0xaa3   : > { %v4804_v54 = vpop.eup %4803  ;;  %4811 = vtanh.f32 %v3648_v44 }
 0xaa4   : > { %4813 = vrcp.f32 %v3672_v53  ;;  %v3661_v56 = vadd.f32 1.0, %v4804_v54 }
 0xaa5   : > { %v4806_v57 = vpop.eup %4805  ;;  %4815 = vpow2.f32 %v4204_v52 }
 0xaa6   : > { %4817 = vrcp.f32 %v3661_v56  ;;  %v3673_v58 = vadd.f32 1.0, %v4806_v57  ;;  %v4808_v62 = vpop.eup %4807 }
 0xaa7   : > { %4819 = vtanh.f32 %v3652_v55  ;;  %v3686_v21 = vadd.f32 1.0, %v4808_v62 }
 0xaa8   : > { %4821 = vrcp.f32 %v3673_v58 }
 0xaa9   : > { %4823 = vrcp.f32 %v3686_v21 }
 0xaaf   : > { %v4810_v4 = vpop.eup %4809 }
 0xab0   : > { %v4812_v9 = vpop.eup %4811 }
 0xab1   : > { %v4814_v38 = vpop.eup %4813  ;;  %v3694_v8 = vmul.f32 %v4812_v9, %v4810_v4 }
 0xab2   : > { %v4816_v6 = vpop.eup %4815  ;;  %v3692_v3 = vmul.f32 %v4814_v38, %v6745_v12 }
 0xab3   : > { %v4818_v60 = vpop.eup %4817  ;;  %v3687_v31 = vadd.f32 1.0, %v4816_v6 }
 0xab4   : > { %v4820_v19 = vpop.eup %4819  ;;  %v3696_v34 = vadd.f32 %v3694_v8, %v3692_v3 }
 0xab5   : > { %v4822_v10 = vpop.eup %4821  ;;  %v3695_v16 = vmul.f32 %v4820_v19, %v4818_v60 }
 0xab6   : > { %v3693_v49 = vmul.f32 %v4822_v10, %v6749_v51  ;;  %4825 = vtanh.f32 %v3696_v34  ;;  %3832 = vst [vmem:[%s3831_s25] sm:$0xff] %v3696_v34  ;;  %v4824_v12 = vpop.eup %4823 }
 0xab7   : > { %4827 = vrcp.f32 %v3687_v31 }
 0xab8   : > { %v3697_v27 = vadd.f32 %v3695_v16, %v3693_v49 }
 0xaba   : > { %4829 = vtanh.f32 %v3697_v27  ;;  %3833 = vst [vmem:[%s3831_s25 + $0x8] sm:$0xff] %v3697_v27 }
 0xac3   : > { %v4826_v23 = vpop.eup %4825 }
 0xac4   : > { %v3700_v22 = vmul.f32 %v4826_v23, %v4824_v12  ;;  %v4828_v15 = vpop.eup %4827 }
 0xac6   : > { %3829 = vst [vmem:[%s3828_s6] sm:$0xff] %v3700_v22 }
 0xac7   : > { %v4830_v29 = vpop.eup %4829 }
 0xac8   : > { %v3701_v7 = vmul.f32 %v4830_v29, %v4828_v15 }
 0xaca   : > { %v3702_v11 = vpack.c.bf16 %v3701_v7, %v3700_v22  ;;  %3830 = vst [vmem:[%s3828_s6 + $0x8] sm:$0xff] %v3701_v7 }
 0xacc   : > { %4345 = vst [vmem:[%s7088_s13 + $0x38] sm:$0xff] %v3702_v11   ;;  %3746 = vmatmul.mubr.bf16.vlgmr.msra.gmra.mxu0 %v3702_v11  ;;  %3789 = vmatmul.mubr.bf16.vlgmr.msra.gmra.mxu1 %v3702_v11 }
 0xb8c   : > { %v3747_v51 = vpop.f32.mrf.mxu0  ;;  %v3790_v48 = vpop.f32.mrf.mxu1 }
 0xb8d   : > { %v3748_v61 = vadd.f32 %v3747_v51, %v7276_v59  ;;  %v3791_v17 = vadd.f32 %v3790_v48, %v7277_v1 }
 0xb8e   : > { %v3749_v26 = vpop.f32.mrf.mxu0  ;;  %v3792_v0 = vpop.f32.mrf.mxu1 }
 0xb8f   : > { %v3750_v63 = vadd.f32 %v3749_v26, %v7278_v5  ;;  %v3793_v24 = vadd.f32 %v3792_v0, %v7279_v13 }
 0xb90   : > { %v3751_v30 = vpop.f32.mrf.mxu0  ;;  %v3794_v20 = vpop.f32.mrf.mxu1 }
 0xb91   : > { %v4295_v14 = vpack.c.bf16 %v3750_v63, %v3748_v61  ;;  %v4296_v28 = vpack.c.bf16 %v3793_v24, %v3791_v17  ;;  %v3752_v25 = vadd.f32 %v3751_v30, %v7276_v59  ;;  %v3795_v2 = vadd.f32 %v3794_v20, %v7277_v1 }
 0xb92   : > { %v3753_v32 = vpop.f32.mrf.mxu0  ;;  %v3796_v18 = vpop.f32.mrf.mxu1 }
 0xb93   : > { %3823 = vst [vmem:[#allocation2 + $0xa0] sm:$0xff] %v4295_v14  ;;  %3824 = vst [vmem:[#allocation2 + $0xf8] sm:$0xff] %v4296_v28  ;;  %v3754_v33 = vadd.f32 %v3753_v32, %v7278_v5  ;;  %v3797_v50 = vadd.f32 %v3796_v18, %v7279_v13 }
 0xb95   : > { %v4297_v35 = vpack.c.bf16 %v3754_v33, %v3752_v25  ;;  %v4298_v36 = vpack.c.bf16 %v3797_v50, %v3795_v2 }
 0xb97   : > { %3825 = vst [vmem:[#allocation2 + $0x20] sm:$0xff] %v4297_v35  ;;  %3826 = vst [vmem:[#allocation2 + $0x98] sm:$0xff] %v4298_v36 }
 0xb98 PF: > { %s7281_s11 = sld [smem:[#allocation15_spill]]  ;;  %s7286_s27 = smov %s5089_s28 }
 0xb99   : > { %s7282_s29 = sld [smem:[#allocation13_spill]]  ;;  %s7289_s30 = smov %s5101_s9 }
 0xb9a   : > { %s7283_s24 = sld [smem:[#allocation16_spill]] }
 0xb9b   : > { %s7284_s26 = sld [smem:[#allocation14_spill]] }
 0xb9c   : > { %s7285_s10 = sld [smem:[#allocation17_spill]] }
 0xb9e   : > { %p22_p6 = scmp.ge.s32.totalorder %s7281_s11, 12  }
 0xb9f   : > { %s7287_s28 = smov %s7282_s29 }
 0xba0   : > { %s7288_s29 = smov %s7283_s24  ;;  %24 = sbr.rel (!%p22_p6) target bundleno = 12 (0xc), region = 156 }
 0xba1   : > { %s7290_s9 = smov %s7284_s26 }
 0xba5   :  { %3857 = vsyncpa [#allocation6], 1 }
 0xba6   :  { %3859 = vsyncpa [#allocation6 + $0x1], 1 }
 0xba7   :  { %3860 = vsyncpa [#allocation8], 1 }
 0xba8   :  { %3862 = vsyncpa [#allocation8 + $0x1], 1 }

</bundles_post_ra>
